<compile_context>
chip_gen: v6e
topology: v6e:2x2x1
jax: 0.10.0
libtpu: 0.0.40
codegen_flags: <defaults>
</compile_context>

<pallas_src>
import numpy as np

import jax
import jax.numpy as jnp
from jax import lax
from jax.experimental import pallas as pl
from jax.experimental.pallas import tpu as pltpu


def _round_up(x, m):
    return ((x + m - 1) // m) * m


def _log_sigmoid(x):
    # Numerically stable logsigmoid(x) = min(x, 0) - log1p(exp(-|x|))
    return jnp.minimum(x, 0.0) - jnp.log1p(jnp.exp(-jnp.abs(x)))


def _vmem_budget():
    """Per-generation VMEM limit + working budget (v7x: 64 MiB, v5e/v6e: 128 MiB)."""
    try:
        cap = int(pltpu.get_tpu_info().vmem_capacity_bytes)
    except Exception:
        cap = 64 * 1024 * 1024          # conservative: v7x per-TensorCore VMEM
    vmem_limit = min(max(cap - 16 * 1024 * 1024, 32 * 1024 * 1024),
                     112 * 1024 * 1024)
    budget = vmem_limit // 2            # leave room for pipeline buffers / temps
    return budget, vmem_limit


# ----------------------------------------------------------------------------
# Fused path: tables resident in VMEM, in-kernel one-hot gathers on the MXU.
# ----------------------------------------------------------------------------

def _fused_kernel(in_lbl_ref, ctx_lbl_ref, in_tab_ref, out_tab_t_ref, loss_ref):
    # in_lbl_ref   : [TB, 1]   int32  center-word ids
    # ctx_lbl_ref  : [TB, C+N] int32  positive+negative context ids
    # in_tab_ref   : [V, E]    f32    in_embed table (VMEM resident)
    # out_tab_t_ref: [E, V]    f32    out_embed table, pre-transposed
    # loss_ref     : [1, TB]   f32    per-example loss (lane-dense output)
    in_lbl = in_lbl_ref[...]
    ctx_lbl = ctx_lbl_ref[...]
    in_tab = in_tab_ref[...]
    out_tab_t = out_tab_t_ref[...]

    tb = in_lbl.shape[0]
    vocab = in_tab.shape[0]
    c_total = ctx_lbl.shape[1]

    vocab_iota = lax.broadcasted_iota(jnp.int32, (tb, vocab), 1)        # [TB, V]

    # Exact one-hot row selection of the center embeddings on the MXU.
    onehot_in = (vocab_iota == in_lbl).astype(jnp.float32)              # [TB, V]
    center = jnp.dot(onehot_in, in_tab,
                     preferred_element_type=jnp.float32)                # [TB, E]

    # scores[b, v] = center[b] . out_embed[v]   (one MXU matmul per tile)
    scores = jnp.dot(center, out_tab_t,
                     preferred_element_type=jnp.float32)                # [TB, V]

    # counts[b, v] = multiplicity of vocab id v among the C+N context labels.
    counts = jnp.zeros((tb, vocab), jnp.float32)
    for j in range(c_total):                                            # static unroll
        counts = counts + (vocab_iota == ctx_lbl[:, j:j + 1]).astype(jnp.float32)

    # sum_j logsigmoid(scores[b, ctx[b, j]]) == sum_v counts[b, v]*logsigmoid(scores[b, v])
    loss = -jnp.sum(counts * _log_sigmoid(scores), axis=-1)             # [TB]
    loss_ref[...] = loss[None, :]                                       # [1, TB]


def _pick_tile_fused(batch, c_total, vocab, embed, budget):
    v_pad = _round_up(max(vocab, 1), 128)
    e_pad = _round_up(max(embed, 1), 128)
    # Resident (double-buffered) table blocks.
    table_bytes = 2 * 2 * (_round_up(vocab, 8) * e_pad
                           + _round_up(embed, 8) * v_pad) * 4
    avail = max(budget - table_bytes, 4 * 1024 * 1024)
    # Per batch row: two double-buffered int32 label blocks (lane-padded) plus
    # ~6 vocab-wide f32 intermediates (onehot, center, scores, counts, logsig, ...).
    per_row = 2 * 2 * (128 + _round_up(c_total, 128)) * 4 + 6 * v_pad * 4
    tb = (avail // per_row) // 128 * 128
    tb = max(128, min(2048, tb))
    b128 = _round_up(batch, 128)
    tb = min(tb, b128)
    if b128 >= 256:
        # >=2 grid steps so both v7x TensorCores get work on the parallel axis.
        tb = max(128, min(tb, (b128 // 2) // 128 * 128))
    return int(tb)


def skipgram_loss_fused(in_w, out_w, input_labels, ctx_labels):
    """Fused gather + loss. in_w/out_w: [V, E] f32; labels int32 -> loss [B] f32."""
    input_labels = input_labels.astype(jnp.int32)
    ctx_labels = ctx_labels.astype(jnp.int32)
    (B,) = input_labels.shape
    _, C_total = ctx_labels.shape
    V, E = in_w.shape

    budget, vmem_limit = _vmem_budget()
    TB = _pick_tile_fused(B, C_total, V, E, budget)
    B_pad = _round_up(B, TB)
    if B_pad != B:
        # Pad only the small int32 label arrays; index 0 is always valid (no OOB DMA).
        # Padded rows produce a finite loss and are sliced off below.
        input_labels = jnp.pad(input_labels, (0, B_pad - B))
        ctx_labels = jnp.pad(ctx_labels, ((0, B_pad - B), (0, 0)))

    in_lbl2 = input_labels[:, None]           # [B_pad, 1]
    out_w_t = out_w.T                         # [E, V] (tiny, once per call)

    grid = (B_pad // TB,)
    cost = pl.CostEstimate(
        flops=int(4 * B_pad * V * E + 3 * B_pad * C_total * V + 4 * B_pad * V),
        transcendentals=int(2 * B_pad * V),
        bytes_accessed=int(4 * (B_pad * (C_total + 1) + 2 * V * E + B_pad)),
    )

    out = pl.pallas_call(
        _fused_kernel,
        out_shape=jax.ShapeDtypeStruct((1, B_pad), jnp.float32),
        grid_spec=pltpu.PrefetchScalarGridSpec(
            num_scalar_prefetch=0,
            grid=grid,
            in_specs=[
                pl.BlockSpec((TB, 1), lambda i: (i, 0)),
                pl.BlockSpec((TB, C_total), lambda i: (i, 0)),
                pl.BlockSpec((V, E), lambda i: (0, 0)),   # table: loaded once, reused
                pl.BlockSpec((E, V), lambda i: (0, 0)),   # table^T: loaded once, reused
            ],
            out_specs=pl.BlockSpec((1, TB), lambda i: (0, i)),
        ),
        compiler_params=pltpu.CompilerParams(
            dimension_semantics=("parallel",),
            vmem_limit_bytes=int(vmem_limit),
        ),
        cost_estimate=cost,
    )(in_lbl2, ctx_labels, in_w, out_w_t)

    return out[0, :B]


# ----------------------------------------------------------------------------
# Fallback path (large vocab): XLA gather + streaming dot-product kernel.
# ----------------------------------------------------------------------------

def _pregathered_kernel(in_ref, ctx_ref, loss_ref):
    # in_ref  : [TB, 1, E]    center-word embeddings
    # ctx_ref : [TB, C+N, E]  positive+negative context embeddings
    # loss_ref: [1, TB]
    center = in_ref[...]
    ctx = ctx_ref[...]
    dots = jnp.sum(ctx * center, axis=-1)                   # VPU multiply + lane reduce
    loss_ref[...] = (-jnp.sum(_log_sigmoid(dots), axis=-1))[None, :]


def _pick_tile_pregathered(batch, c_total, embed, budget):
    e_pad = _round_up(max(embed, 1), 128)
    # Double-buffered input blocks. The (TB,1,E) center block's size-1 sublane dim
    # pads to 8 sublanes in VMEM -> 8*e_pad bytes/row, not 1*e_pad (perf-review fix).
    per_row = 2 * (_round_up(c_total, 8) * e_pad + 8 * e_pad) * 4
    tb = (budget // per_row) // 128 * 128
    tb = max(128, min(2048, tb))
    b128 = _round_up(batch, 128)
    tb = min(tb, b128)
    if b128 >= 256:
        tb = max(128, min(tb, (b128 // 2) // 128 * 128))
    return int(tb)


def skipgram_loss_pregathered(in_w, out_w, input_labels, ctx_labels):
    """Fallback: gather with XLA, stream embeddings through the kernel."""
    input_labels = input_labels.astype(jnp.int32)
    ctx_labels = ctx_labels.astype(jnp.int32)
    (B,) = input_labels.shape
    _, C_total = ctx_labels.shape
    _, E = in_w.shape

    budget, vmem_limit = _vmem_budget()
    TB = _pick_tile_pregathered(B, C_total, E, budget)
    B_pad = _round_up(B, TB)
    if B_pad != B:
        # Pad the small int32 labels (valid index 0) BEFORE the gather, so the big
        # [B, C+N, E] stream is never copied by jnp.pad.
        input_labels = jnp.pad(input_labels, (0, B_pad - B))
        ctx_labels = jnp.pad(ctx_labels, ((0, B_pad - B), (0, 0)))

    in_emb = jnp.take(in_w, input_labels, axis=0)           # [B_pad, E]
    ctx_emb = jnp.take(out_w, ctx_labels, axis=0)           # [B_pad, C+N, E]
    in_emb3 = in_emb[:, None, :]                            # [B_pad, 1, E]

    grid = (B_pad // TB,)
    cost = pl.CostEstimate(
        flops=int(2 * B_pad * C_total * E + 6 * B_pad * C_total),
        transcendentals=int(2 * B_pad * C_total),
        bytes_accessed=int(4 * (B_pad * (C_total + 1) * E + B_pad)),
    )

    out = pl.pallas_call(
        _pregathered_kernel,
        out_shape=jax.ShapeDtypeStruct((1, B_pad), jnp.float32),
        grid_spec=pltpu.PrefetchScalarGridSpec(
            num_scalar_prefetch=0,
            grid=grid,
            in_specs=[
                pl.BlockSpec((TB, 1, E), lambda i: (i, 0, 0)),
                pl.BlockSpec((TB, C_total, E), lambda i: (i, 0, 0)),
            ],
            out_specs=pl.BlockSpec((1, TB), lambda i: (0, i)),
        ),
        compiler_params=pltpu.CompilerParams(
            dimension_semantics=("parallel",),
            vmem_limit_bytes=int(vmem_limit),
        ),
        cost_estimate=cost,
    )(in_emb3, ctx_emb)

    return out[0, :B]


# ----------------------------------------------------------------------------
# Model wrapper
# ----------------------------------------------------------------------------

class EmbeddingModelPallas:
    """JAX/Pallas port of the PyTorch EmbeddingModel."""

    def __init__(self, vocab_size, embed_size, key):
        self.vocab_size = vocab_size
        self.embed_size = embed_size
        initrange = 0.5 / embed_size
        k_out, k_in = jax.random.split(key)
        # nn.Embedding weight shape: [vocab_size, embed_size], uniform(-initrange, initrange)
        self.out_embed_weight = jax.random.uniform(
            k_out, (vocab_size, embed_size), jnp.float32, -initrange, initrange)
        self.in_embed_weight = jax.random.uniform(
            k_in, (vocab_size, embed_size), jnp.float32, -initrange, initrange)

    def _use_fused_path(self):
        budget, _ = _vmem_budget()
        V, E = self.vocab_size, self.embed_size
        table_vmem = 2 * 2 * (_round_up(V, 8) * _round_up(E, 128)
                              + _round_up(E, 8) * _round_up(V, 128)) * 4
        # Fused one-hot gather pays off when both (padded) tables fit comfortably in
        # VMEM and the vocab-wide per-row work stays comparable to the ctx stream.
        return table_vmem <= budget // 3 and V <= 4096

    def forward(self, input_labels, pos_labels, neg_labels):
        ctx_labels = jnp.concatenate([pos_labels, neg_labels], axis=1)   # [B, C+N]
        if self._use_fused_path():
            return skipgram_loss_fused(self.in_embed_weight, self.out_embed_weight,
                                       input_labels, ctx_labels)
        # TODO(synk): large-vocab path still materializes the gather via XLA; fuse it
        # with scalar-prefetched labels + per-row double-buffered pltpu.make_async_copy.
        return skipgram_loss_pregathered(self.in_embed_weight, self.out_embed_weight,
                                         input_labels, ctx_labels)

    def input_embeddings(self):
        return jax.device_get(self.in_embed_weight)


def reference_loss_np(in_w, out_w, input_labels, pos_labels, neg_labels):
    """float64 numpy reference matching the PyTorch forward exactly."""
    in_w = np.asarray(in_w, np.float64)
    out_w = np.asarray(out_w, np.float64)
    il = np.asarray(input_labels)
    pos_idx = np.asarray(pos_labels)
    neg_idx = np.asarray(neg_labels)
    center = in_w[il]                                  # [B, E]
    pos_emb = out_w[pos_idx]                           # [B, C, E]
    neg_emb = out_w[neg_idx]                           # [B, N, E]
    pos_dot = np.einsum('bce,be->bc', pos_emb, center)
    neg_dot = np.einsum('bne,be->bn', neg_emb, center)

    def logsig(x):
        return np.minimum(x, 0.0) - np.log1p(np.exp(-np.abs(x)))

    return -(logsig(pos_dot).sum(1) + logsig(neg_dot).sum(1))


if __name__ == "__main__":
    vocab_size = 50
    embed_size = 32
    B = 2          # batch
    C = 8          # positive context words per center word
    K = 2          # negatives per positive
    N = C * K      # negative samples per center word

    key = jax.random.PRNGKey(0)
    k_model, k_in, k_pos, k_neg = jax.random.split(key, 4)

    model = EmbeddingModelPallas(vocab_size, embed_size, k_model)

    input_labels = jax.random.randint(k_in, (B,), 0, vocab_size, dtype=jnp.int32)
    pos_labels = jax.random.randint(k_pos, (B, C), 0, vocab_size, dtype=jnp.int32)
    neg_labels = jax.random.randint(k_neg, (B, N), 0, vocab_size, dtype=jnp.int32)

    # Fused-gather path (used by forward() for this small vocab).
    loss_fused = jax.block_until_ready(model.forward(input_labels, pos_labels, neg_labels))

    # Exercise the large-vocab fallback kernel as well.
    ctx_labels = jnp.concatenate([pos_labels, neg_labels], axis=1)
    loss_pregathered = jax.block_until_ready(
        skipgram_loss_pregathered(model.in_embed_weight, model.out_embed_weight,
                                  input_labels, ctx_labels))

    ref = reference_loss_np(model.in_embed_weight, model.out_embed_weight,
                            input_labels, pos_labels, neg_labels)

    assert loss_fused.shape == (B,)
    assert loss_pregathered.shape == (B,)
    assert np.allclose(np.asarray(loss_fused), ref, atol=1e-3, rtol=1e-3), (loss_fused, ref)
    assert np.allclose(np.asarray(loss_pregathered), ref, atol=1e-3, rtol=1e-3), (
        loss_pregathered, ref)

    print("KERNEL_OK")
</pallas_src>

<mosaic_0001>
module attributes {stable_mosaic.version = 11 : i64} {
  func.func @_fused_kernel(%arg0: i32, %arg1: memref<128x1xi32, #tpu.memory_space<vmem>>, %arg2: memref<128x24xi32, #tpu.memory_space<vmem>>, %arg3: memref<50x32xf32, #tpu.memory_space<vmem>>, %arg4: memref<32x50xf32, #tpu.memory_space<vmem>>, %arg5: memref<1x128xf32, #tpu.memory_space<vmem>>) attributes {dimension_semantics = [#tpu.dimension_semantics<parallel>], iteration_bounds = array<i64: 1>, scalar_prefetch = 0 : i64, scratch_operands = 0 : i64, tpu.core_type = #tpu.core_type<tc>, window_params = [{transform_indices = @transform_0, window_bounds = array<i64: 128, 1>}, {transform_indices = @transform_1, window_bounds = array<i64: 128, 24>}, {pipeline_mode = #tpu.pipeline_mode<synchronous>, transform_indices = @transform_2, window_bounds = array<i64: 50, 32>}, {pipeline_mode = #tpu.pipeline_mode<synchronous>, transform_indices = @transform_3, window_bounds = array<i64: 32, 50>}, {transform_indices = @transform_4, window_bounds = array<i64: 1, 128>}]} {
    %c0 = arith.constant 0 : index
    %c0_0 = arith.constant 0 : index
    %0 = vector.load %arg1[%c0, %c0_0] : memref<128x1xi32, #tpu.memory_space<vmem>>, vector<128x1xi32>
    %c0_1 = arith.constant 0 : index
    %c0_2 = arith.constant 0 : index
    %1 = vector.load %arg2[%c0_1, %c0_2] : memref<128x24xi32, #tpu.memory_space<vmem>>, vector<128x24xi32>
    %c0_3 = arith.constant 0 : index
    %c0_4 = arith.constant 0 : index
    %2 = vector.load %arg3[%c0_3, %c0_4] : memref<50x32xf32, #tpu.memory_space<vmem>>, vector<50x32xf32>
    %c0_5 = arith.constant 0 : index
    %c0_6 = arith.constant 0 : index
    %3 = vector.load %arg4[%c0_5, %c0_6] : memref<32x50xf32, #tpu.memory_space<vmem>>, vector<32x50xf32>
    %4 = tpu.iota {dimensions = array<i32: 1>} : vector<128x50xi32>
    %5 = vector.broadcast %0 : vector<128x1xi32> to vector<128x50xi32>
    %6 = arith.cmpi eq, %4, %5 : vector<128x50xi32>
    %7 = arith.extui %6 : vector<128x50xi1> to vector<128x50xi32>
    %8 = arith.sitofp %7 : vector<128x50xi32> to vector<128x50xf32>
    %cst = arith.constant dense<0.000000e+00> : vector<128x32xf32>
    %9 = tpu.matmul %8, %2, %cst {dimension_numbers = #tpu.dot_dimension_numbers<[1], [0], [0], [1], [0, 0, 1, 1], [], []>} : vector<128x50xf32>, vector<50x32xf32>, vector<128x32xf32> -> vector<128x32xf32>
    %cst_7 = arith.constant dense<0.000000e+00> : vector<128x50xf32>
    %10 = tpu.matmul %9, %3, %cst_7 {dimension_numbers = #tpu.dot_dimension_numbers<[1], [0], [0], [1], [0, 0, 1, 1], [], []>} : vector<128x32xf32>, vector<32x50xf32>, vector<128x50xf32> -> vector<128x50xf32>
    %cst_8 = arith.constant 0.000000e+00 : f32
    %11 = vector.broadcast %cst_8 : f32 to vector<128x50xf32>
    %12 = vector.extract_strided_slice %1 {offsets = [0, 0], sizes = [128, 1], strides = [1, 1]} : vector<128x24xi32> to vector<128x1xi32>
    %13 = vector.broadcast %12 : vector<128x1xi32> to vector<128x50xi32>
    %14 = arith.cmpi eq, %4, %13 : vector<128x50xi32>
    %15 = arith.extui %14 : vector<128x50xi1> to vector<128x50xi32>
    %16 = arith.sitofp %15 : vector<128x50xi32> to vector<128x50xf32>
    %17 = arith.addf %11, %16 : vector<128x50xf32>
    %18 = vector.extract_strided_slice %1 {offsets = [0, 1], sizes = [128, 1], strides = [1, 1]} : vector<128x24xi32> to vector<128x1xi32>
    %19 = vector.broadcast %18 : vector<128x1xi32> to vector<128x50xi32>
    %20 = arith.cmpi eq, %4, %19 : vector<128x50xi32>
    %21 = arith.extui %20 : vector<128x50xi1> to vector<128x50xi32>
    %22 = arith.sitofp %21 : vector<128x50xi32> to vector<128x50xf32>
    %23 = arith.addf %17, %22 : vector<128x50xf32>
    %24 = vector.extract_strided_slice %1 {offsets = [0, 2], sizes = [128, 1], strides = [1, 1]} : vector<128x24xi32> to vector<128x1xi32>
    %25 = vector.broadcast %24 : vector<128x1xi32> to vector<128x50xi32>
    %26 = arith.cmpi eq, %4, %25 : vector<128x50xi32>
    %27 = arith.extui %26 : vector<128x50xi1> to vector<128x50xi32>
    %28 = arith.sitofp %27 : vector<128x50xi32> to vector<128x50xf32>
    %29 = arith.addf %23, %28 : vector<128x50xf32>
    %30 = vector.extract_strided_slice %1 {offsets = [0, 3], sizes = [128, 1], strides = [1, 1]} : vector<128x24xi32> to vector<128x1xi32>
    %31 = vector.broadcast %30 : vector<128x1xi32> to vector<128x50xi32>
    %32 = arith.cmpi eq, %4, %31 : vector<128x50xi32>
    %33 = arith.extui %32 : vector<128x50xi1> to vector<128x50xi32>
    %34 = arith.sitofp %33 : vector<128x50xi32> to vector<128x50xf32>
    %35 = arith.addf %29, %34 : vector<128x50xf32>
    %36 = vector.extract_strided_slice %1 {offsets = [0, 4], sizes = [128, 1], strides = [1, 1]} : vector<128x24xi32> to vector<128x1xi32>
    %37 = vector.broadcast %36 : vector<128x1xi32> to vector<128x50xi32>
    %38 = arith.cmpi eq, %4, %37 : vector<128x50xi32>
    %39 = arith.extui %38 : vector<128x50xi1> to vector<128x50xi32>
    %40 = arith.sitofp %39 : vector<128x50xi32> to vector<128x50xf32>
    %41 = arith.addf %35, %40 : vector<128x50xf32>
    %42 = vector.extract_strided_slice %1 {offsets = [0, 5], sizes = [128, 1], strides = [1, 1]} : vector<128x24xi32> to vector<128x1xi32>
    %43 = vector.broadcast %42 : vector<128x1xi32> to vector<128x50xi32>
    %44 = arith.cmpi eq, %4, %43 : vector<128x50xi32>
    %45 = arith.extui %44 : vector<128x50xi1> to vector<128x50xi32>
    %46 = arith.sitofp %45 : vector<128x50xi32> to vector<128x50xf32>
    %47 = arith.addf %41, %46 : vector<128x50xf32>
    %48 = vector.extract_strided_slice %1 {offsets = [0, 6], sizes = [128, 1], strides = [1, 1]} : vector<128x24xi32> to vector<128x1xi32>
    %49 = vector.broadcast %48 : vector<128x1xi32> to vector<128x50xi32>
    %50 = arith.cmpi eq, %4, %49 : vector<128x50xi32>
    %51 = arith.extui %50 : vector<128x50xi1> to vector<128x50xi32>
    %52 = arith.sitofp %51 : vector<128x50xi32> to vector<128x50xf32>
    %53 = arith.addf %47, %52 : vector<128x50xf32>
    %54 = vector.extract_strided_slice %1 {offsets = [0, 7], sizes = [128, 1], strides = [1, 1]} : vector<128x24xi32> to vector<128x1xi32>
    %55 = vector.broadcast %54 : vector<128x1xi32> to vector<128x50xi32>
    %56 = arith.cmpi eq, %4, %55 : vector<128x50xi32>
    %57 = arith.extui %56 : vector<128x50xi1> to vector<128x50xi32>
    %58 = arith.sitofp %57 : vector<128x50xi32> to vector<128x50xf32>
    %59 = arith.addf %53, %58 : vector<128x50xf32>
    %60 = vector.extract_strided_slice %1 {offsets = [0, 8], sizes = [128, 1], strides = [1, 1]} : vector<128x24xi32> to vector<128x1xi32>
    %61 = vector.broadcast %60 : vector<128x1xi32> to vector<128x50xi32>
    %62 = arith.cmpi eq, %4, %61 : vector<128x50xi32>
    %63 = arith.extui %62 : vector<128x50xi1> to vector<128x50xi32>
    %64 = arith.sitofp %63 : vector<128x50xi32> to vector<128x50xf32>
    %65 = arith.addf %59, %64 : vector<128x50xf32>
    %66 = vector.extract_strided_slice %1 {offsets = [0, 9], sizes = [128, 1], strides = [1, 1]} : vector<128x24xi32> to vector<128x1xi32>
    %67 = vector.broadcast %66 : vector<128x1xi32> to vector<128x50xi32>
    %68 = arith.cmpi eq, %4, %67 : vector<128x50xi32>
    %69 = arith.extui %68 : vector<128x50xi1> to vector<128x50xi32>
    %70 = arith.sitofp %69 : vector<128x50xi32> to vector<128x50xf32>
    %71 = arith.addf %65, %70 : vector<128x50xf32>
    %72 = vector.extract_strided_slice %1 {offsets = [0, 10], sizes = [128, 1], strides = [1, 1]} : vector<128x24xi32> to vector<128x1xi32>
    %73 = vector.broadcast %72 : vector<128x1xi32> to vector<128x50xi32>
    %74 = arith.cmpi eq, %4, %73 : vector<128x50xi32>
    %75 = arith.extui %74 : vector<128x50xi1> to vector<128x50xi32>
    %76 = arith.sitofp %75 : vector<128x50xi32> to vector<128x50xf32>
    %77 = arith.addf %71, %76 : vector<128x50xf32>
    %78 = vector.extract_strided_slice %1 {offsets = [0, 11], sizes = [128, 1], strides = [1, 1]} : vector<128x24xi32> to vector<128x1xi32>
    %79 = vector.broadcast %78 : vector<128x1xi32> to vector<128x50xi32>
    %80 = arith.cmpi eq, %4, %79 : vector<128x50xi32>
    %81 = arith.extui %80 : vector<128x50xi1> to vector<128x50xi32>
    %82 = arith.sitofp %81 : vector<128x50xi32> to vector<128x50xf32>
    %83 = arith.addf %77, %82 : vector<128x50xf32>
    %84 = vector.extract_strided_slice %1 {offsets = [0, 12], sizes = [128, 1], strides = [1, 1]} : vector<128x24xi32> to vector<128x1xi32>
    %85 = vector.broadcast %84 : vector<128x1xi32> to vector<128x50xi32>
    %86 = arith.cmpi eq, %4, %85 : vector<128x50xi32>
    %87 = arith.extui %86 : vector<128x50xi1> to vector<128x50xi32>
    %88 = arith.sitofp %87 : vector<128x50xi32> to vector<128x50xf32>
    %89 = arith.addf %83, %88 : vector<128x50xf32>
    %90 = vector.extract_strided_slice %1 {offsets = [0, 13], sizes = [128, 1], strides = [1, 1]} : vector<128x24xi32> to vector<128x1xi32>
    %91 = vector.broadcast %90 : vector<128x1xi32> to vector<128x50xi32>
    %92 = arith.cmpi eq, %4, %91 : vector<128x50xi32>
    %93 = arith.extui %92 : vector<128x50xi1> to vector<128x50xi32>
    %94 = arith.sitofp %93 : vector<128x50xi32> to vector<128x50xf32>
    %95 = arith.addf %89, %94 : vector<128x50xf32>
    %96 = vector.extract_strided_slice %1 {offsets = [0, 14], sizes = [128, 1], strides = [1, 1]} : vector<128x24xi32> to vector<128x1xi32>
    %97 = vector.broadcast %96 : vector<128x1xi32> to vector<128x50xi32>
    %98 = arith.cmpi eq, %4, %97 : vector<128x50xi32>
    %99 = arith.extui %98 : vector<128x50xi1> to vector<128x50xi32>
    %100 = arith.sitofp %99 : vector<128x50xi32> to vector<128x50xf32>
    %101 = arith.addf %95, %100 : vector<128x50xf32>
    %102 = vector.extract_strided_slice %1 {offsets = [0, 15], sizes = [128, 1], strides = [1, 1]} : vector<128x24xi32> to vector<128x1xi32>
    %103 = vector.broadcast %102 : vector<128x1xi32> to vector<128x50xi32>
    %104 = arith.cmpi eq, %4, %103 : vector<128x50xi32>
    %105 = arith.extui %104 : vector<128x50xi1> to vector<128x50xi32>
    %106 = arith.sitofp %105 : vector<128x50xi32> to vector<128x50xf32>
    %107 = arith.addf %101, %106 : vector<128x50xf32>
    %108 = vector.extract_strided_slice %1 {offsets = [0, 16], sizes = [128, 1], strides = [1, 1]} : vector<128x24xi32> to vector<128x1xi32>
    %109 = vector.broadcast %108 : vector<128x1xi32> to vector<128x50xi32>
    %110 = arith.cmpi eq, %4, %109 : vector<128x50xi32>
    %111 = arith.extui %110 : vector<128x50xi1> to vector<128x50xi32>
    %112 = arith.sitofp %111 : vector<128x50xi32> to vector<128x50xf32>
    %113 = arith.addf %107, %112 : vector<128x50xf32>
    %114 = vector.extract_strided_slice %1 {offsets = [0, 17], sizes = [128, 1], strides = [1, 1]} : vector<128x24xi32> to vector<128x1xi32>
    %115 = vector.broadcast %114 : vector<128x1xi32> to vector<128x50xi32>
    %116 = arith.cmpi eq, %4, %115 : vector<128x50xi32>
    %117 = arith.extui %116 : vector<128x50xi1> to vector<128x50xi32>
    %118 = arith.sitofp %117 : vector<128x50xi32> to vector<128x50xf32>
    %119 = arith.addf %113, %118 : vector<128x50xf32>
    %120 = vector.extract_strided_slice %1 {offsets = [0, 18], sizes = [128, 1], strides = [1, 1]} : vector<128x24xi32> to vector<128x1xi32>
    %121 = vector.broadcast %120 : vector<128x1xi32> to vector<128x50xi32>
    %122 = arith.cmpi eq, %4, %121 : vector<128x50xi32>
    %123 = arith.extui %122 : vector<128x50xi1> to vector<128x50xi32>
    %124 = arith.sitofp %123 : vector<128x50xi32> to vector<128x50xf32>
    %125 = arith.addf %119, %124 : vector<128x50xf32>
    %126 = vector.extract_strided_slice %1 {offsets = [0, 19], sizes = [128, 1], strides = [1, 1]} : vector<128x24xi32> to vector<128x1xi32>
    %127 = vector.broadcast %126 : vector<128x1xi32> to vector<128x50xi32>
    %128 = arith.cmpi eq, %4, %127 : vector<128x50xi32>
    %129 = arith.extui %128 : vector<128x50xi1> to vector<128x50xi32>
    %130 = arith.sitofp %129 : vector<128x50xi32> to vector<128x50xf32>
    %131 = arith.addf %125, %130 : vector<128x50xf32>
    %132 = vector.extract_strided_slice %1 {offsets = [0, 20], sizes = [128, 1], strides = [1, 1]} : vector<128x24xi32> to vector<128x1xi32>
    %133 = vector.broadcast %132 : vector<128x1xi32> to vector<128x50xi32>
    %134 = arith.cmpi eq, %4, %133 : vector<128x50xi32>
    %135 = arith.extui %134 : vector<128x50xi1> to vector<128x50xi32>
    %136 = arith.sitofp %135 : vector<128x50xi32> to vector<128x50xf32>
    %137 = arith.addf %131, %136 : vector<128x50xf32>
    %138 = vector.extract_strided_slice %1 {offsets = [0, 21], sizes = [128, 1], strides = [1, 1]} : vector<128x24xi32> to vector<128x1xi32>
    %139 = vector.broadcast %138 : vector<128x1xi32> to vector<128x50xi32>
    %140 = arith.cmpi eq, %4, %139 : vector<128x50xi32>
    %141 = arith.extui %140 : vector<128x50xi1> to vector<128x50xi32>
    %142 = arith.sitofp %141 : vector<128x50xi32> to vector<128x50xf32>
    %143 = arith.addf %137, %142 : vector<128x50xf32>
    %144 = vector.extract_strided_slice %1 {offsets = [0, 22], sizes = [128, 1], strides = [1, 1]} : vector<128x24xi32> to vector<128x1xi32>
    %145 = vector.broadcast %144 : vector<128x1xi32> to vector<128x50xi32>
    %146 = arith.cmpi eq, %4, %145 : vector<128x50xi32>
    %147 = arith.extui %146 : vector<128x50xi1> to vector<128x50xi32>
    %148 = arith.sitofp %147 : vector<128x50xi32> to vector<128x50xf32>
    %149 = arith.addf %143, %148 : vector<128x50xf32>
    %150 = vector.extract_strided_slice %1 {offsets = [0, 23], sizes = [128, 1], strides = [1, 1]} : vector<128x24xi32> to vector<128x1xi32>
    %151 = vector.broadcast %150 : vector<128x1xi32> to vector<128x50xi32>
    %152 = arith.cmpi eq, %4, %151 : vector<128x50xi32>
    %153 = arith.extui %152 : vector<128x50xi1> to vector<128x50xi32>
    %154 = arith.sitofp %153 : vector<128x50xi32> to vector<128x50xf32>
    %155 = arith.addf %149, %154 : vector<128x50xf32>
    %cst_9 = arith.constant 0.000000e+00 : f32
    %156 = vector.broadcast %cst_9 : f32 to vector<128x50xf32>
    %157 = arith.minimumf %10, %156 : vector<128x50xf32>
    %158 = math.absf %10 : vector<128x50xf32>
    %cst_10 = arith.constant 0.000000e+00 : f32
    %159 = vector.broadcast %cst_10 : f32 to vector<128x50xf32>
    %160 = arith.subf %159, %158 : vector<128x50xf32>
    %161 = math.exp %160 : vector<128x50xf32>
    %162 = math.log1p %161 : vector<128x50xf32>
    %163 = arith.subf %157, %162 : vector<128x50xf32>
    %164 = arith.mulf %155, %163 : vector<128x50xf32>
    %cst_11 = arith.constant dense<0.000000e+00> : vector<128xf32>
    %165 = vector.multi_reduction <add>, %164, %cst_11 [1] : vector<128x50xf32> to vector<128xf32>
    %cst_12 = arith.constant 0.000000e+00 : f32
    %166 = vector.broadcast %cst_12 : f32 to vector<128xf32>
    %167 = arith.subf %166, %165 : vector<128xf32>
    %168 = vector.shape_cast %167 : vector<128xf32> to vector<1x128xf32>
    %c0_13 = arith.constant 0 : index
    %c0_14 = arith.constant 0 : index
    %169 = vector.load %arg5[%c0_13, %c0_14] : memref<1x128xf32, #tpu.memory_space<vmem>>, vector<1x128xf32>
    tpu.vector_store %arg5[%c0_13, %c0_14], %168 {strides = array<i32>} : memref<1x128xf32, #tpu.memory_space<vmem>>, vector<1x128xf32>,
    return
  }
  func.func @transform_0(%arg0: i32) -> (i32, i32) {
    %c0_i32 = arith.constant 0 : i32
    %c0_i32_0 = arith.constant 0 : i32
    return %arg0, %c0_i32 : i32, i32
  }
  func.func @transform_1(%arg0: i32) -> (i32, i32) {
    %c0_i32 = arith.constant 0 : i32
    %c0_i32_0 = arith.constant 0 : i32
    return %arg0, %c0_i32 : i32, i32
  }
  func.func @transform_2(%arg0: i32) -> (i32, i32) {
    %c0_i32 = arith.constant 0 : i32
    %c0_i32_0 = arith.constant 0 : i32
    %c0_i32_1 = arith.constant 0 : i32
    return %c0_i32, %c0_i32_0 : i32, i32
  }
  func.func @transform_3(%arg0: i32) -> (i32, i32) {
    %c0_i32 = arith.constant 0 : i32
    %c0_i32_0 = arith.constant 0 : i32
    %c0_i32_1 = arith.constant 0 : i32
    return %c0_i32, %c0_i32_0 : i32, i32
  }
  func.func @transform_4(%arg0: i32) -> (i32, i32) {
    %c0_i32 = arith.constant 0 : i32
    %c0_i32_0 = arith.constant 0 : i32
    return %c0_i32, %arg0 : i32, i32
  }
}

</mosaic_0001>

<bundles_post_ra>
// kernel: tpu_custom_call.1
= control target key start
LH: loop header
LB: loop body
LE: loop exit
PB: predicated region body
PF: predicated region fallthrough
CT: control target
= control target key end

     0   :  { %v4450_v2 = vmov 0   ;;  %vm208_vm0 = vcmask 1041408   ;;  %s8259_s0 = inlined_call_operand.vmem [shape: s32[128,1], index: 0, kind: input, shape index: {}]   ;;  %s8260_s1 = inlined_call_operand.vmem [shape: s32[128,24], index: 1, kind: input, shape index: {}]   ;;  %s8261_s2 = inlined_call_operand.vmem [shape: f32[50,32], index: 2, kind: input, shape index: {}]   ;;  %s8262_s3 = inlined_call_operand.vmem [shape: f32[32,50], index: 3, kind: input, shape index: {}]   ;;  %s8263_s4 = inlined_call_operand.hbm [shape: f32[1,128], index: 4, kind: output, shape index: {}]  }
   0x1   :  { %v20_v0 = vld [vmem:[%s8259_s0 + $0x10] sm:$0xff]  ;;  %v18_v1 = vld [vmem:[%s8259_s0] sm:$0xff]  ;;  %4273 = vset.pattern.permute.xlu1 %v4450_v2  ;;  %4272 = vset.pattern.permute.xlu0 %v4450_v2  ;;  %v21_v3 = vld [vmem:[%s8259_s0 + $0x18] sm:$0xff] }
   0x2   :  { %70 = vperm.xlu1 %4273, %v20_v0   ;;  %64 = vperm.xlu0 %4272, %v18_v1   ;;  %v19_v4 = vld [vmem:[%s8259_s0 + $0x8] sm:$0xff]  ;;  %v22_v6 = vld [vmem:[%s8259_s0 + $0x20] sm:$0xff]  ;;  %v56_v7 = vld [vmem:[%s8261_s2 + $0x30] sm:$0x3] }
   0x3   :  { %v23_v5 = vld [vmem:[%s8259_s0 + $0x28] sm:$0xff]  ;;  %v25_v8 = vld [vmem:[%s8259_s0 + $0x38] sm:$0xff]  ;;  %v24_v9 = vld [vmem:[%s8259_s0 + $0x30] sm:$0xff]  ;;  %4176 = vmatprep.subr.msk.mxu0 %vm208_vm0, %v56_v7 }
   0x4   :  { %v55_v10 = vld [vmem:[%s8261_s2 + $0x28] sm:$0xff]  ;;  %4177 = vmatpush3.msk.msra.mxu0 %vm208_vm0, %v56_v7  ;;  %v54_v11 = vld [vmem:[%s8261_s2 + $0x20] sm:$0xff] }
   0x5   :  { %4178 = vmatprep.subr.mxu0 %v55_v10 }
   0x6   :  { %73 = vperm.xlu1 %4273, %v21_v3   ;;  %67 = vperm.xlu0 %4272, %v19_v4  }
   0xa   :  { %79 = vperm.xlu1 %4273, %v23_v5   ;;  %76 = vperm.xlu0 %4272, %v22_v6  }
   0xb   :  { %9 = vsyncpa [#allocation3], 0  ;;  %v27_v12 = vld [vmem:[%s8259_s0 + $0x48] sm:$0xff]  ;;  %v26_v13 = vld [vmem:[%s8259_s0 + $0x40] sm:$0xff]  ;;  %4179 = vmatpush3.msra.mxu0 %v55_v10  ;;  %v4451_v40 = vmov 1   ;;  %v4452_v41 = vmov 2   ;;  %v8264_v42 = vlaneseq }
   0xc   :  { %4180 = vmatprep.subr.mxu0 %v54_v11  ;;  %v53_v14 = vld [vmem:[%s8261_s2 + $0x18] sm:$0xff]  ;;  %v52_v15 = vld [vmem:[%s8261_s2 + $0x10] sm:$0xff]  ;;  %v51_v18 = vld [vmem:[%s8261_s2 + $0x8] sm:$0xff]  ;;  %vm159_vm2 = vcmask 408576   ;;  %v8265_v46 = vmov 0.0   ;;  %v4454_v48 = vmov 3  }
   0xd   :  { %4181 = vmatpush3.msra.mxu0 %v54_v11  ;;  %v29_v16 = vld [vmem:[%s8259_s0 + $0x58] sm:$0xff]  ;;  %v28_v17 = vld [vmem:[%s8259_s0 + $0x50] sm:$0xff]  ;;  %v31_v19 = vld [vmem:[%s8259_s0 + $0x68] sm:$0xff]  ;;  %v4697_v43 = vand.u32 127, %v8264_v42 }
   0xe   :  { %85 = vperm.xlu1 %4273, %v25_v8   ;;  %82 = vperm.xlu0 %4272, %v24_v9   ;;  %v30_v20 = vld [vmem:[%s8259_s0 + $0x60] sm:$0xff]  ;;  %v33_v22 = vld [vmem:[%s8259_s0 + $0x78] sm:$0xff]  ;;  %v32_v23 = vld [vmem:[%s8259_s0 + $0x70] sm:$0xff] }
   0xf   :  { %4182 = vmatprep.subr.mxu0 %v53_v14  ;;  %v50_v21 = vld [vmem:[%s8261_s2] sm:$0xff]  ;;  %v4573_v24 = vld [vmem:[%s8260_s1 + $0x8] sm:$0xff]  ;;  %v4585_v26 = vld [vmem:[%s8260_s1 + $0x18] sm:$0xff] }
  0x10   :  { %4183 = vmatpush3.msra.mxu0 %v53_v14  ;;  %v4578_v25 = vld [vmem:[%s8260_s1] sm:$0xff]  ;;  %v4590_v27 = vld [vmem:[%s8260_s1 + $0x10] sm:$0xff]  ;;  %v4597_v28 = vld [vmem:[%s8260_s1 + $0x28] sm:$0xff] }
  0x11   :  { %4184 = vmatprep.subr.mxu0 %v52_v15  ;;  %v4602_v29 = vld [vmem:[%s8260_s1 + $0x20] sm:$0xff]  ;;  %v4609_v30 = vld [vmem:[%s8260_s1 + $0x38] sm:$0xff]  ;;  %v4614_v31 = vld [vmem:[%s8260_s1 + $0x30] sm:$0xff] }
  0x12   :  { %91 = vperm.xlu1 %4273, %v27_v12   ;;  %88 = vperm.xlu0 %4272, %v26_v13   ;;  %v4621_v32 = vld [vmem:[%s8260_s1 + $0x48] sm:$0xff]  ;;  %v4626_v33 = vld [vmem:[%s8260_s1 + $0x40] sm:$0xff]  ;;  %v4633_v34 = vld [vmem:[%s8260_s1 + $0x58] sm:$0xff] }
  0x13   :  { %4185 = vmatpush3.msra.mxu0 %v52_v15  ;;  %v4638_v35 = vld [vmem:[%s8260_s1 + $0x50] sm:$0xff]  ;;  %v4645_v36 = vld [vmem:[%s8260_s1 + $0x68] sm:$0xff]  ;;  %v4650_v37 = vld [vmem:[%s8260_s1 + $0x60] sm:$0xff] }
  0x14   :  { %4186 = vmatprep.subr.mxu0 %v51_v18  ;;  %v4657_v38 = vld [vmem:[%s8260_s1 + $0x78] sm:$0xff]  ;;  %v4662_v39 = vld [vmem:[%s8260_s1 + $0x70] sm:$0xff] }
  0x15   :  { %4187 = vmatpush3.msra.mxu0 %v51_v18 }
  0x16   :  { %97 = vperm.xlu1 %4273, %v29_v16   ;;  %94 = vperm.xlu0 %4272, %v28_v17   ;;  %v4455_v17 = vmov 4  }
  0x17   :  { %4188 = vmatprep.subr.mxu0 %v50_v21 }
  0x18   :  { %4189 = vmatpush3.msra.mxu0 %v50_v21 }
  0x1a   :  { %103 = vperm.xlu1 %4273, %v31_v19   ;;  %100 = vperm.xlu0 %4272, %v30_v20  }
  0x1e   :  { %109 = vperm.xlu1 %4273, %v33_v22   ;;  %106 = vperm.xlu0 %4272, %v32_v23  }
  0x22   :  { %555 = vperm.xlu1 %4273, %v4573_v24   ;;  %552 = vperm.xlu0 %4272, %v4578_v25  }
  0x26   :  { %561 = vperm.xlu1 %4273, %v4585_v26   ;;  %558 = vperm.xlu0 %4272, %v4590_v27  }
  0x2a   :  { %567 = vperm.xlu1 %4273, %v4597_v28   ;;  %564 = vperm.xlu0 %4272, %v4602_v29  }
  0x2e   :  { %573 = vperm.xlu1 %4273, %v4609_v30   ;;  %570 = vperm.xlu0 %4272, %v4614_v31  }
  0x32   :  { %579 = vperm.xlu1 %4273, %v4621_v32   ;;  %576 = vperm.xlu0 %4272, %v4626_v33  }
  0x36   :  { %585 = vperm.xlu1 %4273, %v4633_v34   ;;  %582 = vperm.xlu0 %4272, %v4638_v35  }
  0x3a   :  { %591 = vperm.xlu1 %4273, %v4645_v36   ;;  %588 = vperm.xlu0 %4272, %v4650_v37  }
  0x3e   :  { %597 = vperm.xlu1 %4273, %v4657_v38   ;;  %594 = vperm.xlu0 %4272, %v4662_v39  }
  0x42   :  { %4275 = vset.pattern.permute.xlu1 %v4451_v40  ;;  %4274 = vset.pattern.permute.xlu0 %v4451_v40 }
  0x43   :  { %667 = vperm.xlu1 %4275, %v4573_v24   ;;  %664 = vperm.xlu0 %4274, %v4578_v25  }
  0x47   :  { %670 = vperm.xlu1 %4275, %v4590_v27   ;;  %673 = vperm.xlu0 %4274, %v4585_v26  }
  0x4b   :  { %676 = vperm.xlu1 %4275, %v4602_v29   ;;  %679 = vperm.xlu0 %4274, %v4597_v28  }
  0x4f   :  { %682 = vperm.xlu1 %4275, %v4614_v31   ;;  %685 = vperm.xlu0 %4274, %v4609_v30  }
  0x53   :  { %688 = vperm.xlu1 %4275, %v4626_v33   ;;  %691 = vperm.xlu0 %4274, %v4621_v32  }
  0x57   :  { %694 = vperm.xlu1 %4275, %v4638_v35   ;;  %697 = vperm.xlu0 %4274, %v4633_v34  }
  0x5b   :  { %700 = vperm.xlu1 %4275, %v4650_v37   ;;  %703 = vperm.xlu0 %4274, %v4645_v36  }
  0x5f   :  { %706 = vperm.xlu1 %4275, %v4662_v39   ;;  %709 = vperm.xlu0 %4274, %v4657_v38  }
  0x63   :  { %4276 = vset.pattern.permute.xlu1 %v4452_v41  ;;  %4277 = vset.pattern.permute.xlu0 %v4452_v41 }
  0x64   :  { %776 = vperm.xlu1 %4276, %v4578_v25   ;;  %779 = vperm.xlu0 %4277, %v4573_v24  }
  0x68   :  { %782 = vperm.xlu1 %4276, %v4590_v27   ;;  %788 = vperm.xlu0 %4277, %v4602_v29  }
  0x6c   :  { %785 = vperm.xlu1 %4276, %v4585_v26   ;;  %794 = vperm.xlu0 %4277, %v4614_v31  }
  0x70   :  { %791 = vperm.xlu1 %4276, %v4597_v28   ;;  %800 = vperm.xlu0 %4277, %v4626_v33  }
  0x74   :  { %797 = vperm.xlu1 %4276, %v4609_v30   ;;  %806 = vperm.xlu0 %4277, %v4638_v35  }
  0x78   :  { %803 = vperm.xlu1 %4276, %v4621_v32   ;;  %812 = vperm.xlu0 %4277, %v4650_v37  }
  0x7c   :  { %809 = vperm.xlu1 %4276, %v4633_v34   ;;  %818 = vperm.xlu0 %4277, %v4662_v39  }
  0x7d   :  { %v71_v44 = vpop.permute.xlu1 %70  ;;  %v65_v45 = vpop.permute.xlu0 %64 }
  0x7e   :  { %vm111_vm1 = vcmp.eq.s32.totalorder %v4697_v43, %v65_v45  ;;  %vm113_vm3 = vcmp.eq.s32.totalorder %v4697_v43, %v71_v44 }
  0x7f   :  { %v3700_v47 = vsel %vm111_vm1, 1.0, %v8265_v46  ;;  %v3702_v52 = vsel %vm113_vm3, 1.0, %v8265_v46  ;;  %vm357_vm3 = vcmask 261120  }
  0x80   :  { %815 = vperm.xlu1 %4276, %v4645_v36   ;;  %4278 = vset.pattern.permute.xlu0 %v4454_v48 }
  0x81   :  { %v74_v49 = vpop.permute.xlu1 %73  ;;  %888 = vperm.xlu0 %4278, %v4578_v25   ;;  %v68_v50 = vpop.permute.xlu0 %67  ;;  %4190 = vmatprep.mubr.msk.f32.mxu0 %vm159_vm2, %v3700_v47 }
  0x82   :  { %vm112_vm4 = vcmp.eq.s32.totalorder %v4697_v43, %v68_v50  ;;  %vm114_vm5 = vcmp.eq.s32.totalorder %v4697_v43, %v74_v49 }
  0x83   :  { %v3701_v51 = vsel %vm112_vm4, 1.0, %v8265_v46  ;;  %v3703_v55 = vsel %vm114_vm5, 1.0, %v8265_v46 }
  0x84   :  { %821 = vperm.xlu1 %4276, %v4657_v38   ;;  %4191 = vmatmul.mubr.msk.f32.vlgmr.msra.gmra.mxu0 %vm159_vm2, %v3701_v51  ;;  %v4456_v51 = vmov 5  }
  0x85   :  { %v80_v53 = vpop.permute.xlu1 %79  ;;  %897 = vperm.xlu0 %4278, %v4585_v26   ;;  %4193 = vmatprep.mubr.msk.f32.mxu0 %vm159_vm2, %v3702_v52  ;;  %v77_v54 = vpop.permute.xlu0 %76 }
  0x86   :  { %vm115_vm6 = vcmp.eq.s32.totalorder %v4697_v43, %v77_v54  ;;  %vm116_vm7 = vcmp.eq.s32.totalorder %v4697_v43, %v80_v53  ;;  %v60_v53 = vld [vmem:[%s8262_s3 + $0x18] sm:$0xff]  ;;  %v59_v54 = vld [vmem:[%s8262_s3 + $0x10] sm:$0xff] }
  0x87   :  { %v3704_v56 = vsel %vm115_vm6, 1.0, %v8265_v46  ;;  %v3705_v59 = vsel %vm116_vm7, 1.0, %v8265_v46  ;;  %4214 = vmatprep.subr.mxu1 %v60_v53 }
  0x88   :  { %4279 = vset.pattern.permute.xlu1 %v4454_v48  ;;  %4194 = vmatmul.mubr.msk.f32.gmra.mxu0 %vm159_vm2, %v3703_v55 }
  0x89   :  { %891 = vperm.xlu1 %4279, %v4573_v24   ;;  %v86_v57 = vpop.permute.xlu1 %85  ;;  %903 = vperm.xlu0 %4278, %v4597_v28   ;;  %v83_v58 = vpop.permute.xlu0 %82 }
  0x8a   :  { %vm117_vm8 = vcmp.eq.s32.totalorder %v4697_v43, %v83_v58  ;;  %4196 = vmatprep.mubr.msk.f32.mxu0 %vm159_vm2, %v3704_v56  ;;  %vm118_vm9 = vcmp.eq.s32.totalorder %v4697_v43, %v86_v57  ;;  %4215 = vmatpush3.msra.mxu1 %v60_v53  ;;  %v58_v57 = vld [vmem:[%s8262_s3 + $0x8] sm:$0xff]  ;;  %v57_v58 = vld [vmem:[%s8262_s3] sm:$0xff] }
  0x8b   :  { %v3706_v60 = vsel %vm117_vm8, 1.0, %v8265_v46  ;;  %v3707_v63 = vsel %vm118_vm9, 1.0, %v8265_v46  ;;  %4216 = vmatprep.subr.mxu1 %v59_v54 }
  0x8c   :  { %4197 = vmatmul.mubr.msk.f32.gmra.mxu0 %vm159_vm2, %v3705_v59  ;;  %4217 = vmatpush3.msra.mxu1 %v59_v54 }
  0x8d   :  { %894 = vperm.xlu1 %4279, %v4590_v27   ;;  %v92_v61 = vpop.permute.xlu1 %91  ;;  %909 = vperm.xlu0 %4278, %v4609_v30   ;;  %v89_v62 = vpop.permute.xlu0 %88 }
  0x8e   :  { %vm119_vm10 = vcmp.eq.s32.totalorder %v4697_v43, %v89_v62  ;;  %4199 = vmatprep.mubr.msk.f32.mxu0 %vm159_vm2, %v3706_v60  ;;  %vm120_vm11 = vcmp.eq.s32.totalorder %v4697_v43, %v92_v61  ;;  %4218 = vmatprep.subr.mxu1 %v58_v57 }
  0x8f   :  { %v3708_v0 = vsel %vm119_vm10, 1.0, %v8265_v46  ;;  %v3709_v3 = vsel %vm120_vm11, 1.0, %v8265_v46  ;;  %4219 = vmatpush3.msra.mxu1 %v58_v57 }
  0x90   :  { %4200 = vmatmul.mubr.msk.f32.gmra.mxu0 %vm159_vm2, %v3707_v63  ;;  %4220 = vmatprep.subr.mxu1 %v57_v58 }
  0x91   :  { %900 = vperm.xlu1 %4279, %v4602_v29   ;;  %v98_v1 = vpop.permute.xlu1 %97  ;;  %915 = vperm.xlu0 %4278, %v4621_v32   ;;  %v95_v2 = vpop.permute.xlu0 %94 }
  0x92   :  { %vm121_vm12 = vcmp.eq.s32.totalorder %v4697_v43, %v95_v2  ;;  %4202 = vmatprep.mubr.msk.f32.mxu0 %vm159_vm2, %v3708_v0  ;;  %vm122_vm13 = vcmp.eq.s32.totalorder %v4697_v43, %v98_v1  ;;  %4221 = vmatpush3.msra.mxu1 %v57_v58 }
  0x93   :  { %v3710_v4 = vsel %vm121_vm12, 1.0, %v8265_v46  ;;  %v3711_v7 = vsel %vm122_vm13, 1.0, %v8265_v46 }
  0x94   :  { %4203 = vmatmul.mubr.msk.f32.gmra.mxu0 %vm159_vm2, %v3709_v3 }
  0x95   :  { %906 = vperm.xlu1 %4279, %v4614_v31   ;;  %v104_v5 = vpop.permute.xlu1 %103  ;;  %921 = vperm.xlu0 %4278, %v4633_v34   ;;  %v101_v6 = vpop.permute.xlu0 %100 }
  0x96   :  { %vm123_vm14 = vcmp.eq.s32.totalorder %v4697_v43, %v101_v6  ;;  %4205 = vmatprep.mubr.msk.f32.mxu0 %vm159_vm2, %v3710_v4  ;;  %vm124_vm15 = vcmp.eq.s32.totalorder %v4697_v43, %v104_v5 }
  0x97   :  { %v3712_v8 = vsel %vm123_vm14, 1.0, %v8265_v46  ;;  %v3713_v11 = vsel %vm124_vm15, 1.0, %v8265_v46 }
  0x98   :  { %4206 = vmatmul.mubr.msk.f32.gmra.mxu0 %vm159_vm2, %v3711_v7 }
  0x99   :  { %912 = vperm.xlu1 %4279, %v4626_v33   ;;  %v110_v9 = vpop.permute.xlu1 %109  ;;  %927 = vperm.xlu0 %4278, %v4645_v36   ;;  %v107_v10 = vpop.permute.xlu0 %106 }
  0x9a   :  { %vm125_vm0 = vcmp.eq.s32.totalorder %v4697_v43, %v107_v10  ;;  %4208 = vmatprep.mubr.msk.f32.mxu0 %vm159_vm2, %v3712_v8  ;;  %vm126_vm1 = vcmp.eq.s32.totalorder %v4697_v43, %v110_v9  ;;  %v4457_v8 = vmov 6  }
  0x9b   :  { %v3714_v12 = vsel %vm125_vm0, 1.0, %v8265_v46  ;;  %v3715_v15 = vsel %vm126_vm1, 1.0, %v8265_v46 }
  0x9c   :  { %4209 = vmatmul.mubr.msk.f32.gmra.mxu0 %vm159_vm2, %v3713_v11 }
  0x9d   :  { %918 = vperm.xlu1 %4279, %v4638_v35   ;;  %v4759_v13 = vpop.permute.xlu1 %555  ;;  %933 = vperm.xlu0 %4278, %v4657_v38   ;;  %v4762_v14 = vpop.permute.xlu0 %552 }
  0x9e   :  { %4211 = vmatprep.mubr.msk.f32.mxu0 %vm159_vm2, %v3714_v12  ;;  %vm600_vm4 = vcmp.eq.s32.totalorder %v4697_v43, %v4759_v13  ;;  %vm599_vm5 = vcmp.eq.s32.totalorder %v4697_v43, %v4762_v14  ;;  %v8581_v14 = vmov 0.0  }
  0xa0   :  { %4212 = vmatmul.mubr.msk.f32.gmra.mxu0 %vm159_vm2, %v3715_v15 }
  0xa1   :  { %924 = vperm.xlu1 %4279, %v4650_v37   ;;  %v4768_v16 = vpop.permute.xlu1 %561  ;;  %4281 = vset.pattern.permute.xlu0 %v4455_v17  ;;  %v4770_v18 = vpop.permute.xlu0 %558 }
  0xa2   :  { %1003 = vperm.xlu0 %4281, %v4573_v24   ;;  %vm602_vm6 = vcmp.eq.s32.totalorder %v4697_v43, %v4768_v16  ;;  %vm601_vm7 = vcmp.eq.s32.totalorder %v4697_v43, %v4770_v18  ;;  %v3750_v16 = vsel %vm600_vm4, 1.0, %v8581_v14 }
  0xa3   :  { %v3752_v18 = vsel %vm602_vm6, 1.0, %v8581_v14 }
  0xa5   :  { %930 = vperm.xlu1 %4279, %v4662_v39   ;;  %v4774_v19 = vpop.permute.xlu1 %567  ;;  %v4776_v20 = vpop.permute.xlu0 %564 }
  0xa6   :  { %1012 = vperm.xlu0 %4281, %v4602_v29   ;;  %vm604_vm8 = vcmp.eq.s32.totalorder %v4697_v43, %v4774_v19  ;;  %vm603_vm9 = vcmp.eq.s32.totalorder %v4697_v43, %v4776_v20  ;;  %v3751_v19 = vsel %vm601_vm7, 1.0, %v8581_v14 }
  0xa7   :  { %v3754_v20 = vsel %vm604_vm8, 1.0, %v8581_v14 }
  0xa9   :  { %4280 = vset.pattern.permute.xlu1 %v4455_v17  ;;  %v4779_v21 = vpop.permute.xlu1 %573  ;;  %v4781_v22 = vpop.permute.xlu0 %570 }
  0xaa   :  { %1000 = vperm.xlu1 %4280, %v4578_v25   ;;  %1018 = vperm.xlu0 %4281, %v4614_v31   ;;  %vm606_vm10 = vcmp.eq.s32.totalorder %v4697_v43, %v4779_v21  ;;  %vm605_vm11 = vcmp.eq.s32.totalorder %v4697_v43, %v4781_v22  ;;  %v3753_v21 = vsel %vm603_vm9, 1.0, %v8581_v14 }
  0xad   :  { %v4785_v23 = vpop.permute.xlu1 %579  ;;  %v4787_v40 = vpop.permute.xlu0 %576 }
  0xae   :  { %1006 = vperm.xlu1 %4280, %v4590_v27   ;;  %1024 = vperm.xlu0 %4281, %v4626_v33   ;;  %vm608_vm12 = vcmp.eq.s32.totalorder %v4697_v43, %v4785_v23  ;;  %vm607_vm13 = vcmp.eq.s32.totalorder %v4697_v43, %v4787_v40 }
  0xaf   :  { %v5620_v23 = vsel %vm608_vm12, 1.0, %v8581_v14  ;;  %v3757_v40 = vsel %vm607_vm13, 1.0, %v8581_v14 }
  0xb1   :  { %v4791_v41 = vpop.permute.xlu1 %585  ;;  %v4793_v44 = vpop.permute.xlu0 %582 }
  0xb2   :  { %1009 = vperm.xlu1 %4280, %v4585_v26   ;;  %1030 = vperm.xlu0 %4281, %v4638_v35   ;;  %vm610_vm14 = vcmp.eq.s32.totalorder %v4697_v43, %v4791_v41  ;;  %vm609_vm15 = vcmp.eq.s32.totalorder %v4697_v43, %v4793_v44 }
  0xb3   :  { %v3760_v44 = vsel %vm610_vm14, 1.0, %v8581_v14 }
  0xb5   :  { %v4797_v45 = vpop.permute.xlu1 %591  ;;  %v4799_v47 = vpop.permute.xlu0 %588 }
  0xb6   :  { %1015 = vperm.xlu1 %4280, %v4597_v28   ;;  %1036 = vperm.xlu0 %4281, %v4650_v37  }
  0xb9   :  { %v4803_v48 = vpop.permute.xlu1 %597  ;;  %v4805_v49 = vpop.permute.xlu0 %594 }
  0xba   :  { %1021 = vperm.xlu1 %4280, %v4609_v30   ;;  %1042 = vperm.xlu0 %4281, %v4662_v39   ;;  %vm614_vm6 = vcmp.eq.s32.totalorder %v4697_v43, %v4803_v48  ;;  %vm613_vm7 = vcmp.eq.s32.totalorder %v4697_v43, %v4805_v49 }
  0xbb   :  { %v5653_v49 = vsel %vm614_vm6, 1.0, %v8581_v14 }
  0xbe   :  { %1027 = vperm.xlu1 %4280, %v4621_v32   ;;  %v4810_v50 = vpop.permute.xlu1 %667  ;;  %4282 = vset.pattern.permute.xlu0 %v4456_v51  ;;  %v4812_v52 = vpop.permute.xlu0 %664 }
  0xbf   :  { %1112 = vperm.xlu0 %4282, %v4578_v25   ;;  %vm712_vm0 = vcmp.eq.s32.totalorder %v4697_v43, %v4810_v50  ;;  %vm711_vm1 = vcmp.eq.s32.totalorder %v4697_v43, %v4812_v52 }
  0xc0   :  { %v3766_v50 = vsel %vm712_vm0, 1.0, %v8581_v14  ;;  %v3765_v52 = vsel %vm711_vm1, 1.0, %v8581_v14 }
  0xc2   :  { %1033 = vperm.xlu1 %4280, %v4633_v34   ;;  %v4822_v55 = vpop.permute.xlu1 %670  ;;  %v4824_v56 = vpop.permute.xlu0 %673 }
  0xc3   :  { %1121 = vperm.xlu0 %4282, %v4585_v26   ;;  %vm713_vm4 = vcmp.eq.s32.totalorder %v4697_v43, %v4822_v55  ;;  %vm714_vm8 = vcmp.eq.s32.totalorder %v4697_v43, %v4824_v56  ;;  %v3763_v56 = vsel %vm613_vm7, 1.0, %v8581_v14 }
  0xc6   :  { %1039 = vperm.xlu1 %4280, %v4645_v36   ;;  %v4834_v59 = vpop.permute.xlu1 %676  ;;  %v4836_v60 = vpop.permute.xlu0 %679 }
  0xc7   :  { %1127 = vperm.xlu0 %4282, %v4597_v28   ;;  %vm715_vm9 = vcmp.eq.s32.totalorder %v4697_v43, %v4834_v59  ;;  %v5661_v59 = vadd.f32 %v3766_v50, %v3750_v16 }
  0xca   :  { %1045 = vperm.xlu1 %4280, %v4657_v38   ;;  %v4840_v61 = vpop.permute.xlu1 %682  ;;  %v4842_v62 = vpop.permute.xlu0 %685 }
  0xcb   :  { %1133 = vperm.xlu0 %4282, %v4609_v30   ;;  %vm718_vm12 = vcmp.eq.s32.totalorder %v4697_v43, %v4842_v62 }
  0xce   :  { %4283 = vset.pattern.permute.xlu1 %v4456_v51  ;;  %v4845_v63 = vpop.permute.xlu1 %688  ;;  %v4847_v0 = vpop.permute.xlu0 %691 }
  0xcf   :  { %1115 = vperm.xlu1 %4283, %v4573_v24   ;;  %1139 = vperm.xlu0 %4282, %v4621_v32   ;;  %vm719_vm13 = vcmp.eq.s32.totalorder %v4697_v43, %v4845_v63  ;;  %vm720_vm14 = vcmp.eq.s32.totalorder %v4697_v43, %v4847_v0 }
  0xd2   :  { %v4851_v1 = vpop.permute.xlu1 %694  ;;  %v4853_v2 = vpop.permute.xlu0 %697 }
  0xd3   :  { %1118 = vperm.xlu1 %4283, %v4590_v27   ;;  %1145 = vperm.xlu0 %4282, %v4633_v34   ;;  %vm722_vm0 = vcmp.eq.s32.totalorder %v4697_v43, %v4853_v2  ;;  %v3773_v2 = vsel %vm719_vm13, 1.0, %v8581_v14 }
  0xd4   :  { %v3776_v50 = vsel %vm722_vm0, 1.0, %v8581_v14 }
  0xd6   :  { %v4857_v3 = vpop.permute.xlu1 %700  ;;  %v4859_v4 = vpop.permute.xlu0 %703 }
  0xd7   :  { %1124 = vperm.xlu1 %4283, %v4602_v29   ;;  %1151 = vperm.xlu0 %4282, %v4645_v36   ;;  %vm723_vm1 = vcmp.eq.s32.totalorder %v4697_v43, %v4857_v3 }
  0xda   :  { %v4863_v5 = vpop.permute.xlu1 %706  ;;  %v4865_v6 = vpop.permute.xlu0 %709 }
  0xdb   :  { %1130 = vperm.xlu1 %4283, %v4614_v31   ;;  %1157 = vperm.xlu0 %4282, %v4657_v38  }
  0xdf   :  { %1136 = vperm.xlu1 %4283, %v4626_v33   ;;  %v4870_v7 = vpop.permute.xlu1 %776  ;;  %4285 = vset.pattern.permute.xlu0 %v4457_v8  ;;  %v4872_v9 = vpop.permute.xlu0 %779 }
  0xe0   :  { %1227 = vperm.xlu0 %4285, %v4573_v24   ;;  %vm823_vm6 = vcmp.eq.s32.totalorder %v4697_v43, %v4870_v7  ;;  %vm824_vm7 = vcmp.eq.s32.totalorder %v4697_v43, %v4872_v9 }
  0xe3   :  { %1142 = vperm.xlu1 %4283, %v4638_v35   ;;  %v4876_v10 = vpop.permute.xlu1 %782  ;;  %v4878_v11 = vpop.permute.xlu0 %788 }
  0xe4   :  { %1236 = vperm.xlu0 %4285, %v4602_v29  }
  0xe7   :  { %1148 = vperm.xlu1 %4283, %v4650_v37   ;;  %v4882_v12 = vpop.permute.xlu1 %785  ;;  %v4884_v15 = vpop.permute.xlu0 %794 }
  0xe8   :  { %1242 = vperm.xlu0 %4285, %v4614_v31  }
  0xeb   :  { %1154 = vperm.xlu1 %4283, %v4662_v39   ;;  %v4888_v17 = vpop.permute.xlu1 %791  ;;  %v4890_v51 = vpop.permute.xlu0 %800 }
  0xec   :  { %8387 = vst [vmem:[#allocation5_spill] sm:$0xff] %v4888_v17  ;;  %8388 = vst [vmem:[#allocation6_spill] sm:$0xff] %v4890_v51  ;;  %1248 = vperm.xlu0 %4285, %v4626_v33  }
  0xef   :  { %4284 = vset.pattern.permute.xlu1 %v4457_v8  ;;  %v4893_v53 = vpop.permute.xlu1 %797  ;;  %v4895_v54 = vpop.permute.xlu0 %806 }
  0xf0   :  { %8389 = vst [vmem:[#allocation7_spill] sm:$0xff] %v4893_v53  ;;  %8390 = vst [vmem:[#allocation8_spill] sm:$0xff] %v4895_v54  ;;  %1224 = vperm.xlu1 %4284, %v4578_v25   ;;  %1254 = vperm.xlu0 %4285, %v4638_v35   ;;  %v4458_v54 = vmov 7  }
  0xf3   :  { %v4899_v57 = vpop.permute.xlu1 %803  ;;  %v4901_v58 = vpop.permute.xlu0 %812 }
  0xf4   :  { %8391 = vst [vmem:[#allocation9_spill] sm:$0xff] %v4899_v57  ;;  %8392 = vst [vmem:[#allocation10_spill] sm:$0xff] %v4901_v58  ;;  %1230 = vperm.xlu1 %4284, %v4590_v27   ;;  %1260 = vperm.xlu0 %4285, %v4650_v37  }
  0xf7   :  { %v4905_v42 = vpop.permute.xlu1 %809  ;;  %v4907_v46 = vpop.permute.xlu0 %818 }
  0xf8   :  { %8393 = vst [vmem:[#allocation11_spill] sm:$0xff] %v4905_v42  ;;  %8394 = vst [vmem:[#allocation12_spill] sm:$0xff] %v4907_v46  ;;  %1233 = vperm.xlu1 %4284, %v4585_v26   ;;  %1266 = vperm.xlu0 %4285, %v4662_v39  }
  0xfb   :  { %v4911_v8 = vpop.permute.xlu1 %815 }
  0xfc   :  { %8395 = vst [vmem:[#allocation13_spill] sm:$0xff] %v4911_v8  ;;  %1239 = vperm.xlu1 %4284, %v4597_v28   ;;  %4286 = vset.pattern.permute.xlu0 %v4458_v54  ;;  %v4914_v57 = vpop.permute.xlu0 %888 }
  0xfd   :  { %8396 = vst [vmem:[#allocation14_spill] sm:$0xff] %v4914_v57  ;;  %1336 = vperm.xlu0 %4286, %v4578_v25  }
  0xff   :  { %v4917_v58 = vpop.permute.xlu1 %821 }
 0x100   :  { %8397 = vst [vmem:[#allocation15_spill] sm:$0xff] %v4917_v58  ;;  %1245 = vperm.xlu1 %4284, %v4609_v30   ;;  %v4920_v42 = vpop.permute.xlu0 %897 }
 0x101   :  { %8398 = vst [vmem:[#allocation16_spill] sm:$0xff] %v4920_v42  ;;  %1345 = vperm.xlu0 %4286, %v4585_v26  }
 0x104   :  { %1251 = vperm.xlu1 %4284, %v4621_v32   ;;  %v4924_v46 = vpop.permute.xlu1 %891  ;;  %v4926_v8 = vpop.permute.xlu0 %903 }
 0x105   :  { %8399 = vst [vmem:[#allocation17_spill] sm:$0xff] %v4924_v46  ;;  %8400 = vst [vmem:[#allocation18_spill] sm:$0xff] %v4926_v8  ;;  %1351 = vperm.xlu0 %4286, %v4597_v28  }
 0x108   :  { %1257 = vperm.xlu1 %4284, %v4633_v34   ;;  %v4930_v57 = vpop.permute.xlu1 %894  ;;  %v4932_v53 = vpop.permute.xlu0 %909 }
 0x109   :  { %8401 = vst [vmem:[#allocation19_spill] sm:$0xff] %v4930_v57  ;;  %8402 = vst [vmem:[#allocation20_spill] sm:$0xff] %v4932_v53  ;;  %1357 = vperm.xlu0 %4286, %v4609_v30  }
 0x10c   :  { %1263 = vperm.xlu1 %4284, %v4645_v36   ;;  %v4936_v42 = vpop.permute.xlu1 %900  ;;  %v4938_v58 = vpop.permute.xlu0 %915 }
 0x10d   :  { %8403 = vst [vmem:[#allocation21_spill] sm:$0xff] %v4936_v42  ;;  %8404 = vst [vmem:[#allocation22_spill] sm:$0xff] %v4938_v58  ;;  %1363 = vperm.xlu0 %4286, %v4621_v32  }
 0x110   :  { %1269 = vperm.xlu1 %4284, %v4657_v38   ;;  %v4942_v8 = vpop.permute.xlu1 %906  ;;  %v4944_v46 = vpop.permute.xlu0 %921 }
 0x111   :  { %8405 = vst [vmem:[#allocation23_spill] sm:$0xff] %v4942_v8  ;;  %8406 = vst [vmem:[#allocation24_spill] sm:$0xff] %v4944_v46  ;;  %1369 = vperm.xlu0 %4286, %v4633_v34  }
 0x114   :  { %4287 = vset.pattern.permute.xlu1 %v4458_v54  ;;  %v4947_v53 = vpop.permute.xlu1 %912  ;;  %v4949_v57 = vpop.permute.xlu0 %927  ;;  %v4459_v54 = vmov 8  }
 0x115   :  { %8407 = vst [vmem:[#allocation25_spill] sm:$0xff] %v4947_v53  ;;  %8408 = vst [vmem:[#allocation26_spill] sm:$0xff] %v4949_v57  ;;  %1339 = vperm.xlu1 %4287, %v4573_v24   ;;  %1375 = vperm.xlu0 %4286, %v4645_v36  }
 0x118   :  { %v4953_v58 = vpop.permute.xlu1 %918  ;;  %v4955_v42 = vpop.permute.xlu0 %933 }
 0x119   :  { %8409 = vst [vmem:[#allocation27_spill] sm:$0xff] %v4953_v58  ;;  %8410 = vst [vmem:[#allocation28_spill] sm:$0xff] %v4955_v42  ;;  %1342 = vperm.xlu1 %4287, %v4590_v27   ;;  %1381 = vperm.xlu0 %4286, %v4657_v38  }
 0x11c   :  { %v4959_v46 = vpop.permute.xlu1 %924 }
 0x11d   :  { %8411 = vst [vmem:[#allocation29_spill] sm:$0xff] %v4959_v46  ;;  %1348 = vperm.xlu1 %4287, %v4602_v29   ;;  %4289 = vset.pattern.permute.xlu0 %v4459_v54  ;;  %v4962_v53 = vpop.permute.xlu0 %1003 }
 0x11e   :  { %8412 = vst [vmem:[#allocation30_spill] sm:$0xff] %v4962_v53  ;;  %1451 = vperm.xlu0 %4289, %v4573_v24  }
 0x120   :  { %v4965_v57 = vpop.permute.xlu1 %930 }
 0x121   :  { %8413 = vst [vmem:[#allocation31_spill] sm:$0xff] %v4965_v57  ;;  %1354 = vperm.xlu1 %4287, %v4614_v31   ;;  %v4968_v58 = vpop.permute.xlu0 %1012 }
 0x122   :  { %8414 = vst [vmem:[#allocation32_spill] sm:$0xff] %v4968_v58  ;;  %1460 = vperm.xlu0 %4289, %v4602_v29  }
 0x125   :  { %1360 = vperm.xlu1 %4287, %v4626_v33   ;;  %v4972_v42 = vpop.permute.xlu1 %1000  ;;  %v4974_v46 = vpop.permute.xlu0 %1018 }
 0x126   :  { %8415 = vst [vmem:[#allocation33_spill] sm:$0xff] %v4972_v42  ;;  %8416 = vst [vmem:[#allocation34_spill] sm:$0xff] %v4974_v46  ;;  %1466 = vperm.xlu0 %4289, %v4614_v31  }
 0x129   :  { %1366 = vperm.xlu1 %4287, %v4638_v35   ;;  %v4978_v53 = vpop.permute.xlu1 %1006  ;;  %v4980_v8 = vpop.permute.xlu0 %1024 }
 0x12a   :  { %8417 = vst [vmem:[#allocation35_spill] sm:$0xff] %v4978_v53  ;;  %8418 = vst [vmem:[#allocation36_spill] sm:$0xff] %v4980_v8  ;;  %1472 = vperm.xlu0 %4289, %v4626_v33  }
 0x12d   :  { %1372 = vperm.xlu1 %4287, %v4650_v37   ;;  %v4984_v58 = vpop.permute.xlu1 %1009  ;;  %v4986_v57 = vpop.permute.xlu0 %1030 }
 0x12e   :  { %8419 = vst [vmem:[#allocation37_spill] sm:$0xff] %v4984_v58  ;;  %8420 = vst [vmem:[#allocation38_spill] sm:$0xff] %v4986_v57  ;;  %1478 = vperm.xlu0 %4289, %v4638_v35   ;;  %v4460_v58 = vmov 9  }
 0x131   :  { %1378 = vperm.xlu1 %4287, %v4662_v39   ;;  %v4990_v46 = vpop.permute.xlu1 %1015  ;;  %v4992_v42 = vpop.permute.xlu0 %1036 }
 0x132   :  { %8421 = vst [vmem:[#allocation39_spill] sm:$0xff] %v4990_v46  ;;  %8422 = vst [vmem:[#allocation40_spill] sm:$0xff] %v4992_v42  ;;  %1484 = vperm.xlu0 %4289, %v4650_v37  }
 0x135   :  { %4288 = vset.pattern.permute.xlu1 %v4459_v54  ;;  %v4995_v8 = vpop.permute.xlu1 %1021  ;;  %v4997_v53 = vpop.permute.xlu0 %1042 }
 0x136   :  { %8423 = vst [vmem:[#allocation41_spill] sm:$0xff] %v4995_v8  ;;  %8424 = vst [vmem:[#allocation42_spill] sm:$0xff] %v4997_v53  ;;  %1448 = vperm.xlu1 %4288, %v4578_v25   ;;  %1490 = vperm.xlu0 %4289, %v4662_v39  }
 0x139   :  { %v5001_v57 = vpop.permute.xlu1 %1027 }
 0x13a   :  { %8425 = vst [vmem:[#allocation43_spill] sm:$0xff] %v5001_v57  ;;  %1454 = vperm.xlu1 %4288, %v4590_v27   ;;  %4290 = vset.pattern.permute.xlu0 %v4460_v58  ;;  %v5004_v46 = vpop.permute.xlu0 %1112 }
 0x13b   :  { %8426 = vst [vmem:[#allocation44_spill] sm:$0xff] %v5004_v46  ;;  %1560 = vperm.xlu0 %4290, %v4578_v25  }
 0x13d   :  { %v5007_v42 = vpop.permute.xlu1 %1033 }
 0x13e   :  { %8427 = vst [vmem:[#allocation45_spill] sm:$0xff] %v5007_v42  ;;  %1457 = vperm.xlu1 %4288, %v4585_v26   ;;  %v5010_v54 = vpop.permute.xlu0 %1121 }
 0x13f   :  { %8428 = vst [vmem:[#allocation46_spill] sm:$0xff] %v5010_v54  ;;  %1569 = vperm.xlu0 %4290, %v4585_v26  }
 0x141   :  { %v5013_v53 = vpop.permute.xlu1 %1039 }
 0x142   :  { %8429 = vst [vmem:[#allocation47_spill] sm:$0xff] %v5013_v53  ;;  %1463 = vperm.xlu1 %4288, %v4597_v28   ;;  %v5016_v57 = vpop.permute.xlu0 %1127 }
 0x143   :  { %8430 = vst [vmem:[#allocation48_spill] sm:$0xff] %v5016_v57  ;;  %1575 = vperm.xlu0 %4290, %v4597_v28  }
 0x144   :  { %v4192_v8 = vpop.f32.mrf.mxu0 }
 0x145   :  { %v5019_v46 = vpop.permute.xlu1 %1045 }
 0x146   :  { %8431 = vst [vmem:[#allocation49_spill] sm:$0xff] %v5019_v46  ;;  %1469 = vperm.xlu1 %4288, %v4609_v30   ;;  %v278_v42 = vpop.f32.mrf.mxu0  ;;  %v5022_v51 = vpop.permute.xlu0 %1133 }
 0x147   :  { %8432 = vst [vmem:[#allocation50_spill] sm:$0xff] %v5022_v51  ;;  %4222 = vmatprep.mubr.msk.f32.mxu1 %vm357_vm3, %v278_v42  ;;  %1581 = vperm.xlu0 %4290, %v4609_v30  }
 0x148   :  { %v4195_v53 = vpop.f32.mrf.mxu0  ;;  %4223 = vmatmul.mubr.msk.f32.vlgmr.msra.gmra.mxu1 %vm357_vm3, %v4192_v8 }
 0x14a   :  { %1475 = vperm.xlu1 %4288, %v4621_v32   ;;  %v5028_v57 = vpop.permute.xlu1 %1115  ;;  %v288_v54 = vpop.f32.mrf.mxu0 }
 0x14b   :  { %8433 = vst [vmem:[#allocation51_spill] sm:$0xff] %v5028_v57  ;;  %v5030_v17 = vpop.permute.xlu0 %1139  ;;  %4225 = vmatprep.mubr.msk.f32.mxu1 %vm357_vm3, %v288_v54  ;;  %1587 = vperm.xlu0 %4290, %v4621_v32  }
 0x14c   :  { %8434 = vst [vmem:[#allocation52_spill] sm:$0xff] %v5030_v17  ;;  %v4198_v46 = vpop.f32.mrf.mxu0  ;;  %4226 = vmatmul.mubr.msk.f32.gmra.mxu1 %vm357_vm3, %v4195_v53 }
 0x14e   :  { %1481 = vperm.xlu1 %4288, %v4633_v34   ;;  %v5036_v42 = vpop.permute.xlu1 %1118  ;;  %v298_v51 = vpop.f32.mrf.mxu0 }
 0x14f   :  { %8435 = vst [vmem:[#allocation53_spill] sm:$0xff] %v5036_v42  ;;  %v5038_v8 = vpop.permute.xlu0 %1145  ;;  %4228 = vmatprep.mubr.msk.f32.mxu1 %vm357_vm3, %v298_v51  ;;  %1593 = vperm.xlu0 %4290, %v4633_v34  }
 0x150   :  { %8436 = vst [vmem:[#allocation54_spill] sm:$0xff] %v5038_v8  ;;  %v4201_v57 = vpop.f32.mrf.mxu0  ;;  %4229 = vmatmul.mubr.msk.f32.gmra.mxu1 %vm357_vm3, %v4198_v46 }
 0x152   :  { %1487 = vperm.xlu1 %4288, %v4645_v36   ;;  %v5044_v54 = vpop.permute.xlu1 %1124  ;;  %v308_v17 = vpop.f32.mrf.mxu0 }
 0x153   :  { %8437 = vst [vmem:[#allocation55_spill] sm:$0xff] %v5044_v54  ;;  %v5046_v53 = vpop.permute.xlu0 %1151  ;;  %4231 = vmatprep.mubr.msk.f32.mxu1 %vm357_vm3, %v308_v17  ;;  %1599 = vperm.xlu0 %4290, %v4645_v36  }
 0x154   :  { %8438 = vst [vmem:[#allocation56_spill] sm:$0xff] %v5046_v53  ;;  %v4204_v42 = vpop.f32.mrf.mxu0  ;;  %4232 = vmatmul.mubr.msk.f32.gmra.mxu1 %vm357_vm3, %v4201_v57 }
 0x156   :  { %1493 = vperm.xlu1 %4288, %v4657_v38   ;;  %v5052_v51 = vpop.permute.xlu1 %1130  ;;  %v318_v8 = vpop.f32.mrf.mxu0 }
 0x157   :  { %8439 = vst [vmem:[#allocation57_spill] sm:$0xff] %v5052_v51  ;;  %v5054_v46 = vpop.permute.xlu0 %1157  ;;  %4234 = vmatprep.mubr.msk.f32.mxu1 %vm357_vm3, %v318_v8  ;;  %1605 = vperm.xlu0 %4290, %v4657_v38  }
 0x158   :  { %8440 = vst [vmem:[#allocation58_spill] sm:$0xff] %v5054_v46  ;;  %v4207_v54 = vpop.f32.mrf.mxu0  ;;  %4235 = vmatmul.mubr.msk.f32.gmra.mxu1 %vm357_vm3, %v4204_v42  ;;  %v4461_v46 = vmov 10  }
 0x15a   :  { %4291 = vset.pattern.permute.xlu1 %v4460_v58  ;;  %v5059_v17 = vpop.permute.xlu1 %1136  ;;  %v328_v53 = vpop.f32.mrf.mxu0 }
 0x15b   :  { %8441 = vst [vmem:[#allocation59_spill] sm:$0xff] %v5059_v17  ;;  %1563 = vperm.xlu1 %4291, %v4573_v24   ;;  %4237 = vmatprep.mubr.msk.f32.mxu1 %vm357_vm3, %v328_v53  ;;  %v5063_v57 = vpop.permute.xlu0 %1227 }
 0x15c   :  { %v4210_v51 = vpop.f32.mrf.mxu0  ;;  %4238 = vmatmul.mubr.msk.f32.gmra.mxu1 %vm357_vm3, %v4207_v54  ;;  %4293 = vset.pattern.permute.xlu0 %v4461_v46 }
 0x15d   :  { %1675 = vperm.xlu0 %4293, %v4573_v24  }
 0x15e   :  { %v5067_v8 = vpop.permute.xlu1 %1142  ;;  %v338_v42 = vpop.f32.mrf.mxu0 }
 0x15f   :  { %8442 = vst [vmem:[#allocation60_spill] sm:$0xff] %v5067_v8  ;;  %1566 = vperm.xlu1 %4291, %v4590_v27   ;;  %4240 = vmatprep.mubr.msk.f32.mxu1 %vm357_vm3, %v338_v42  ;;  %v5071_v58 = vpop.permute.xlu0 %1236 }
 0x160   :  { %8443 = vst [vmem:[#allocation61_spill] sm:$0xff] %v5071_v58  ;;  %v4213_v17 = vpop.f32.mrf.mxu0  ;;  %4241 = vmatmul.mubr.msk.f32.gmra.mxu1 %vm357_vm3, %v4210_v51 }
 0x161   :  { %1684 = vperm.xlu0 %4293, %v4602_v29  }
 0x162   :  { %v5075_v53 = vpop.permute.xlu1 %1148  ;;  %v348_v54 = vpop.f32.mrf.mxu0 }
 0x163   :  { %8444 = vst [vmem:[#allocation62_spill] sm:$0xff] %v5075_v53  ;;  %1572 = vperm.xlu1 %4291, %v4602_v29   ;;  %4243 = vmatprep.mubr.msk.f32.mxu1 %vm357_vm3, %v348_v54  ;;  %v5079_v8 = vpop.permute.xlu0 %1242 }
 0x164   :  { %8445 = vst [vmem:[#allocation63_spill] sm:$0xff] %v5079_v8  ;;  %4244 = vmatmul.mubr.msk.f32.gmra.mxu1 %vm357_vm3, %v4213_v17  ;;  %v4462_v8 = vmov 11   ;;  %vm612_vm3 = vcmp.eq.s32.totalorder %v4697_v43, %v4797_v45  ;;  %v3759_v45 = vsel %vm609_vm15, 1.0, %v8581_v14  ;;  %vm721_vm15 = vcmp.eq.s32.totalorder %v4697_v43, %v4851_v1 }
 0x165   :  { %1690 = vperm.xlu0 %4293, %v4614_v31   ;;  %v3775_v3 = vsel %vm721_vm15, 1.0, %v8581_v14 }
 0x166   :  { %v5083_v42 = vpop.permute.xlu1 %1154 }
 0x167   :  { %8446 = vst [vmem:[#allocation64_spill] sm:$0xff] %v5083_v42  ;;  %1578 = vperm.xlu1 %4291, %v4614_v31   ;;  %v5086_v51 = vpop.permute.xlu0 %1248 }
 0x168   :  { %8447 = vst [vmem:[#allocation65_spill] sm:$0xff] %v5086_v51 }
 0x169   :  { %1696 = vperm.xlu0 %4293, %v4626_v33  }
 0x16b   :  { %1584 = vperm.xlu1 %4291, %v4626_v33   ;;  %v5090_v53 = vpop.permute.xlu1 %1224  ;;  %v5092_v58 = vpop.permute.xlu0 %1254 }
 0x16c   :  { %8448 = vst [vmem:[#allocation66_spill] sm:$0xff] %v5090_v53  ;;  %8449 = vst [vmem:[#allocation67_spill] sm:$0xff] %v5092_v58 }
 0x16d   :  { %1702 = vperm.xlu0 %4293, %v4638_v35  }
 0x16f   :  { %1590 = vperm.xlu1 %4291, %v4638_v35   ;;  %v5096_v17 = vpop.permute.xlu1 %1230  ;;  %v5098_v54 = vpop.permute.xlu0 %1260 }
 0x170   :  { %8450 = vst [vmem:[#allocation68_spill] sm:$0xff] %v5096_v17  ;;  %8451 = vst [vmem:[#allocation69_spill] sm:$0xff] %v5098_v54  ;;  %v4463_v17 = vmov 12  }
 0x171   :  { %1708 = vperm.xlu0 %4293, %v4650_v37  }
 0x173   :  { %1596 = vperm.xlu1 %4291, %v4650_v37   ;;  %v5102_v51 = vpop.permute.xlu1 %1233  ;;  %v5104_v42 = vpop.permute.xlu0 %1266 }
 0x174   :  { %8452 = vst [vmem:[#allocation70_spill] sm:$0xff] %v5102_v51  ;;  %8453 = vst [vmem:[#allocation71_spill] sm:$0xff] %v5104_v42 }
 0x175   :  { %1714 = vperm.xlu0 %4293, %v4662_v39  }
 0x177   :  { %1602 = vperm.xlu1 %4291, %v4662_v39   ;;  %v5108_v58 = vpop.permute.xlu1 %1239 }
 0x178   :  { %8454 = vst [vmem:[#allocation72_spill] sm:$0xff] %v5108_v58  ;;  %v5110_v53 = vpop.permute.xlu0 %1336 }
 0x179   :  { %8455 = vst [vmem:[#allocation73_spill] sm:$0xff] %v5110_v53  ;;  %4294 = vset.pattern.permute.xlu0 %v4462_v8 }
 0x17a   :  { %1784 = vperm.xlu0 %4294, %v4578_v25  }
 0x17b   :  { %4292 = vset.pattern.permute.xlu1 %v4461_v46  ;;  %v5113_v54 = vpop.permute.xlu1 %1245 }
 0x17c   :  { %8456 = vst [vmem:[#allocation74_spill] sm:$0xff] %v5113_v54  ;;  %1672 = vperm.xlu1 %4292, %v4578_v25   ;;  %v5116_v51 = vpop.permute.xlu0 %1345 }
 0x17d   :  { %8457 = vst [vmem:[#allocation75_spill] sm:$0xff] %v5116_v51 }
 0x17e   :  { %1793 = vperm.xlu0 %4294, %v4585_v26  }
 0x17f   :  { %v5119_v42 = vpop.permute.xlu1 %1251 }
 0x180   :  { %8458 = vst [vmem:[#allocation76_spill] sm:$0xff] %v5119_v42  ;;  %1678 = vperm.xlu1 %4292, %v4590_v27   ;;  %v5122_v58 = vpop.permute.xlu0 %1351 }
 0x181   :  { %8459 = vst [vmem:[#allocation77_spill] sm:$0xff] %v5122_v58 }
 0x182   :  { %1799 = vperm.xlu0 %4294, %v4597_v28  }
 0x183   :  { %v5125_v53 = vpop.permute.xlu1 %1257 }
 0x184   :  { %8460 = vst [vmem:[#allocation78_spill] sm:$0xff] %v5125_v53  ;;  %1681 = vperm.xlu1 %4292, %v4585_v26   ;;  %v5128_v46 = vpop.permute.xlu0 %1357 }
 0x185   :  { %8461 = vst [vmem:[#allocation79_spill] sm:$0xff] %v5128_v46 }
 0x186   :  { %1805 = vperm.xlu0 %4294, %v4609_v30  }
 0x187   :  { %v5131_v54 = vpop.permute.xlu1 %1263 }
 0x188   :  { %8462 = vst [vmem:[#allocation80_spill] sm:$0xff] %v5131_v54  ;;  %1687 = vperm.xlu1 %4292, %v4597_v28   ;;  %v5134_v51 = vpop.permute.xlu0 %1363 }
 0x189   :  { %8463 = vst [vmem:[#allocation81_spill] sm:$0xff] %v5134_v51 }
 0x18a   :  { %1811 = vperm.xlu0 %4294, %v4621_v32  }
 0x18b   :  { %v5137_v42 = vpop.permute.xlu1 %1269 }
 0x18c   :  { %8464 = vst [vmem:[#allocation82_spill] sm:$0xff] %v5137_v42  ;;  %1693 = vperm.xlu1 %4292, %v4609_v30   ;;  %v5140_v58 = vpop.permute.xlu0 %1369 }
 0x18d   :  { %8465 = vst [vmem:[#allocation83_spill] sm:$0xff] %v5140_v58 }
 0x18e   :  { %1817 = vperm.xlu0 %4294, %v4633_v34  }
 0x190   :  { %1699 = vperm.xlu1 %4292, %v4621_v32   ;;  %v5144_v46 = vpop.permute.xlu1 %1339  ;;  %v5146_v53 = vpop.permute.xlu0 %1375 }
 0x191   :  { %8466 = vst [vmem:[#allocation84_spill] sm:$0xff] %v5144_v46  ;;  %8467 = vst [vmem:[#allocation85_spill] sm:$0xff] %v5146_v53 }
 0x192   :  { %1823 = vperm.xlu0 %4294, %v4645_v36  }
 0x194   :  { %1705 = vperm.xlu1 %4292, %v4633_v34   ;;  %v5150_v51 = vpop.permute.xlu1 %1342  ;;  %v5152_v54 = vpop.permute.xlu0 %1381 }
 0x195   :  { %8468 = vst [vmem:[#allocation86_spill] sm:$0xff] %v5150_v51  ;;  %8469 = vst [vmem:[#allocation87_spill] sm:$0xff] %v5152_v54 }
 0x196   :  { %1829 = vperm.xlu0 %4294, %v4657_v38  }
 0x198   :  { %1711 = vperm.xlu1 %4292, %v4645_v36   ;;  %v5156_v58 = vpop.permute.xlu1 %1348 }
 0x199   :  { %8470 = vst [vmem:[#allocation88_spill] sm:$0xff] %v5156_v58  ;;  %v5158_v42 = vpop.permute.xlu0 %1451 }
 0x19a   :  { %8471 = vst [vmem:[#allocation89_spill] sm:$0xff] %v5158_v42  ;;  %4297 = vset.pattern.permute.xlu0 %v4463_v17 }
 0x19b   :  { %1899 = vperm.xlu0 %4297, %v4573_v24  }
 0x19c   :  { %1717 = vperm.xlu1 %4292, %v4657_v38   ;;  %v5162_v46 = vpop.permute.xlu1 %1354 }
 0x19d   :  { %8472 = vst [vmem:[#allocation90_spill] sm:$0xff] %v5162_v46  ;;  %v5164_v53 = vpop.permute.xlu0 %1460 }
 0x19e   :  { %8473 = vst [vmem:[#allocation91_spill] sm:$0xff] %v5164_v53 }
 0x19f   :  { %1908 = vperm.xlu0 %4297, %v4602_v29  }
 0x1a0   :  { %4295 = vset.pattern.permute.xlu1 %v4462_v8  ;;  %v5167_v54 = vpop.permute.xlu1 %1360 }
 0x1a1   :  { %8474 = vst [vmem:[#allocation92_spill] sm:$0xff] %v5167_v54  ;;  %1787 = vperm.xlu1 %4295, %v4573_v24   ;;  %v5170_v58 = vpop.permute.xlu0 %1466 }
 0x1a2   :  { %8475 = vst [vmem:[#allocation93_spill] sm:$0xff] %v5170_v58 }
 0x1a3   :  { %1914 = vperm.xlu0 %4297, %v4614_v31  }
 0x1a4   :  { %v5173_v42 = vpop.permute.xlu1 %1366 }
 0x1a5   :  { %8476 = vst [vmem:[#allocation94_spill] sm:$0xff] %v5173_v42  ;;  %1790 = vperm.xlu1 %4295, %v4590_v27   ;;  %v5176_v51 = vpop.permute.xlu0 %1472 }
 0x1a6   :  { %8477 = vst [vmem:[#allocation95_spill] sm:$0xff] %v5176_v51 }
 0x1a7   :  { %1920 = vperm.xlu0 %4297, %v4626_v33  }
 0x1a8   :  { %v5179_v53 = vpop.permute.xlu1 %1372 }
 0x1a9   :  { %8478 = vst [vmem:[#allocation96_spill] sm:$0xff] %v5179_v53  ;;  %1796 = vperm.xlu1 %4295, %v4602_v29   ;;  %v5182_v8 = vpop.permute.xlu0 %1478 }
 0x1aa   :  { %8479 = vst [vmem:[#allocation97_spill] sm:$0xff] %v5182_v8 }
 0x1ab   :  { %1926 = vperm.xlu0 %4297, %v4638_v35  }
 0x1ac   :  { %v5185_v24 = vpop.permute.xlu1 %1378 }
 0x1ad   :  { %8480 = vst [vmem:[#allocation98_spill] sm:$0xff] %v5185_v24  ;;  %1802 = vperm.xlu1 %4295, %v4614_v31   ;;  %v5188_v58 = vpop.permute.xlu0 %1484  ;;  %v4464_v24 = vmov 13  }
 0x1ae   :  { %8481 = vst [vmem:[#allocation99_spill] sm:$0xff] %v5188_v58  ;;  %v4466_v58 = vmov 15  }
 0x1af   :  { %1932 = vperm.xlu0 %4297, %v4650_v37  }
 0x1b1   :  { %1808 = vperm.xlu1 %4295, %v4626_v33   ;;  %v5192_v51 = vpop.permute.xlu1 %1448  ;;  %v5194_v42 = vpop.permute.xlu0 %1490 }
 0x1b2   :  { %8482 = vst [vmem:[#allocation100_spill] sm:$0xff] %v5192_v51  ;;  %8483 = vst [vmem:[#allocation101_spill] sm:$0xff] %v5194_v42  ;;  %v5359_v51 = vld [vmem:[%s8260_s1 + $0x70] sm:$0xff] }
 0x1b3   :  { %1938 = vperm.xlu0 %4297, %v4662_v39  }
 0x1b5   :  { %1814 = vperm.xlu1 %4295, %v4638_v35   ;;  %v5198_v29 = vpop.permute.xlu1 %1454 }
 0x1b6   :  { %8484 = vst [vmem:[#allocation102_spill] sm:$0xff] %v5198_v29  ;;  %v5200_v8 = vpop.permute.xlu0 %1560  ;;  %v5340_v29 = vld [vmem:[%s8260_s1 + $0x10] sm:$0xff] }
 0x1b7   :  { %8485 = vst [vmem:[#allocation103_spill] sm:$0xff] %v5200_v8  ;;  %4298 = vset.pattern.permute.xlu0 %v4464_v24 }
 0x1b8   :  { %2008 = vperm.xlu0 %4298, %v4578_v25  }
 0x1b9   :  { %1820 = vperm.xlu1 %4295, %v4650_v37   ;;  %v5204_v31 = vpop.permute.xlu1 %1457 }
 0x1ba   :  { %8486 = vst [vmem:[#allocation104_spill] sm:$0xff] %v5204_v31  ;;  %v5206_v33 = vpop.permute.xlu0 %1569 }
 0x1bb   :  { %8487 = vst [vmem:[#allocation105_spill] sm:$0xff] %v5206_v33 }
 0x1bc   :  { %2017 = vperm.xlu0 %4298, %v4585_v26  }
 0x1bd   :  { %1826 = vperm.xlu1 %4295, %v4662_v39   ;;  %v5210_v42 = vpop.permute.xlu1 %1463 }
 0x1be   :  { %8488 = vst [vmem:[#allocation106_spill] sm:$0xff] %v5210_v42  ;;  %v5212_v35 = vpop.permute.xlu0 %1575 }
 0x1bf   :  { %8489 = vst [vmem:[#allocation107_spill] sm:$0xff] %v5212_v35  ;;  %v5295_v35 = vld [vmem:[%s8260_s1 + $0x68] sm:$0xff] }
 0x1c0   :  { %2023 = vperm.xlu0 %4298, %v4597_v28   ;;  %v5232_v28 = vld [vmem:[%s8260_s1 + $0x18] sm:$0xff] }
 0x1c1   :  { %4296 = vset.pattern.permute.xlu1 %v4463_v17  ;;  %v5215_v8 = vpop.permute.xlu1 %1469 }
 0x1c2   :  { %8490 = vst [vmem:[#allocation108_spill] sm:$0xff] %v5215_v8  ;;  %1896 = vperm.xlu1 %4296, %v4578_v25   ;;  %v5218_v37 = vpop.permute.xlu0 %1581 }
 0x1c3   :  { %8491 = vst [vmem:[#allocation109_spill] sm:$0xff] %v5218_v37  ;;  %v5273_v37 = vld [vmem:[%s8260_s1 + $0x8] sm:$0xff] }
 0x1c4   :  { %2029 = vperm.xlu0 %4298, %v4609_v30  }
 0x1c5   :  { %v5221_v33 = vpop.permute.xlu1 %1475 }
 0x1c6   :  { %8492 = vst [vmem:[#allocation110_spill] sm:$0xff] %v5221_v33  ;;  %1902 = vperm.xlu1 %4296, %v4590_v27   ;;  %v5224_v26 = vpop.permute.xlu0 %1587  ;;  %v5243_v27 = vld [vmem:[%s8260_s1 + $0x28] sm:$0xff] }
 0x1c7   :  { %8493 = vst [vmem:[#allocation111_spill] sm:$0xff] %v5224_v26  ;;  %v5263_v26 = vld [vmem:[%s8260_s1 + $0x48] sm:$0xff] }
 0x1c8   :  { %2035 = vperm.xlu0 %4298, %v4621_v32  }
 0x1c9   :  { %v5227_v39 = vpop.permute.xlu1 %1481 }
 0x1ca   :  { %8494 = vst [vmem:[#allocation112_spill] sm:$0xff] %v5227_v39  ;;  %1905 = vperm.xlu1 %4296, %v5232_v28   ;;  %v5235_v25 = vpop.permute.xlu0 %1593 }
 0x1cb   :  { %8495 = vst [vmem:[#allocation113_spill] sm:$0xff] %v5235_v25  ;;  %v5254_v25 = vld [vmem:[%s8260_s1 + $0x38] sm:$0xff] }
 0x1cc   :  { %2041 = vperm.xlu0 %4298, %v4633_v34  }
 0x1cd   :  { %v5238_v30 = vpop.permute.xlu1 %1487 }
 0x1ce   :  { %8496 = vst [vmem:[#allocation114_spill] sm:$0xff] %v5238_v30  ;;  %1911 = vperm.xlu1 %4296, %v5243_v27   ;;  %v5246_v32 = vpop.permute.xlu0 %1599 }
 0x1cf   :  { %8497 = vst [vmem:[#allocation115_spill] sm:$0xff] %v5246_v32 }
 0x1d0   :  { %2047 = vperm.xlu0 %4298, %v4645_v36  }
 0x1d1   :  { %v5249_v17 = vpop.permute.xlu1 %1493 }
 0x1d2   :  { %8498 = vst [vmem:[#allocation116_spill] sm:$0xff] %v5249_v17  ;;  %1917 = vperm.xlu1 %4296, %v5254_v25   ;;  %v5257_v34 = vpop.permute.xlu0 %1605  ;;  %v4465_v17 = vmov 14  }
 0x1d3   :  { %8499 = vst [vmem:[#allocation117_spill] sm:$0xff] %v5257_v34 }
 0x1d4   :  { %2053 = vperm.xlu0 %4298, %v4657_v38   ;;  %v5279_v38 = vld [vmem:[%s8260_s1 + $0x58] sm:$0xff] }
 0x1d6   :  { %1923 = vperm.xlu1 %4296, %v5263_v26   ;;  %v5266_v36 = vpop.permute.xlu1 %1563 }
 0x1d7   :  { %8500 = vst [vmem:[#allocation118_spill] sm:$0xff] %v5266_v36 }
 0x1d8   :  { %v5268_v32 = vpop.permute.xlu0 %1675  ;;  %4301 = vset.pattern.permute.xlu0 %v4465_v17 }
 0x1d9   :  { %8501 = vst [vmem:[#allocation119_spill] sm:$0xff] %v5268_v32  ;;  %2123 = vperm.xlu0 %4301, %v5273_v37   ;;  %v5289_v32 = vld [vmem:[%s8260_s1 + $0x20] sm:$0xff] }
 0x1da   :  { %1929 = vperm.xlu1 %4296, %v5279_v38   ;;  %v5282_v34 = vpop.permute.xlu1 %1566 }
 0x1db   :  { %8502 = vst [vmem:[#allocation120_spill] sm:$0xff] %v5282_v34  ;;  %v5311_v34 = vld [vmem:[%s8260_s1 + $0x78] sm:$0xff] }
 0x1dc   :  { %v5284_v36 = vpop.permute.xlu0 %1684 }
 0x1dd   :  { %8503 = vst [vmem:[#allocation121_spill] sm:$0xff] %v5284_v36  ;;  %2132 = vperm.xlu0 %4301, %v5289_v32   ;;  %v5305_v36 = vld [vmem:[%s8260_s1 + $0x30] sm:$0xff] }
 0x1de   :  { %1935 = vperm.xlu1 %4296, %v5295_v35   ;;  %v5298_v30 = vpop.permute.xlu1 %1572 }
 0x1df   :  { %8504 = vst [vmem:[#allocation122_spill] sm:$0xff] %v5298_v30 }
 0x1e0   :  { %v5300_v39 = vpop.permute.xlu0 %1690 }
 0x1e1   :  { %8505 = vst [vmem:[#allocation123_spill] sm:$0xff] %v5300_v39  ;;  %2138 = vperm.xlu0 %4301, %v5305_v36   ;;  %v5321_v39 = vld [vmem:[%s8260_s1 + $0x40] sm:$0xff] }
 0x1e2   :  { %1941 = vperm.xlu1 %4296, %v5311_v34   ;;  %v5314_v33 = vpop.permute.xlu1 %1578 }
 0x1e3   :  { %8506 = vst [vmem:[#allocation124_spill] sm:$0xff] %v5314_v33  ;;  %v5332_v33 = vld [vmem:[%s8260_s1 + $0x50] sm:$0xff] }
 0x1e4   :  { %v5316_v8 = vpop.permute.xlu0 %1696 }
 0x1e5   :  { %8507 = vst [vmem:[#allocation125_spill] sm:$0xff] %v5316_v8  ;;  %2144 = vperm.xlu0 %4301, %v5321_v39  }
 0x1e6   :  { %4299 = vset.pattern.permute.xlu1 %v4464_v24  ;;  %v5324_v30 = vpop.permute.xlu1 %1584 }
 0x1e7   :  { %8508 = vst [vmem:[#allocation126_spill] sm:$0xff] %v5324_v30  ;;  %2011 = vperm.xlu1 %4299, %v5273_v37  }
 0x1e8   :  { %v5327_v42 = vpop.permute.xlu0 %1702 }
 0x1e9   :  { %8509 = vst [vmem:[#allocation127_spill] sm:$0xff] %v5327_v42  ;;  %2150 = vperm.xlu0 %4301, %v5332_v33   ;;  %v5348_v42 = vld [vmem:[%s8260_s1 + $0x60] sm:$0xff] }
 0x1ea   :  { %v5335_v8 = vpop.permute.xlu1 %1590 }
 0x1eb   :  { %8510 = vst [vmem:[#allocation128_spill] sm:$0xff] %v5335_v8  ;;  %2014 = vperm.xlu1 %4299, %v5340_v29  }
 0x1ec   :  { %v5343_v24 = vpop.permute.xlu0 %1708 }
 0x1ed   :  { %8511 = vst [vmem:[#allocation129_spill] sm:$0xff] %v5343_v24  ;;  %2156 = vperm.xlu0 %4301, %v5348_v42  }
 0x1ee   :  { %v5351_v30 = vpop.permute.xlu1 %1596 }
 0x1ef   :  { %8512 = vst [vmem:[#allocation130_spill] sm:$0xff] %v5351_v30  ;;  %2020 = vperm.xlu1 %4299, %v5289_v32   ;;  %v5370_v30 = vld [vmem:[%s8260_s1] sm:$0xff] }
 0x1f0   :  { %v5354_v8 = vpop.permute.xlu0 %1714 }
 0x1f1   :  { %8513 = vst [vmem:[#allocation131_spill] sm:$0xff] %v5354_v8  ;;  %2162 = vperm.xlu0 %4301, %v5359_v51  }
 0x1f2   :  { %v5362_v24 = vpop.permute.xlu1 %1602 }
 0x1f3   :  { %8514 = vst [vmem:[#allocation132_spill] sm:$0xff] %v5362_v24  ;;  %2026 = vperm.xlu1 %4299, %v5305_v36  }
 0x1f5   :  { %v5365_v31 = vpop.permute.xlu0 %1784  ;;  %4302 = vset.pattern.permute.xlu0 %v4466_v58 }
 0x1f6   :  { %8515 = vst [vmem:[#allocation133_spill] sm:$0xff] %v5365_v31  ;;  %2232 = vperm.xlu0 %4302, %v5370_v30  }
 0x1f7   :  { %2032 = vperm.xlu1 %4299, %v5321_v39   ;;  %v5374_v8 = vpop.permute.xlu1 %1672 }
 0x1f8   :  { %8516 = vst [vmem:[#allocation134_spill] sm:$0xff] %v5374_v8 }
 0x1f9   :  { %v5376_v53 = vpop.permute.xlu0 %1793 }
 0x1fa   :  { %8517 = vst [vmem:[#allocation135_spill] sm:$0xff] %v5376_v53  ;;  %2241 = vperm.xlu0 %4302, %v5232_v28  }
 0x1fb   :  { %2038 = vperm.xlu1 %4299, %v5332_v33   ;;  %v5380_v31 = vpop.permute.xlu1 %1678 }
 0x1fc   :  { %8518 = vst [vmem:[#allocation136_spill] sm:$0xff] %v5380_v31 }
 0x1fd   :  { %v5382_v24 = vpop.permute.xlu0 %1799 }
 0x1fe   :  { %8519 = vst [vmem:[#allocation137_spill] sm:$0xff] %v5382_v24  ;;  %2247 = vperm.xlu0 %4302, %v5243_v27  }
 0x1ff   :  { %2044 = vperm.xlu1 %4299, %v5348_v42   ;;  %v5386_v54 = vpop.permute.xlu1 %1681 }
 0x200   :  { %8520 = vst [vmem:[#allocation138_spill] sm:$0xff] %v5386_v54 }
 0x201   :  { %v5388_v46 = vpop.permute.xlu0 %1805 }
 0x202   :  { %8521 = vst [vmem:[#allocation139_spill] sm:$0xff] %v5388_v46  ;;  %2253 = vperm.xlu0 %4302, %v5254_v25  }
 0x203   :  { %2050 = vperm.xlu1 %4299, %v5359_v51   ;;  %v5392_v53 = vpop.permute.xlu1 %1687 }
 0x204   :  { %8522 = vst [vmem:[#allocation140_spill] sm:$0xff] %v5392_v53 }
 0x205   :  { %v5394_v8 = vpop.permute.xlu0 %1811 }
 0x206   :  { %8523 = vst [vmem:[#allocation141_spill] sm:$0xff] %v5394_v8  ;;  %2259 = vperm.xlu0 %4302, %v5263_v26  }
 0x207   :  { %4300 = vset.pattern.permute.xlu1 %v4465_v17  ;;  %v5397_v24 = vpop.permute.xlu1 %1693 }
 0x208   :  { %8524 = vst [vmem:[#allocation142_spill] sm:$0xff] %v5397_v24  ;;  %2120 = vperm.xlu1 %4300, %v5370_v30  }
 0x209   :  { %v5400_v31 = vpop.permute.xlu0 %1817 }
 0x20a   :  { %8525 = vst [vmem:[#allocation143_spill] sm:$0xff] %v5400_v31  ;;  %2265 = vperm.xlu0 %4302, %v5279_v38  }
 0x20b   :  { %v5403_v46 = vpop.permute.xlu1 %1699 }
 0x20c   :  { %8526 = vst [vmem:[#allocation144_spill] sm:$0xff] %v5403_v46  ;;  %2126 = vperm.xlu1 %4300, %v5340_v29   ;;  %v4467_v46 = vmov 16  }
 0x20d   :  { %v5406_v54 = vpop.permute.xlu0 %1823 }
 0x20e   :  { %8527 = vst [vmem:[#allocation145_spill] sm:$0xff] %v5406_v54  ;;  %2271 = vperm.xlu0 %4302, %v5295_v35  }
 0x20f   :  { %v5409_v8 = vpop.permute.xlu1 %1705 }
 0x210   :  { %8528 = vst [vmem:[#allocation146_spill] sm:$0xff] %v5409_v8  ;;  %2129 = vperm.xlu1 %4300, %v5232_v28  }
 0x211   :  { %v5412_v17 = vpop.permute.xlu0 %1829 }
 0x212   :  { %8529 = vst [vmem:[#allocation147_spill] sm:$0xff] %v5412_v17  ;;  %2277 = vperm.xlu0 %4302, %v5311_v34  }
 0x213   :  { %v5415_v24 = vpop.permute.xlu1 %1711 }
 0x214   :  { %8530 = vst [vmem:[#allocation148_spill] sm:$0xff] %v5415_v24  ;;  %2135 = vperm.xlu1 %4300, %v5243_v27  }
 0x216   :  { %v5418_v31 = vpop.permute.xlu0 %1899  ;;  %4305 = vset.pattern.permute.xlu0 %v4467_v46 }
 0x217   :  { %8531 = vst [vmem:[#allocation149_spill] sm:$0xff] %v5418_v31  ;;  %v5420_v53 = vpop.permute.xlu1 %1717  ;;  %2347 = vperm.xlu0 %4305, %v5273_v37  }
 0x218   :  { %8532 = vst [vmem:[#allocation150_spill] sm:$0xff] %v5420_v53  ;;  %2141 = vperm.xlu1 %4300, %v5254_v25  }
 0x21a   :  { %v5424_v54 = vpop.permute.xlu0 %1908 }
 0x21b   :  { %8533 = vst [vmem:[#allocation151_spill] sm:$0xff] %v5424_v54  ;;  %2356 = vperm.xlu0 %4305, %v5289_v32  }
 0x21c   :  { %2147 = vperm.xlu1 %4300, %v5263_v26   ;;  %v5428_v17 = vpop.permute.xlu1 %1787 }
 0x21d   :  { %8534 = vst [vmem:[#allocation152_spill] sm:$0xff] %v5428_v17 }
 0x21e   :  { %v5430_v24 = vpop.permute.xlu0 %1914 }
 0x21f   :  { %8535 = vst [vmem:[#allocation153_spill] sm:$0xff] %v5430_v24  ;;  %2362 = vperm.xlu0 %4305, %v5305_v36  }
 0x220   :  { %2153 = vperm.xlu1 %4300, %v5279_v38   ;;  %v5434_v31 = vpop.permute.xlu1 %1790 }
 0x221   :  { %8536 = vst [vmem:[#allocation154_spill] sm:$0xff] %v5434_v31 }
 0x222   :  { %v5436_v53 = vpop.permute.xlu0 %1920 }
 0x223   :  { %8537 = vst [vmem:[#allocation155_spill] sm:$0xff] %v5436_v53  ;;  %2368 = vperm.xlu0 %4305, %v5321_v39  }
 0x224   :  { %2159 = vperm.xlu1 %4300, %v5295_v35   ;;  %v5440_v54 = vpop.permute.xlu1 %1796 }
 0x225   :  { %8538 = vst [vmem:[#allocation156_spill] sm:$0xff] %v5440_v54 }
 0x226   :  { %v5442_v8 = vpop.permute.xlu0 %1926 }
 0x227   :  { %8539 = vst [vmem:[#allocation157_spill] sm:$0xff] %v5442_v8  ;;  %2374 = vperm.xlu0 %4305, %v5332_v33  }
 0x228   :  { %2165 = vperm.xlu1 %4300, %v5311_v34   ;;  %v5446_v17 = vpop.permute.xlu1 %1802 }
 0x229   :  { %8540 = vst [vmem:[#allocation158_spill] sm:$0xff] %v5446_v17  ;;  %v8322_v17 = vmov 17  }
 0x22a   :  { %v5448_v24 = vpop.permute.xlu0 %1932 }
 0x22b   :  { %8541 = vst [vmem:[#allocation159_spill] sm:$0xff] %v5448_v24  ;;  %2380 = vperm.xlu0 %4305, %v5348_v42  }
 0x22c   :  { %4303 = vset.pattern.permute.xlu1 %v4466_v58  ;;  %v5451_v53 = vpop.permute.xlu1 %1808 }
 0x22d   :  { %2235 = vperm.xlu1 %4303, %v5273_v37  }
 0x22e   :  { %v5454_v31 = vpop.permute.xlu0 %1938 }
 0x22f   :  { %8542 = vst [vmem:[#allocation160_spill] sm:$0xff] %v5454_v31  ;;  %2386 = vperm.xlu0 %4305, %v5359_v51  }
 0x230   :  { %v5457_v8 = vpop.permute.xlu1 %1814 }
 0x231   :  { %8543 = vst [vmem:[#allocation161_spill] sm:$0xff] %v5457_v8  ;;  %2238 = vperm.xlu1 %4303, %v5340_v29  }
 0x233   :  { %v5460_v54 = vpop.permute.xlu0 %2008  ;;  %4306 = vset.pattern.permute.xlu0 %v8322_v17 }
 0x234   :  { %8544 = vst [vmem:[#allocation162_spill] sm:$0xff] %v5460_v54  ;;  %v5463_v24 = vpop.permute.xlu1 %1820  ;;  %2456 = vperm.xlu0 %4306, %v5370_v30  }
 0x235   :  { %8545 = vst [vmem:[#allocation163_spill] sm:$0xff] %v5463_v24  ;;  %2244 = vperm.xlu1 %4303, %v5289_v32  }
 0x237   :  { %v5467_v58 = vpop.permute.xlu0 %2017 }
 0x238   :  { %8546 = vst [vmem:[#allocation164_spill] sm:$0xff] %v5467_v58  ;;  %v5469_v31 = vpop.permute.xlu1 %1826  ;;  %2465 = vperm.xlu0 %4306, %v5232_v28  }
 0x239   :  { %8547 = vst [vmem:[#allocation165_spill] sm:$0xff] %v5469_v31  ;;  %2250 = vperm.xlu1 %4303, %v5305_v36  }
 0x23b   :  { %v5473_v8 = vpop.permute.xlu0 %2023 }
 0x23c   :  { %8548 = vst [vmem:[#allocation166_spill] sm:$0xff] %v5473_v8  ;;  %2471 = vperm.xlu0 %4306, %v5243_v27  }
 0x23d   :  { %2256 = vperm.xlu1 %4303, %v5321_v39   ;;  %v5477_v17 = vpop.permute.xlu1 %1896 }
 0x23e   :  { %8549 = vst [vmem:[#allocation167_spill] sm:$0xff] %v5477_v17 }
 0x23f   :  { %v5479_v54 = vpop.permute.xlu0 %2029 }
 0x240   :  { %8550 = vst [vmem:[#allocation168_spill] sm:$0xff] %v5479_v54  ;;  %2477 = vperm.xlu0 %4306, %v5254_v25  }
 0x241   :  { %2262 = vperm.xlu1 %4303, %v5332_v33   ;;  %v5483_v58 = vpop.permute.xlu1 %1902 }
 0x242   :  { %8551 = vst [vmem:[#allocation169_spill] sm:$0xff] %v5483_v58 }
 0x243   :  { %v5485_v31 = vpop.permute.xlu0 %2035 }
 0x244   :  { %8552 = vst [vmem:[#allocation170_spill] sm:$0xff] %v5485_v31  ;;  %2483 = vperm.xlu0 %4306, %v5263_v26  }
 0x245   :  { %2268 = vperm.xlu1 %4303, %v5348_v42   ;;  %v5489_v8 = vpop.permute.xlu1 %1905 }
 0x246   :  { %8553 = vst [vmem:[#allocation171_spill] sm:$0xff] %v5489_v8 }
 0x247   :  { %v5491_v24 = vpop.permute.xlu0 %2041 }
 0x248   :  { %8554 = vst [vmem:[#allocation172_spill] sm:$0xff] %v5491_v24  ;;  %2489 = vperm.xlu0 %4306, %v5279_v38  }
 0x249   :  { %2274 = vperm.xlu1 %4303, %v5359_v51   ;;  %v5495_v54 = vpop.permute.xlu1 %1911 }
 0x24a   :  { %8555 = vst [vmem:[#allocation173_spill] sm:$0xff] %v5495_v54  ;;  %v8326_v54 = vmov 18  }
 0x24b   :  { %v5497_v17 = vpop.permute.xlu0 %2047 }
 0x24c   :  { %8556 = vst [vmem:[#allocation174_spill] sm:$0xff] %v5497_v17  ;;  %2495 = vperm.xlu0 %4306, %v5295_v35  }
 0x24d   :  { %4304 = vset.pattern.permute.xlu1 %v4467_v46  ;;  %v5500_v31 = vpop.permute.xlu1 %1917 }
 0x24e   :  { %8557 = vst [vmem:[#allocation175_spill] sm:$0xff] %v5500_v31  ;;  %2344 = vperm.xlu1 %4304, %v5370_v30   ;;  %v8329_v31 = vmov 19  }
 0x24f   :  { %v5503_v58 = vpop.permute.xlu0 %2053 }
 0x250   :  { %8558 = vst [vmem:[#allocation176_spill] sm:$0xff] %v5503_v58  ;;  %2501 = vperm.xlu0 %4306, %v5311_v34  }
 0x251   :  { %v5506_v24 = vpop.permute.xlu1 %1923 }
 0x252   :  { %8559 = vst [vmem:[#allocation177_spill] sm:$0xff] %v5506_v24  ;;  %2350 = vperm.xlu1 %4304, %v5340_v29  }
 0x254   :  { %v5509_v8 = vpop.permute.xlu0 %2123  ;;  %4309 = vset.pattern.permute.xlu0 %v8326_v54 }
 0x255   :  { %8560 = vst [vmem:[#allocation178_spill] sm:$0xff] %v5509_v8  ;;  %v5512_v17 = vpop.permute.xlu1 %1929  ;;  %2571 = vperm.xlu0 %4309, %v5273_v37  }
 0x256   :  { %8561 = vst [vmem:[#allocation179_spill] sm:$0xff] %v5512_v17  ;;  %2353 = vperm.xlu1 %4304, %v5232_v28  }
 0x258   :  { %v5516_v46 = vpop.permute.xlu0 %2132 }
 0x259   :  { %8562 = vst [vmem:[#allocation180_spill] sm:$0xff] %v5516_v46  ;;  %v5518_v58 = vpop.permute.xlu1 %1935  ;;  %2580 = vperm.xlu0 %4309, %v5289_v32  }
 0x25a   :  { %8563 = vst [vmem:[#allocation181_spill] sm:$0xff] %v5518_v58  ;;  %2359 = vperm.xlu1 %4304, %v5243_v27  }
 0x25c   :  { %v5522_v24 = vpop.permute.xlu0 %2138 }
 0x25d   :  { %8564 = vst [vmem:[#allocation182_spill] sm:$0xff] %v5522_v24  ;;  %v5524_v8 = vpop.permute.xlu1 %1941  ;;  %2586 = vperm.xlu0 %4309, %v5305_v36  }
 0x25e   :  { %8565 = vst [vmem:[#allocation183_spill] sm:$0xff] %v5524_v8  ;;  %2365 = vperm.xlu1 %4304, %v5254_v25  }
 0x260   :  { %v5528_v54 = vpop.permute.xlu0 %2144 }
 0x261   :  { %8566 = vst [vmem:[#allocation184_spill] sm:$0xff] %v5528_v54  ;;  %2592 = vperm.xlu0 %4309, %v5321_v39  }
 0x262   :  { %2371 = vperm.xlu1 %4304, %v5263_v26   ;;  %v5532_v46 = vpop.permute.xlu1 %2011 }
 0x263   :  { %8567 = vst [vmem:[#allocation185_spill] sm:$0xff] %v5532_v46 }
 0x264   :  { %v5534_v58 = vpop.permute.xlu0 %2150 }
 0x265   :  { %8568 = vst [vmem:[#allocation186_spill] sm:$0xff] %v5534_v58  ;;  %2598 = vperm.xlu0 %4309, %v5332_v33  }
 0x266   :  { %2377 = vperm.xlu1 %4304, %v5279_v38   ;;  %v5538_v24 = vpop.permute.xlu1 %2014 }
 0x267   :  { %8569 = vst [vmem:[#allocation187_spill] sm:$0xff] %v5538_v24 }
 0x268   :  { %v5540_v8 = vpop.permute.xlu0 %2156 }
 0x269   :  { %8570 = vst [vmem:[#allocation188_spill] sm:$0xff] %v5540_v8  ;;  %2604 = vperm.xlu0 %4309, %v5348_v42   ;;  %v8575_v8 = vmov 17  }
 0x26a   :  { %2383 = vperm.xlu1 %4304, %v5295_v35   ;;  %v5544_v54 = vpop.permute.xlu1 %2020 }
 0x26b   :  { %8571 = vst [vmem:[#allocation189_spill] sm:$0xff] %v5544_v54 }
 0x26c   :  { %v5546_v17 = vpop.permute.xlu0 %2162 }
 0x26d   :  { %8572 = vst [vmem:[#allocation190_spill] sm:$0xff] %v5546_v17  ;;  %2610 = vperm.xlu0 %4309, %v5359_v51  }
 0x26e   :  { %2389 = vperm.xlu1 %4304, %v5311_v34   ;;  %v5550_v46 = vpop.permute.xlu1 %2026 }
 0x26f   :  { %8573 = vst [vmem:[#allocation191_spill] sm:$0xff] %v5550_v46 }
 0x271   :  { %v5552_v58 = vpop.permute.xlu0 %2232  ;;  %4310 = vset.pattern.permute.xlu0 %v8329_v31  ;;  %v3749_v31 = vsel %vm599_vm5, 1.0, %v8581_v14  ;;  %vm611_vm5 = vcmp.eq.s32.totalorder %v4697_v43, %v4799_v47  ;;  %v3767_v47 = vsel %vm713_vm4, 1.0, %v8581_v14  ;;  %vm725_vm4 = vcmp.eq.s32.totalorder %v4697_v43, %v4863_v5 }
 0x272   :  { %8574 = vst [vmem:[#allocation192_spill] sm:$0xff] %v5552_v58  ;;  %4307 = vset.pattern.permute.xlu1 %v8575_v8  ;;  %v5556_v24 = vpop.permute.xlu1 %2032  ;;  %2680 = vperm.xlu0 %4310, %v5370_v30   ;;  %v3761_v48 = vsel %vm611_vm5, 1.0, %v8581_v14  ;;  %vm726_vm5 = vcmp.eq.s32.totalorder %v4697_v43, %v4865_v6  ;;  %v767_v5 = vadd.f32 %v3773_v2, %v3757_v40 }
 0x273   :  { %2459 = vperm.xlu1 %4307, %v5273_v37  }
 0x275   :  { %v5560_v17 = vpop.permute.xlu0 %2241 }
 0x276   :  { %8576 = vst [vmem:[#allocation193_spill] sm:$0xff] %v5560_v17  ;;  %v5562_v54 = vpop.permute.xlu1 %2038  ;;  %2689 = vperm.xlu0 %4310, %v5232_v28   ;;  %v5663_v17 = vadd.f32 %v3765_v52, %v3749_v31  ;;  %v3772_v31 = vsel %vm718_vm12, 1.0, %v8581_v14 }
 0x277   :  { %2462 = vperm.xlu1 %4307, %v5340_v29  }
 0x279   :  { %v5566_v58 = vpop.permute.xlu0 %2247 }
 0x27a   :  { %8577 = vst [vmem:[#allocation194_spill] sm:$0xff] %v5566_v58  ;;  %v5568_v46 = vpop.permute.xlu1 %2044  ;;  %2695 = vperm.xlu0 %4310, %v5243_v27   ;;  %v3755_v58 = vsel %vm605_vm11, 1.0, %v8581_v14  ;;  %vm717_vm11 = vcmp.eq.s32.totalorder %v4697_v43, %v4840_v61 }
 0x27b   :  { %8578 = vst [vmem:[#allocation195_spill] sm:$0xff] %v5568_v46  ;;  %2468 = vperm.xlu1 %4307, %v5289_v32   ;;  %v3771_v16 = vsel %vm717_vm11, 1.0, %v8581_v14  ;;  %vm829_vm11 = vcmp.eq.s32.totalorder %v4697_v43, %v4884_v15  ;;  %v8592_v15 = vld [vmem:[#allocation10_spill] sm:$0xff] }
 0x27d   :  { %v5580_v8 = vpop.permute.xlu0 %2253 }
 0x27e   :  { %8579 = vst [vmem:[#allocation196_spill] sm:$0xff] %v5580_v8  ;;  %v5588_v13 = vpop.permute.xlu1 %2050  ;;  %2701 = vperm.xlu0 %4310, %v5254_v25   ;;  %v5605_v8 = vsel %vm606_vm10, 1.0, %v8581_v14  ;;  %vm716_vm10 = vcmp.eq.s32.totalorder %v4697_v43, %v4836_v60  ;;  %v3768_v60 = vsel %vm714_vm8, 1.0, %v8581_v14  ;;  %vm825_vm8 = vcmp.eq.s32.totalorder %v4697_v43, %v4876_v10 }
 0x27f   :  { %8580 = vst [vmem:[#allocation197_spill] sm:$0xff] %v5588_v13  ;;  %2474 = vperm.xlu1 %4307, %v5305_v36   ;;  %v3769_v13 = vsel %vm715_vm9, 1.0, %v8581_v14  ;;  %v3770_v46 = vsel %vm716_vm10, 1.0, %v8581_v14  ;;  %v5684_v62 = vadd.f32 %v3768_v60, %v3752_v18  ;;  %v765_v18 = vadd.f32 %v3771_v16, %v3755_v58 }
 0x280   :  { %v763_v0 = vadd.f32 %v3769_v13, %v3753_v21  ;;  %v5694_v1 = vadd.f32 %v3770_v46, %v3754_v20  ;;  %v766_v52 = vadd.f32 %v3772_v31, %v5605_v8  ;;  %v3777_v13 = vsel %vm723_vm1, 1.0, %v8581_v14 }
 0x281   :  { %v5609_v22 = vpop.permute.xlu0 %2259  ;;  %v3779_v58 = vsel %vm725_vm4, 1.0, %v8581_v14  ;;  %v769_v21 = vadd.f32 %v3775_v3, %v3759_v45  ;;  %v5721_v6 = vadd.f32 %v3777_v13, %v3761_v48  ;;  %v3780_v60 = vsel %vm726_vm5, 1.0, %v8581_v14  ;;  %v8587_v45 = vld [vmem:[#allocation6_spill] sm:$0xff]  ;;  %v8590_v3 = vld [vmem:[#allocation8_spill] sm:$0xff]  ;;  %v8591_v13 = vld [vmem:[#allocation9_spill] sm:$0xff] }
 0x282   :  { %8582 = vst [vmem:[#allocation198_spill] sm:$0xff] %v5609_v22  ;;  %2707 = vperm.xlu0 %4310, %v5263_v26   ;;  %v3762_v22 = vsel %vm612_vm3, 1.0, %v8581_v14  ;;  %vm724_vm3 = vcmp.eq.s32.totalorder %v4697_v43, %v4859_v4  ;;  %v5728_v7 = vadd.f32 %v3779_v58, %v3763_v56  ;;  %v3781_v16 = vsel %vm823_vm6, 1.0, %v8581_v14 }
 0x283   :  { %2480 = vperm.xlu1 %4307, %v5321_v39   ;;  %v5628_v41 = vpop.permute.xlu1 %2120  ;;  %v3778_v46 = vsel %vm724_vm3, 1.0, %v8581_v14  ;;  %vm827_vm9 = vcmp.eq.s32.totalorder %v4697_v43, %v4878_v11  ;;  %vm826_vm10 = vcmp.eq.s32.totalorder %v4697_v43, %v4882_v12  ;;  %vm831_vm13 = vcmp.eq.s32.totalorder %v4697_v43, %v8587_v45 }
 0x284   :  { %8583 = vst [vmem:[#allocation199_spill] sm:$0xff] %v5628_v41  ;;  %v5668_v41 = vadd.f32 %v3767_v47, %v3751_v19  ;;  %v3774_v19 = vsel %vm720_vm14, 1.0, %v8581_v14  ;;  %v5717_v47 = vadd.f32 %v3776_v50, %v3760_v44  ;;  %v5723_v40 = vadd.f32 %v3778_v46, %v3762_v22  ;;  %v8586_v44 = vld [vmem:[#allocation5_spill] sm:$0xff] }
 0x285   :  { %v5642_v55 = vpop.permute.xlu0 %2265  ;;  %v768_v8 = vadd.f32 %v3774_v19, %v5620_v23  ;;  %v8330_v23 = vmov 20   ;;  %v3782_v22 = vsel %vm824_vm7, 1.0, %v8581_v14  ;;  %vm828_vm12 = vcmp.eq.s32.totalorder %v4697_v43, %v8586_v44  ;;  %v8589_v19 = vld [vmem:[#allocation7_spill] sm:$0xff] }
 0x286   :  { %8584 = vst [vmem:[#allocation200_spill] sm:$0xff] %v5642_v55  ;;  %2713 = vperm.xlu0 %4310, %v5279_v38   ;;  %v8588_v48 = vmov 18   ;;  %v5750_v31 = vadd.f32 %v3780_v60, %v5653_v49  ;;  %v3783_v2 = vsel %vm825_vm8, 1.0, %v8581_v14  ;;  %vm830_vm14 = vcmp.eq.s32.totalorder %v4697_v43, %v8589_v19  ;;  %v8593_v19 = vld [vmem:[#allocation11_spill] sm:$0xff] }
 0x287   :  { %2486 = vperm.xlu1 %4307, %v5332_v33   ;;  %v5659_v55 = vpop.permute.xlu1 %2126  ;;  %vm833_vm15 = vcmp.eq.s32.totalorder %v4697_v43, %v8590_v3  ;;  %v871_v50 = vadd.f32 %v3781_v16, %v5663_v17  ;;  %v3785_v49 = vsel %vm827_vm9, 1.0, %v8581_v14  ;;  %v3784_v10 = vsel %vm826_vm10, 1.0, %v8581_v14 }
 0x288   :  { %vm832_vm0 = vcmp.eq.s32.totalorder %v4697_v43, %v8591_v13  ;;  %v872_v46 = vadd.f32 %v3782_v22, %v5661_v59  ;;  %v3787_v17 = vsel %vm829_vm11, 1.0, %v8581_v14  ;;  %v3786_v11 = vsel %vm828_vm12, 1.0, %v8581_v14  ;;  %v8594_v13 = vld [vmem:[#allocation12_spill] sm:$0xff] }
 0x289   :  { %v5674_v61 = vpop.permute.xlu0 %2271  ;;  %v3789_v12 = vsel %vm831_vm13, 1.0, %v8581_v14  ;;  %v873_v60 = vadd.f32 %v3783_v2, %v5668_v41  ;;  %v3788_v59 = vsel %vm830_vm14, 1.0, %v8581_v14  ;;  %v3791_v16 = vsel %vm833_vm15, 1.0, %v8581_v14 }
 0x28a   :  { %2719 = vperm.xlu0 %4310, %v5295_v35   ;;  %vm835_vm1 = vcmp.eq.s32.totalorder %v4697_v43, %v8592_v15  ;;  %v875_v44 = vadd.f32 %v3785_v49, %v763_v0  ;;  %v3790_v45 = vsel %vm832_vm0, 1.0, %v8581_v14  ;;  %vm834_vm3 = vcmp.eq.s32.totalorder %v4697_v43, %v8593_v19  ;;  %v8595_v49 = vld [vmem:[#allocation13_spill] sm:$0xff] }
 0x28b   :  { %2492 = vperm.xlu1 %4307, %v5348_v42   ;;  %v5692_v63 = vpop.permute.xlu1 %2129  ;;  %v5800_v41 = vadd.f32 %v3787_v17, %v765_v18  ;;  %v876_v2 = vadd.f32 %v3786_v11, %v5694_v1  ;;  %v5803_v3 = vadd.f32 %v3789_v12, %v767_v5  ;;  %vm837_vm4 = vcmp.eq.s32.totalorder %v4697_v43, %v8594_v13  ;;  %v8597_v17 = vld [vmem:[#allocation14_spill] sm:$0xff]  ;;  %v8598_v1 = vld [vmem:[#allocation15_spill] sm:$0xff]  ;;  %v8600_v11 = vld [vmem:[#allocation17_spill] sm:$0xff] }
 0x28c   :  { %v5807_v0 = vadd.f32 %v3791_v16, %v769_v21  ;;  %vm836_vm5 = vcmp.eq.s32.totalorder %v4697_v43, %v8595_v49  ;;  %v880_v15 = vadd.f32 %v3790_v45, %v768_v8  ;;  %v3792_v18 = vsel %vm834_vm3, 1.0, %v8581_v14  ;;  %v8599_v21 = vld [vmem:[#allocation16_spill] sm:$0xff]  ;;  %v8601_v8 = vld [vmem:[#allocation18_spill] sm:$0xff]  ;;  %v8602_v16 = vld [vmem:[#allocation19_spill] sm:$0xff] }
 0x28d   :  { %v5702_v4 = vpop.permute.xlu0 %2277  ;;  %vm935_vm6 = vcmp.eq.s32.totalorder %v4697_v43, %v8597_v17  ;;  %vm838_vm7 = vcmp.eq.s32.totalorder %v4697_v43, %v8598_v1  ;;  %vm938_vm8 = vcmp.eq.s32.totalorder %v4697_v43, %v8599_v21  ;;  %vm936_vm9 = vcmp.eq.s32.totalorder %v4697_v43, %v8600_v11  ;;  %v8604_v49 = vld [vmem:[#allocation21_spill] sm:$0xff] }
 0x28e   :  { %2725 = vperm.xlu0 %4310, %v5311_v34   ;;  %vm940_vm10 = vcmp.eq.s32.totalorder %v4697_v43, %v8601_v8  ;;  %vm937_vm11 = vcmp.eq.s32.totalorder %v4697_v43, %v8602_v16  ;;  %v882_v45 = vadd.f32 %v3792_v18, %v5717_v47  ;;  %v3797_v19 = vsel %vm935_vm6, 1.0, %v8581_v14  ;;  %v8607_v16 = vld [vmem:[#allocation22_spill] sm:$0xff] }
 0x28f   :  { %2498 = vperm.xlu1 %4307, %v5359_v51   ;;  %v5714_v20 = vpop.permute.xlu1 %2135  ;;  %v3796_v13 = vsel %vm838_vm7, 1.0, %v8581_v14  ;;  %vm939_vm13 = vcmp.eq.s32.totalorder %v4697_v43, %v8604_v49  ;;  %v3798_v1 = vsel %vm936_vm9, 1.0, %v8581_v14  ;;  %v3802_v21 = vsel %vm940_vm10, 1.0, %v8581_v14  ;;  %v8608_v49 = vld [vmem:[#allocation23_spill] sm:$0xff] }
 0x290   :  { %v3799_v18 = vsel %vm937_vm11, 1.0, %v8581_v14  ;;  %vm944_vm14 = vcmp.eq.s32.totalorder %v4697_v43, %v8607_v16  ;;  %vm941_vm15 = vcmp.eq.s32.totalorder %v4697_v43, %v8608_v49 }
 0x291   :  { %v5872_v16 = vadd.f32 %v3799_v18, %v873_v60  ;;  %v8619_v18 = vld [vmem:[#allocation32_spill] sm:$0xff] }
 0x292   :  { %v5735_v9 = vpop.permute.xlu0 %2347  ;;  %4313 = vset.pattern.permute.xlu0 %v8330_v23  ;;  %v8609_v23 = vld [vmem:[#allocation24_spill] sm:$0xff]  ;;  %vm1051_vm9 = vcmp.eq.s32.totalorder %v4697_v43, %v8619_v18  ;;  %v8624_v18 = vld [vmem:[#allocation35_spill] sm:$0xff] }
 0x293   :  { %8585 = vst [vmem:[#allocation201_spill] sm:$0xff] %v5735_v9  ;;  %4308 = vset.pattern.permute.xlu1 %v8588_v48  ;;  %v5746_v56 = vpop.permute.xlu1 %2141  ;;  %2795 = vperm.xlu0 %4313, %v5273_v37   ;;  %v874_v48 = vadd.f32 %v3784_v10, %v5684_v62  ;;  %v3793_v62 = vsel %vm835_vm1, 1.0, %v8581_v14  ;;  %vm946_vm0 = vcmp.eq.s32.totalorder %v4697_v43, %v8609_v23  ;;  %v8614_v23 = vld [vmem:[#allocation27_spill] sm:$0xff] }
 0x294   :  { %2568 = vperm.xlu1 %4308, %v5370_v30   ;;  %v5831_v12 = vadd.f32 %v3793_v62, %v5721_v6  ;;  %v3800_v62 = vsel %vm938_vm8, 1.0, %v8581_v14  ;;  %v3808_v60 = vsel %vm946_vm0, 1.0, %v8581_v14 }
 0x296   :  { %v5785_v58 = vpop.permute.xlu0 %2356 }
 0x297   :  { %v5792_v22 = vpop.permute.xlu1 %2147  ;;  %2804 = vperm.xlu0 %4313, %v5289_v32   ;;  %v878_v32 = vadd.f32 %v3788_v59, %v766_v52  ;;  %v3795_v52 = vsel %vm837_vm4, 1.0, %v8581_v14  ;;  %v3794_v59 = vsel %vm836_vm5, 1.0, %v8581_v14  ;;  %vm945_vm4 = vcmp.eq.s32.totalorder %v4697_v43, %v8614_v23 }
 0x298   :  { %2574 = vperm.xlu1 %4308, %v5340_v29   ;;  %v5846_v6 = vadd.f32 %v3795_v52, %v5728_v7  ;;  %v884_v47 = vadd.f32 %v3794_v59, %v5723_v40  ;;  %v983_v7 = vadd.f32 %v3797_v19, %v871_v50  ;;  %v886_v52 = vadd.f32 %v3796_v13, %v5750_v31  ;;  %v8611_v19 = vld [vmem:[#allocation25_spill] sm:$0xff] }
 0x299   :  { %v984_v40 = vadd.f32 %v3798_v1, %v872_v46  ;;  %v5866_v59 = vadd.f32 %v3802_v21, %v876_v2  ;;  %v3806_v31 = vsel %vm944_vm14, 1.0, %v8581_v14  ;;  %vm943_vm1 = vcmp.eq.s32.totalorder %v4697_v43, %v8611_v19  ;;  %v8613_v2 = vld [vmem:[#allocation26_spill] sm:$0xff]  ;;  %v8618_v21 = vld [vmem:[#allocation31_spill] sm:$0xff] }
 0x29a   :  { %v5812_v10 = vpop.permute.xlu0 %2362  ;;  %vm948_vm3 = vcmp.eq.s32.totalorder %v4697_v43, %v8613_v2  ;;  %v3805_v1 = vsel %vm943_vm1, 1.0, %v8581_v14  ;;  %vm949_vm8 = vcmp.eq.s32.totalorder %v4697_v43, %v8618_v21  ;;  %v3807_v19 = vsel %vm945_vm4, 1.0, %v8581_v14  ;;  %v8621_v2 = vld [vmem:[#allocation33_spill] sm:$0xff]  ;;  %v8623_v21 = vld [vmem:[#allocation34_spill] sm:$0xff] }
 0x29b   :  { %8596 = vst [vmem:[#allocation5_spill] sm:$0xff] %v5812_v10  ;;  %v5819_v5 = vpop.permute.xlu1 %2153  ;;  %2810 = vperm.xlu0 %4313, %v5305_v36   ;;  %v8603_v36 = vld [vmem:[#allocation20_spill] sm:$0xff]  ;;  %v3810_v49 = vsel %vm948_vm3, 1.0, %v8581_v14  ;;  %vm1047_vm10 = vcmp.eq.s32.totalorder %v4697_v43, %v8621_v2  ;;  %vm1053_vm11 = vcmp.eq.s32.totalorder %v4697_v43, %v8623_v21 }
 0x29c   :  { %2577 = vperm.xlu1 %4308, %v5232_v28   ;;  %vm942_vm12 = vcmp.eq.s32.totalorder %v4697_v43, %v8603_v36  ;;  %v3801_v36 = vsel %vm939_vm13, 1.0, %v8581_v14 }
 0x29d   :  { %v3804_v8 = vsel %vm942_vm12, 1.0, %v8581_v14  ;;  %v987_v46 = vadd.f32 %v3801_v36, %v875_v44  ;;  %v5895_v44 = vadd.f32 %v3806_v31, %v880_v15  ;;  %v5910_v15 = vadd.f32 %v3808_v60, %v882_v45 }
 0x29e   :  { %v5843_v17 = vpop.permute.xlu0 %2368  ;;  %v5874_v50 = vadd.f32 %v3804_v8, %v878_v32  ;;  %v8615_v32 = vld [vmem:[#allocation28_spill] sm:$0xff]  ;;  %v993_v45 = vadd.f32 %v3807_v19, %v5807_v0  ;;  %v3813_v60 = vsel %vm1047_vm10, 1.0, %v8581_v14  ;;  %vm1049_vm12 = vcmp.eq.s32.totalorder %v4697_v43, %v8624_v18  ;;  %v8637_v18 = vld [vmem:[#allocation45_spill] sm:$0xff] }
 0x29f   :  { %8605 = vst [vmem:[#allocation6_spill] sm:$0xff] %v5843_v17  ;;  %v5851_v11 = vpop.permute.xlu1 %2159  ;;  %2816 = vperm.xlu0 %4313, %v5321_v39   ;;  %v5864_v39 = vadd.f32 %v3800_v62, %v874_v48  ;;  %v3803_v48 = vsel %vm941_vm15, 1.0, %v8581_v14  ;;  %vm950_vm5 = vcmp.eq.s32.totalorder %v4697_v43, %v8615_v32  ;;  %v8616_v62 = vld [vmem:[#allocation29_spill] sm:$0xff]  ;;  %v8755_v17 = vld [vmem:[#allocation134_spill] sm:$0xff] }
 0x2a0   :  { %8606 = vst [vmem:[#allocation7_spill] sm:$0xff] %v5851_v11  ;;  %2583 = vperm.xlu1 %4308, %v5243_v27   ;;  %vm947_vm6 = vcmp.eq.s32.totalorder %v4697_v43, %v8616_v62  ;;  %v989_v36 = vadd.f32 %v3803_v48, %v5800_v41  ;;  %v3812_v31 = vsel %vm950_vm5, 1.0, %v8581_v14  ;;  %v991_v48 = vadd.f32 %v3805_v1, %v5803_v3 }
 0x2a1   :  { %v3809_v23 = vsel %vm947_vm6, 1.0, %v8581_v14  ;;  %v3811_v62 = vsel %vm949_vm8, 1.0, %v8581_v14  ;;  %v5931_v2 = vadd.f32 %v3812_v31, %v886_v52  ;;  %v1095_v52 = vadd.f32 %v3813_v60, %v983_v7  ;;  %v8629_v31 = vld [vmem:[#allocation38_spill] sm:$0xff] }
 0x2a2   :  { %v5870_v9 = vpop.permute.xlu0 %2374  ;;  %v995_v3 = vadd.f32 %v3809_v23, %v5831_v12  ;;  %v997_v0 = vadd.f32 %v3811_v62, %v5846_v6  ;;  %v3815_v12 = vsel %vm1049_vm12, 1.0, %v8581_v14  ;;  %vm1057_vm15 = vcmp.eq.s32.totalorder %v4697_v43, %v8629_v31  ;;  %v8630_v6 = vld [vmem:[#allocation39_spill] sm:$0xff]  ;;  %v8633_v23 = vld [vmem:[#allocation42_spill] sm:$0xff] }
 0x2a3   :  { %8610 = vst [vmem:[#allocation8_spill] sm:$0xff] %v5870_v9  ;;  %v5879_v13 = vpop.permute.xlu1 %2165  ;;  %2822 = vperm.xlu0 %4313, %v5332_v33   ;;  %v8617_v33 = vld [vmem:[#allocation30_spill] sm:$0xff]  ;;  %vm1052_vm0 = vcmp.eq.s32.totalorder %v4697_v43, %v8630_v6  ;;  %vm1061_vm4 = vcmp.eq.s32.totalorder %v4697_v43, %v8633_v23  ;;  %v5970_v21 = vadd.f32 %v3815_v12, %v5872_v16  ;;  %v3823_v60 = vsel %vm1057_vm15, 1.0, %v8581_v14  ;;  %v8639_v23 = vld [vmem:[#allocation47_spill] sm:$0xff] }
 0x2a4   :  { %8612 = vst [vmem:[#allocation9_spill] sm:$0xff] %v5879_v13  ;;  %2589 = vperm.xlu1 %4308, %v5254_v25   ;;  %vm1048_vm7 = vcmp.eq.s32.totalorder %v4697_v43, %v8617_v33  ;;  %v3817_v33 = vsel %vm1051_vm9, 1.0, %v8581_v14  ;;  %v3818_v16 = vsel %vm1052_vm0, 1.0, %v8581_v14  ;;  %vm1060_vm9 = vcmp.eq.s32.totalorder %v4697_v43, %v8639_v23 }
 0x2a5   :  { %v3814_v32 = vsel %vm1048_vm7, 1.0, %v8581_v14  ;;  %vm1058_vm7 = vcmp.eq.s32.totalorder %v4697_v43, %v8637_v18 }
 0x2a6   :  { %v5902_v8 = vpop.permute.xlu0 %2380  ;;  %v5934_v1 = vadd.f32 %v3814_v32, %v984_v40  ;;  %v8628_v40 = vld [vmem:[#allocation37_spill] sm:$0xff]  ;;  %v8634_v32 = vld [vmem:[#allocation43_spill] sm:$0xff] }
 0x2a7   :  { %8620 = vst [vmem:[#allocation10_spill] sm:$0xff] %v5902_v8  ;;  %2828 = vperm.xlu0 %4313, %v5348_v42   ;;  %v5923_v42 = vadd.f32 %v3810_v49, %v884_v47  ;;  %v5940_v47 = vadd.f32 %v3817_v33, %v987_v46  ;;  %v3819_v49 = vsel %vm1053_vm11, 1.0, %v8581_v14  ;;  %vm1050_vm14 = vcmp.eq.s32.totalorder %v4697_v43, %v8628_v40  ;;  %v8631_v46 = vld [vmem:[#allocation40_spill] sm:$0xff]  ;;  %v8726_v8 = vld [vmem:[#allocation110_spill] sm:$0xff] }
 0x2a8   :  { %2595 = vperm.xlu1 %4308, %v5263_v26   ;;  %v5916_v41 = vpop.permute.xlu1 %2235  ;;  %vm1059_vm1 = vcmp.eq.s32.totalorder %v4697_v43, %v8631_v46  ;;  %v5958_v7 = vadd.f32 %v3819_v49, %v989_v36  ;;  %vm1056_vm5 = vcmp.eq.s32.totalorder %v4697_v43, %v8634_v32  ;;  %v8333_v33 = vmov 21  }
 0x2a9   :  { %8622 = vst [vmem:[#allocation11_spill] sm:$0xff] %v5916_v41  ;;  %v8626_v41 = vld [vmem:[#allocation36_spill] sm:$0xff]  ;;  %v3816_v36 = vsel %vm1050_vm14, 1.0, %v8581_v14  ;;  %v3825_v12 = vsel %vm1059_vm1, 1.0, %v8581_v14  ;;  %v6009_v46 = vadd.f32 %v3823_v60, %v993_v45  ;;  %v1100_v32 = vadd.f32 %v3818_v16, %v5866_v59 }
 0x2aa   :  { %v5929_v26 = vpop.permute.xlu0 %2386  ;;  %vm1055_vm13 = vcmp.eq.s32.totalorder %v4697_v43, %v8626_v41  ;;  %v8635_v41 = vld [vmem:[#allocation44_spill] sm:$0xff]  ;;  %v1098_v6 = vadd.f32 %v3816_v36, %v5864_v39 }
 0x2ab   :  { %8625 = vst [vmem:[#allocation12_spill] sm:$0xff] %v5929_v26  ;;  %2834 = vperm.xlu0 %4313, %v5359_v51   ;;  %v3821_v51 = vsel %vm1055_vm13, 1.0, %v8581_v14  ;;  %vm1159_vm6 = vcmp.eq.s32.totalorder %v4697_v43, %v8635_v41  ;;  %v8641_v16 = vld [vmem:[#allocation48_spill] sm:$0xff] }
 0x2ac   :  { %2601 = vperm.xlu1 %4308, %v5279_v38   ;;  %v5944_v19 = vpop.permute.xlu1 %2238  ;;  %v8632_v38 = vld [vmem:[#allocation41_spill] sm:$0xff]  ;;  %v5980_v40 = vadd.f32 %v3821_v51, %v991_v48  ;;  %v3822_v48 = vsel %vm1056_vm5, 1.0, %v8581_v14  ;;  %v3829_v31 = vsel %vm1159_vm6, 1.0, %v8581_v14  ;;  %v8638_v51 = vld [vmem:[#allocation46_spill] sm:$0xff]  ;;  %vm1164_vm10 = vcmp.eq.s32.totalorder %v4697_v43, %v8641_v16 }
 0x2ad   :  { %8627 = vst [vmem:[#allocation13_spill] sm:$0xff] %v5944_v19  ;;  %vm1054_vm3 = vcmp.eq.s32.totalorder %v4697_v43, %v8632_v38  ;;  %vm1162_vm8 = vcmp.eq.s32.totalorder %v4697_v43, %v8638_v51  ;;  %v3824_v38 = vsel %vm1058_vm7, 1.0, %v8581_v14  ;;  %v1104_v45 = vadd.f32 %v3822_v48, %v5895_v44  ;;  %v8645_v44 = vld [vmem:[#allocation52_spill] sm:$0xff]  ;;  %v8721_v19 = vld [vmem:[#allocation103_spill] sm:$0xff] }
 0x2ae   :  { %v6027_v36 = vadd.f32 %v3829_v31, %v1095_v52  ;;  %v3832_v60 = vsel %vm1162_vm8, 1.0, %v8581_v14  ;;  %v1106_v59 = vadd.f32 %v3824_v38, %v5910_v15  ;;  %vm1168_vm14 = vcmp.eq.s32.totalorder %v4697_v43, %v8645_v44 }
 0x2af   :  { %v5966_v62 = vpop.permute.xlu0 %2456  ;;  %4314 = vset.pattern.permute.xlu0 %v8333_v33  ;;  %v6017_v33 = vadd.f32 %v3825_v12, %v995_v3  ;;  %v3826_v3 = vsel %vm1060_vm9, 1.0, %v8581_v14  ;;  %v6046_v52 = vadd.f32 %v3832_v60, %v1098_v6  ;;  %v8648_v12 = vld [vmem:[#allocation54_spill] sm:$0xff]  ;;  %v3834_v38 = vsel %vm1164_vm10, 1.0, %v8581_v14  ;;  %v8652_v6 = vld [vmem:[#allocation56_spill] sm:$0xff] }
 0x2b0   :  { %8636 = vst [vmem:[#allocation14_spill] sm:$0xff] %v5966_v62  ;;  %2607 = vperm.xlu1 %4308, %v5295_v35   ;;  %v5977_v49 = vpop.permute.xlu1 %2244  ;;  %2904 = vperm.xlu0 %4314, %v5370_v30   ;;  %v3820_v35 = vsel %vm1054_vm3, 1.0, %v8581_v14  ;;  %v3827_v30 = vsel %vm1061_vm4, 1.0, %v8581_v14  ;;  %vm1170_vm0 = vcmp.eq.s32.totalorder %v4697_v43, %v8648_v12  ;;  %v1108_v31 = vadd.f32 %v3826_v3, %v5923_v42  ;;  %v8685_v62 = vld [vmem:[#allocation79_spill] sm:$0xff] }
 0x2b1   :  { %v1102_v41 = vadd.f32 %v3820_v35, %v5874_v50  ;;  %v6024_v39 = vadd.f32 %v3827_v30, %v997_v0  ;;  %v8643_v50 = vld [vmem:[#allocation50_spill] sm:$0xff]  ;;  %v8646_v0 = vld [vmem:[#allocation53_spill] sm:$0xff]  ;;  %v8649_v35 = vld [vmem:[#allocation55_spill] sm:$0xff]  ;;  %v8650_v30 = vmov 19   ;;  %vm1172_vm3 = vcmp.eq.s32.totalorder %v4697_v43, %v8652_v6 }
 0x2b2   :  { %vm1166_vm12 = vcmp.eq.s32.totalorder %v4697_v43, %v8643_v50  ;;  %vm1161_vm15 = vcmp.eq.s32.totalorder %v4697_v43, %v8646_v0  ;;  %vm1163_vm1 = vcmp.eq.s32.totalorder %v4697_v43, %v8649_v35  ;;  %v3838_v42 = vsel %vm1168_vm14, 1.0, %v8581_v14  ;;  %v8654_v50 = vld [vmem:[#allocation58_spill] sm:$0xff]  ;;  %v8656_v0 = vld [vmem:[#allocation59_spill] sm:$0xff] }
 0x2b3   :  { %v6014_v18 = vpop.permute.xlu0 %2465  ;;  %v3836_v60 = vsel %vm1166_vm12, 1.0, %v8581_v14  ;;  %v3840_v3 = vsel %vm1170_vm0, 1.0, %v8581_v14  ;;  %v3833_v16 = vsel %vm1163_vm1, 1.0, %v8581_v14  ;;  %vm1174_vm5 = vcmp.eq.s32.totalorder %v4697_v43, %v8654_v50 }
 0x2b4   :  { %8640 = vst [vmem:[#allocation15_spill] sm:$0xff] %v6014_v18  ;;  %2613 = vperm.xlu1 %4308, %v5311_v34   ;;  %v6021_v51 = vpop.permute.xlu1 %2250  ;;  %2913 = vperm.xlu0 %4314, %v5232_v28   ;;  %v8642_v34 = vld [vmem:[#allocation49_spill] sm:$0xff]  ;;  %v8644_v28 = vld [vmem:[#allocation51_spill] sm:$0xff]  ;;  %v6086_v12 = vadd.f32 %v3834_v38, %v1100_v32  ;;  %v3842_v35 = vsel %vm1172_vm3, 1.0, %v8581_v14  ;;  %vm1167_vm6 = vcmp.eq.s32.totalorder %v4697_v43, %v8656_v0 }
 0x2b5   :  { %vm1062_vm11 = vcmp.eq.s32.totalorder %v4697_v43, %v8642_v34  ;;  %vm1160_vm13 = vcmp.eq.s32.totalorder %v4697_v43, %v8644_v28  ;;  %v8653_v34 = vld [vmem:[#allocation57_spill] sm:$0xff]  ;;  %v6095_v6 = vadd.f32 %v3836_v60, %v1102_v41  ;;  %v1211_v38 = vadd.f32 %v3833_v16, %v5940_v47  ;;  %v8667_v16 = vld [vmem:[#allocation66_spill] sm:$0xff] }
 0x2b6   :  { %v3828_v23 = vsel %vm1062_vm11, 1.0, %v8581_v14  ;;  %vm1165_vm4 = vcmp.eq.s32.totalorder %v4697_v43, %v8653_v34  ;;  %v6117_v41 = vadd.f32 %v3842_v35, %v1108_v31  ;;  %vm1272_vm7 = vcmp.eq.s32.totalorder %v4697_v43, %v5063_v57  ;;  %v8664_v31 = vld [vmem:[#allocation64_spill] sm:$0xff]  ;;  %v8669_v35 = vld [vmem:[#allocation67_spill] sm:$0xff] }
 0x2b7   :  { %v6044_v15 = vpop.permute.xlu0 %2471  ;;  %v1110_v44 = vadd.f32 %v3828_v23, %v5931_v2  ;;  %v6106_v2 = vadd.f32 %v3840_v3, %v1106_v59  ;;  %v8662_v59 = vld [vmem:[#allocation62_spill] sm:$0xff]  ;;  %v8663_v23 = vld [vmem:[#allocation63_spill] sm:$0xff]  ;;  %vm1173_vm12 = vcmp.eq.s32.totalorder %v4697_v43, %v8664_v31  ;;  %v8666_v3 = vld [vmem:[#allocation65_spill] sm:$0xff]  ;;  %vm1271_vm14 = vcmp.eq.s32.totalorder %v4697_v43, %v8667_v16 }
 0x2b8   :  { %8647 = vst [vmem:[#allocation16_spill] sm:$0xff] %v6044_v15  ;;  %4311 = vset.pattern.permute.xlu1 %v8650_v30  ;;  %v6053_v48 = vpop.permute.xlu1 %2256  ;;  %2919 = vperm.xlu0 %4314, %v5243_v27   ;;  %v3830_v27 = vsel %vm1160_vm13, 1.0, %v8581_v14  ;;  %v6100_v15 = vadd.f32 %v3838_v42, %v1104_v45  ;;  %v8661_v45 = vld [vmem:[#allocation61_spill] sm:$0xff]  ;;  %vm1171_vm10 = vcmp.eq.s32.totalorder %v4697_v43, %v8662_v59 }
 0x2b9   :  { %8651 = vst [vmem:[#allocation17_spill] sm:$0xff] %v6053_v48  ;;  %2683 = vperm.xlu1 %4311, %v5273_v37   ;;  %v3831_v37 = vsel %vm1161_vm15, 1.0, %v8581_v14  ;;  %v6098_v13 = vadd.f32 %v3830_v27, %v5934_v1  ;;  %v3844_v1 = vsel %vm1174_vm5, 1.0, %v8581_v14  ;;  %vm1275_vm9 = vcmp.eq.s32.totalorder %v4697_v43, %v8661_v45  ;;  %v6139_v27 = vld [vmem:[%s8260_s1 + $0x48] sm:$0xff]  ;;  %v6152_v34 = vld [vmem:[%s8260_s1 + $0x20] sm:$0xff] }
 0x2ba   :  { %v6103_v32 = vadd.f32 %v3831_v37, %v5970_v21  ;;  %v3837_v21 = vsel %vm1167_vm6, 1.0, %v8581_v14  ;;  %vm1277_vm11 = vcmp.eq.s32.totalorder %v4697_v43, %v8663_v23  ;;  %v6143_v37 = vadd.f32 %v3844_v1, %v1110_v44  ;;  %v8671_v45 = vld [vmem:[#allocation68_spill] sm:$0xff]  ;;  %v8672_v59 = vld [vmem:[#allocation69_spill] sm:$0xff] }
 0x2bb   :  { %v6084_v28 = vpop.permute.xlu0 %2477  ;;  %8658 = vst [vmem:[#allocation20_spill] sm:$0xff] %v6098_v13  ;;  %vm1279_vm13 = vcmp.eq.s32.totalorder %v4697_v43, %v8666_v3  ;;  %v1215_v50 = vadd.f32 %v3837_v21, %v5980_v40  ;;  %vm1281_vm15 = vcmp.eq.s32.totalorder %v4697_v43, %v8669_v35  ;;  %v3849_v0 = vsel %vm1275_vm9, 1.0, %v8581_v14  ;;  %v6197_v23 = vld [vmem:[%s8260_s1 + $0x58] sm:$0xff]  ;;  %v8674_v35 = vld [vmem:[#allocation70_spill] sm:$0xff] }
 0x2bc   :  { %8655 = vst [vmem:[#allocation18_spill] sm:$0xff] %v6084_v28  ;;  %v6092_v30 = vpop.permute.xlu1 %2262  ;;  %2925 = vperm.xlu0 %4314, %v5254_v25   ;;  %v3835_v25 = vsel %vm1165_vm4, 1.0, %v8581_v14  ;;  %v3841_v57 = vsel %vm1171_vm10, 1.0, %v8581_v14  ;;  %v3851_v40 = vsel %vm1277_vm11, 1.0, %v8581_v14  ;;  %v3853_v21 = vsel %vm1279_vm13, 1.0, %v8581_v14  ;;  %v6209_v13 = vld [vmem:[%s8260_s1 + $0x30] sm:$0xff] }
 0x2bd   :  { %8657 = vst [vmem:[#allocation19_spill] sm:$0xff] %v6092_v30  ;;  %2686 = vperm.xlu1 %4311, %v5340_v29   ;;  %v8659_v29 = vld [vmem:[#allocation60_spill] sm:$0xff]  ;;  %v1213_v42 = vadd.f32 %v3835_v25, %v5958_v7  ;;  %v6160_v7 = vsel %vm1272_vm7, 1.0, %v8581_v14  ;;  %v3843_v25 = vsel %vm1173_vm12, 1.0, %v8581_v14  ;;  %vm1273_vm0 = vcmp.eq.s32.totalorder %v4697_v43, %v8671_v45  ;;  %v8710_v30 = vld [vmem:[#allocation97_spill] sm:$0xff] }
 0x2be   :  { %vm1169_vm8 = vcmp.eq.s32.totalorder %v4697_v43, %v8659_v29  ;;  %8668 = vst [vmem:[#allocation23_spill] sm:$0xff] %v6160_v7  ;;  %v3845_v29 = vsel %vm1271_vm14, 1.0, %v8581_v14  ;;  %vm1283_vm1 = vcmp.eq.s32.totalorder %v4697_v43, %v8672_v59  ;;  %v3855_v16 = vsel %vm1281_vm15, 1.0, %v8581_v14  ;;  %v8675_v7 = vld [vmem:[#allocation71_spill] sm:$0xff] }
 0x2bf   :  { %v6124_v47 = vpop.permute.xlu0 %2483  ;;  %v3839_v44 = vsel %vm1169_vm8, 1.0, %v8581_v14  ;;  %vm1274_vm3 = vcmp.eq.s32.totalorder %v4697_v43, %v8674_v35  ;;  %vm1285_vm4 = vcmp.eq.s32.totalorder %v4697_v43, %v8675_v7  ;;  %v6218_v28 = vadd.f32 %v3853_v21, %v1215_v50  ;;  %v8677_v50 = vld [vmem:[#allocation72_spill] sm:$0xff] }
 0x2c0   :  { %8660 = vst [vmem:[#allocation21_spill] sm:$0xff] %v6124_v47  ;;  %v6134_v60 = vpop.permute.xlu1 %2268  ;;  %2931 = vperm.xlu0 %4314, %v6139_v27   ;;  %v1217_v31 = vadd.f32 %v3839_v44, %v6009_v46  ;;  %v1219_v47 = vadd.f32 %v3841_v57, %v6017_v33  ;;  %v6215_v46 = vadd.f32 %v3851_v40, %v1213_v42  ;;  %v3847_v7 = vsel %vm1273_vm0, 1.0, %v8581_v14  ;;  %v8678_v57 = vld [vmem:[#allocation73_spill] sm:$0xff]  ;;  %v8679_v40 = vld [vmem:[#allocation74_spill] sm:$0xff]  ;;  %v8681_v21 = vld [vmem:[#allocation76_spill] sm:$0xff] }
 0x2c1   :  { %8665 = vst [vmem:[#allocation22_spill] sm:$0xff] %v6134_v60  ;;  %2692 = vperm.xlu1 %4311, %v6152_v34   ;;  %v1221_v44 = vadd.f32 %v3843_v25, %v6024_v39  ;;  %v1319_v35 = vadd.f32 %v3845_v29, %v6027_v36  ;;  %v3848_v39 = vsel %vm1274_vm3, 1.0, %v8581_v14  ;;  %v3859_v42 = vsel %vm1285_vm4, 1.0, %v8581_v14  ;;  %v6240_v36 = vld [vmem:[%s8260_s1 + $0x68] sm:$0xff]  ;;  %v8680_v25 = vld [vmem:[#allocation75_spill] sm:$0xff]  ;;  %v6254_v29 = vld [vmem:[%s8260_s1 + $0x40] sm:$0xff] }
 0x2c2   :  { %v6231_v33 = vadd.f32 %v3855_v16, %v1217_v31  ;;  %vm1276_vm5 = vcmp.eq.s32.totalorder %v4697_v43, %v8677_v50  ;;  %vm1383_vm6 = vcmp.eq.s32.totalorder %v4697_v43, %v8678_v57  ;;  %vm1278_vm7 = vcmp.eq.s32.totalorder %v4697_v43, %v8679_v40  ;;  %v8683_v16 = vld [vmem:[#allocation77_spill] sm:$0xff] }
 0x2c3   :  { %v6184_v1 = vpop.permute.xlu0 %2489  ;;  %vm1386_vm8 = vcmp.eq.s32.totalorder %v4697_v43, %v8680_v25  ;;  %vm1280_vm9 = vcmp.eq.s32.totalorder %v4697_v43, %v8681_v21  ;;  %v6260_v59 = vadd.f32 %v3847_v7, %v6103_v32  ;;  %vm1388_vm10 = vcmp.eq.s32.totalorder %v4697_v43, %v8683_v16  ;;  %v6298_v7 = vld [vmem:[%s8260_s1 + $0x78] sm:$0xff]  ;;  %v8689_v25 = vld [vmem:[#allocation81_spill] sm:$0xff]  ;;  %v8690_v21 = vld [vmem:[#allocation82_spill] sm:$0xff] }
 0x2c4   :  { %8670 = vst [vmem:[#allocation24_spill] sm:$0xff] %v6184_v1  ;;  %v6192_v3 = vpop.permute.xlu1 %2274  ;;  %2937 = vperm.xlu0 %4314, %v6197_v23   ;;  %v6212_v1 = vadd.f32 %v3849_v0, %v1211_v38  ;;  %v3857_v38 = vsel %vm1283_vm1, 1.0, %v8581_v14  ;;  %v1322_v11 = vadd.f32 %v3848_v39, %v6046_v52  ;;  %v6269_v18 = vadd.f32 %v3859_v42, %v1221_v44  ;;  %v8687_v39 = vld [vmem:[#allocation80_spill] sm:$0xff]  ;;  %v6308_v42 = vld [vmem:[%s8260_s1 + $0x50] sm:$0xff] }
 0x2c5   :  { %8673 = vst [vmem:[#allocation25_spill] sm:$0xff] %v6192_v3  ;;  %2698 = vperm.xlu1 %4311, %v6209_v13   ;;  %v6262_v31 = vadd.f32 %v3857_v38, %v1219_v47  ;;  %vm1390_vm12 = vcmp.eq.s32.totalorder %v4697_v43, %v8685_v62  ;;  %v3861_v47 = vsel %vm1383_vm6, 1.0, %v8581_v14  ;;  %v3852_v52 = vsel %vm1278_vm7, 1.0, %v8581_v14  ;;  %v8691_v3 = vld [vmem:[#allocation83_spill] sm:$0xff] }
 0x2c6   :  { %v3864_v44 = vsel %vm1386_vm8, 1.0, %v8581_v14  ;;  %v3854_v62 = vsel %vm1280_vm9, 1.0, %v8581_v14  ;;  %v3866_v38 = vsel %vm1388_vm10, 1.0, %v8581_v14  ;;  %vm1284_vm13 = vcmp.eq.s32.totalorder %v4697_v43, %v8687_v39 }
 0x2c7   :  { %v6229_v0 = vpop.permute.xlu0 %2495  ;;  %v3868_v40 = vsel %vm1390_vm12, 1.0, %v8581_v14  ;;  %vm1392_vm14 = vcmp.eq.s32.totalorder %v4697_v43, %v8689_v25  ;;  %vm1286_vm15 = vcmp.eq.s32.totalorder %v4697_v43, %v8690_v21  ;;  %v6319_v16 = vadd.f32 %v3861_v47, %v1319_v35  ;;  %v8693_v47 = vld [vmem:[#allocation85_spill] sm:$0xff] }
 0x2c8   :  { %8676 = vst [vmem:[#allocation26_spill] sm:$0xff] %v6229_v0  ;;  %2943 = vperm.xlu0 %4314, %v6240_v36   ;;  %v8684_v0 = vld [vmem:[#allocation78_spill] sm:$0xff]  ;;  %v1326_v39 = vadd.f32 %v3852_v52, %v6095_v6  ;;  %vm1394_vm0 = vcmp.eq.s32.totalorder %v4697_v43, %v8691_v3  ;;  %v3858_v25 = vsel %vm1284_vm13, 1.0, %v8581_v14  ;;  %v8347_v21 = vmov 22  }
 0x2c9   :  { %2704 = vperm.xlu1 %4311, %v6254_v29   ;;  %v6257_v45 = vpop.permute.xlu1 %2344  ;;  %vm1282_vm11 = vcmp.eq.s32.totalorder %v4697_v43, %v8684_v0  ;;  %v3860_v6 = vsel %vm1286_vm15, 1.0, %v8581_v14  ;;  %vm1396_vm1 = vcmp.eq.s32.totalorder %v4697_v43, %v8693_v47  ;;  %v6351_v52 = vld [vmem:[%s8260_s1 + $0x8] sm:$0xff] }
 0x2ca   :  { %8682 = vst [vmem:[#allocation27_spill] sm:$0xff] %v6257_v45  ;;  %v3850_v45 = vsel %vm1276_vm5, 1.0, %v8581_v14  ;;  %v3856_v0 = vsel %vm1282_vm11, 1.0, %v8581_v14  ;;  %v6334_v35 = vadd.f32 %v3868_v40, %v1326_v39  ;;  %v8698_v40 = vld [vmem:[#allocation87_spill] sm:$0xff]  ;;  %v8699_v39 = vld [vmem:[#allocation90_spill] sm:$0xff]  ;;  %v1334_v3 = vadd.f32 %v3860_v6, %v6143_v37 }
 0x2cb   :  { %v6277_v32 = vpop.permute.xlu0 %2501  ;;  %v1324_v57 = vadd.f32 %v3850_v45, %v6086_v12  ;;  %v1330_v45 = vadd.f32 %v3856_v0, %v6106_v2  ;;  %v1332_v0 = vadd.f32 %v3858_v25, %v6117_v41  ;;  %vm1398_vm6 = vcmp.eq.s32.totalorder %v4697_v43, %v8698_v40  ;;  %v6386_v37 = vld [vmem:[%s8260_s1 + $0x70] sm:$0xff] }
 0x2cc   :  { %8686 = vst [vmem:[#allocation28_spill] sm:$0xff] %v6277_v32  ;;  %2949 = vperm.xlu0 %4314, %v6298_v7   ;;  %v6322_v32 = vadd.f32 %v3864_v44, %v1322_v11  ;;  %v3870_v11 = vsel %vm1392_vm14, 1.0, %v8581_v14  ;;  %v3872_v44 = vsel %vm1394_vm0, 1.0, %v8581_v14  ;;  %vm1389_vm7 = vcmp.eq.s32.totalorder %v4697_v43, %v8699_v39  ;;  %v8707_v39 = vld [vmem:[#allocation95_spill] sm:$0xff] }
 0x2cd   :  { %2710 = vperm.xlu1 %4311, %v6308_v42   ;;  %v6311_v50 = vpop.permute.xlu1 %2350  ;;  %v6327_v12 = vadd.f32 %v3866_v38, %v1324_v57  ;;  %v8696_v38 = vld [vmem:[#allocation88_spill] sm:$0xff]  ;;  %v6377_v41 = vadd.f32 %v3872_v44, %v1330_v45  ;;  %v3876_v6 = vsel %vm1398_vm6, 1.0, %v8581_v14  ;;  %v3867_v44 = vsel %vm1389_vm7, 1.0, %v8581_v14 }
 0x2ce   :  { %8688 = vst [vmem:[#allocation29_spill] sm:$0xff] %v6311_v50  ;;  %v1328_v50 = vadd.f32 %v3854_v62, %v6100_v15  ;;  %v6343_v15 = vld [vmem:[%s8260_s1 + $0x60] sm:$0xff]  ;;  %v8695_v62 = vld [vmem:[#allocation86_spill] sm:$0xff]  ;;  %vm1387_vm4 = vcmp.eq.s32.totalorder %v4697_v43, %v8696_v38  ;;  %vm1503_vm12 = vcmp.eq.s32.totalorder %v4697_v43, %v8707_v39  ;;  %v6434_v26 = vadd.f32 %v3876_v6, %v1334_v3 }
 0x2cf   :  { %vm1385_vm3 = vcmp.eq.s32.totalorder %v4697_v43, %v8695_v62  ;;  %v8697_v57 = vld [vmem:[#allocation84_spill] sm:$0xff]  ;;  %v3874_v62 = vsel %vm1396_vm1, 1.0, %v8581_v14  ;;  %vm1505_vm14 = vcmp.eq.s32.totalorder %v4697_v43, %v8710_v30  ;;  %vm1607_vm6 = vcmp.eq.s32.totalorder %v4697_v43, %v8721_v19 }
 0x2d0   :  { %v6331_v60 = vpop.permute.xlu0 %2571  ;;  %4317 = vset.pattern.permute.xlu0 %v8347_v21  ;;  %vm1384_vm5 = vcmp.eq.s32.totalorder %v4697_v43, %v8697_v57  ;;  %v6369_v47 = vadd.f32 %v3870_v11, %v1328_v50  ;;  %v8700_v21 = vld [vmem:[#allocation91_spill] sm:$0xff]  ;;  %v3863_v25 = vsel %vm1385_vm3, 1.0, %v8581_v14  ;;  %v8352_v11 = vmov 23   ;;  %v8715_v6 = vld [vmem:[#allocation104_spill] sm:$0xff] }
 0x2d1   :  { %8692 = vst [vmem:[#allocation30_spill] sm:$0xff] %v6331_v60  ;;  %2716 = vperm.xlu1 %4311, %v6343_v15   ;;  %v6346_v2 = vpop.permute.xlu1 %2353  ;;  %3019 = vperm.xlu0 %4317, %v6351_v52   ;;  %vm1499_vm8 = vcmp.eq.s32.totalorder %v4697_v43, %v8700_v21  ;;  %v3865_v60 = vsel %vm1387_vm4, 1.0, %v8581_v14  ;;  %v6396_v45 = vsel %vm1384_vm5, 1.0, %v8581_v14  ;;  %v6414_v57 = vadd.f32 %v3874_v62, %v1332_v0  ;;  %v8708_v62 = vld [vmem:[#allocation96_spill] sm:$0xff] }
 0x2d2   :  { %8694 = vst [vmem:[#allocation31_spill] sm:$0xff] %v6346_v2  ;;  %v8702_v2 = vld [vmem:[#allocation92_spill] sm:$0xff]  ;;  %8704 = vst [vmem:[#allocation34_spill] sm:$0xff] %v6396_v45  ;;  %v3881_v40 = vsel %vm1499_vm8, 1.0, %v8581_v14  ;;  %v8706_v45 = vld [vmem:[#allocation94_spill] sm:$0xff]  ;;  %vm1395_vm13 = vcmp.eq.s32.totalorder %v4697_v43, %v8708_v62  ;;  %vm1498_vm1 = vcmp.eq.s32.totalorder %v4697_v43, %v8715_v6 }
 0x2d3   :  { %vm1391_vm9 = vcmp.eq.s32.totalorder %v4697_v43, %v8702_v2  ;;  %vm1393_vm11 = vcmp.eq.s32.totalorder %v4697_v43, %v8706_v45  ;;  %v1437_v45 = vadd.f32 %v3867_v44, %v6215_v46  ;;  %v6453_v46 = vld [vmem:[%s8260_s1 + $0x10] sm:$0xff]  ;;  %v3873_v3 = vsel %vm1395_vm13, 1.0, %v8581_v14 }
 0x2d4   :  { %v6375_v38 = vpop.permute.xlu0 %2580  ;;  %v3869_v0 = vsel %vm1391_vm9, 1.0, %v8581_v14  ;;  %v3871_v2 = vsel %vm1393_vm11, 1.0, %v8581_v14 }
 0x2d5   :  { %8701 = vst [vmem:[#allocation32_spill] sm:$0xff] %v6375_v38  ;;  %2722 = vperm.xlu1 %4311, %v6386_v37   ;;  %v6389_v50 = vpop.permute.xlu1 %2359  ;;  %4318 = vset.pattern.permute.xlu0 %v8352_v11  ;;  %v6411_v11 = vld [vmem:[%s8260_s1] sm:$0xff]  ;;  %v1435_v38 = vadd.f32 %v3865_v60, %v6212_v1  ;;  %v8711_v60 = vmov 20   ;;  %v1439_v30 = vadd.f32 %v3869_v0, %v6218_v28 }
 0x2d6   :  { %8703 = vst [vmem:[#allocation33_spill] sm:$0xff] %v6389_v50  ;;  %v8705_v50 = vld [vmem:[#allocation93_spill] sm:$0xff]  ;;  %3128 = vperm.xlu0 %4318, %v6411_v11   ;;  %v1441_v0 = vadd.f32 %v3871_v2, %v6231_v33  ;;  %v6491_v33 = vld [vmem:[%s8260_s1 + $0x18] sm:$0xff] }
 0x2d7   :  { %vm1501_vm10 = vcmp.eq.s32.totalorder %v4697_v43, %v8705_v50  ;;  %v1433_v50 = vadd.f32 %v3863_v25, %v6260_v59  ;;  %v6443_v59 = vadd.f32 %v3881_v40, %v1435_v38  ;;  %v3885_v25 = vsel %vm1503_vm12, 1.0, %v8581_v14  ;;  %v8714_v38 = vld [vmem:[#allocation99_spill] sm:$0xff]  ;;  %v8722_v2 = vld [vmem:[#allocation105_spill] sm:$0xff] }
 0x2d8   :  { %v6432_v21 = vpop.permute.xlu0 %2586  ;;  %v3883_v39 = vsel %vm1501_vm10, 1.0, %v8581_v14  ;;  %vm1507_vm0 = vcmp.eq.s32.totalorder %v4697_v43, %v8714_v38  ;;  %v3887_v40 = vsel %vm1505_vm14, 1.0, %v8581_v14  ;;  %v6475_v62 = vadd.f32 %v3885_v25, %v1439_v30 }
 0x2d9   :  { %8709 = vst [vmem:[#allocation35_spill] sm:$0xff] %v6432_v21  ;;  %4312 = vset.pattern.permute.xlu1 %v8711_v60  ;;  %v6441_v1 = vpop.permute.xlu1 %2365  ;;  %v8713_v21 = vld [vmem:[#allocation98_spill] sm:$0xff]  ;;  %v6465_v44 = vadd.f32 %v3883_v39, %v1437_v45  ;;  %v8717_v60 = vld [vmem:[#allocation101_spill] sm:$0xff]  ;;  %v1443_v39 = vadd.f32 %v3873_v3, %v6262_v31  ;;  %v3889_v6 = vsel %vm1507_vm0, 1.0, %v8581_v14  ;;  %vm1610_vm7 = vcmp.eq.s32.totalorder %v4697_v43, %v8722_v2 }
 0x2da   :  { %8712 = vst [vmem:[#allocation36_spill] sm:$0xff] %v6441_v1  ;;  %vm1397_vm15 = vcmp.eq.s32.totalorder %v4697_v43, %v8713_v21  ;;  %2792 = vperm.xlu1 %4312, %v6411_v11   ;;  %3134 = vperm.xlu0 %4318, %v6453_v46   ;;  %v8716_v21 = vld [vmem:[#allocation100_spill] sm:$0xff]  ;;  %vm1509_vm4 = vcmp.eq.s32.totalorder %v4697_v43, %v8717_v60  ;;  %v8719_v1 = vld [vmem:[#allocation102_spill] sm:$0xff]  ;;  %v3893_v60 = vsel %vm1607_vm6, 1.0, %v8581_v14 }
 0x2db   :  { %vm1495_vm3 = vcmp.eq.s32.totalorder %v4697_v43, %v8716_v21  ;;  %v3875_v38 = vsel %vm1397_vm15, 1.0, %v8581_v14  ;;  %vm1497_vm5 = vcmp.eq.s32.totalorder %v4697_v43, %v8719_v1  ;;  %v6494_v1 = vadd.f32 %v3887_v40, %v1441_v0  ;;  %v8723_v3 = vld [vmem:[#allocation106_spill] sm:$0xff]  ;;  %v8724_v40 = vld [vmem:[#allocation108_spill] sm:$0xff] }
 0x2dc   :  { %v6472_v28 = vpop.permute.xlu0 %2592  ;;  %v3877_v31 = vsel %vm1495_vm3, 1.0, %v8581_v14  ;;  %v3891_v19 = vsel %vm1509_vm4, 1.0, %v8581_v14  ;;  %v1445_v25 = vadd.f32 %v3875_v38, %v6269_v18  ;;  %v3879_v30 = vsel %vm1497_vm5, 1.0, %v8581_v14 }
 0x2dd   :  { %8718 = vst [vmem:[#allocation37_spill] sm:$0xff] %v6472_v28  ;;  %v6480_v45 = vpop.permute.xlu1 %2371  ;;  %v3880_v28 = vsel %vm1498_vm1, 1.0, %v8581_v14  ;;  %vm1500_vm8 = vcmp.eq.s32.totalorder %v4697_v43, %v8723_v3  ;;  %vm1502_vm9 = vcmp.eq.s32.totalorder %v4697_v43, %v8724_v40  ;;  %v6514_v0 = vadd.f32 %v3889_v6, %v1443_v39  ;;  %v8728_v40 = vld [vmem:[#allocation112_spill] sm:$0xff]  ;;  %v8730_v6 = vld [vmem:[#allocation107_spill] sm:$0xff] }
 0x2de   :  { %8720 = vst [vmem:[#allocation38_spill] sm:$0xff] %v6480_v45  ;;  %2798 = vperm.xlu1 %4312, %v6453_v46   ;;  %3137 = vperm.xlu0 %4318, %v6491_v33   ;;  %v1546_v45 = vadd.f32 %v3880_v28, %v6322_v32  ;;  %vm1504_vm10 = vcmp.eq.s32.totalorder %v4697_v43, %v8726_v8  ;;  %v3896_v3 = vsel %vm1610_vm7, 1.0, %v8581_v14  ;;  %v3882_v32 = vsel %vm1500_vm8, 1.0, %v8581_v14  ;;  %v8729_v28 = vld [vmem:[#allocation114_spill] sm:$0xff] }
 0x2df   :  { %v1543_v38 = vadd.f32 %v3877_v31, %v6319_v16  ;;  %v6523_v2 = vadd.f32 %v3891_v19, %v1445_v25  ;;  %vm1506_vm11 = vcmp.eq.s32.totalorder %v4697_v43, %v8728_v40  ;;  %v6530_v39 = vadd.f32 %v3879_v30, %v1433_v50  ;;  %v8731_v31 = vld [vmem:[#allocation109_spill] sm:$0xff]  ;;  %v8732_v50 = vld [vmem:[#allocation111_spill] sm:$0xff]  ;;  %v8733_v40 = vld [vmem:[#allocation116_spill] sm:$0xff] }
 0x2e0   :  { %v6512_v21 = vpop.permute.xlu0 %2598  ;;  %v3884_v8 = vsel %vm1502_vm9, 1.0, %v8581_v14  ;;  %vm1508_vm12 = vcmp.eq.s32.totalorder %v4697_v43, %v8729_v28  ;;  %vm1612_vm13 = vcmp.eq.s32.totalorder %v4697_v43, %v8730_v6  ;;  %vm1614_vm14 = vcmp.eq.s32.totalorder %v4697_v43, %v8731_v31 }
 0x2e1   :  { %8725 = vst [vmem:[#allocation39_spill] sm:$0xff] %v6512_v21  ;;  %v6520_v18 = vpop.permute.xlu1 %2377  ;;  %v6536_v16 = vadd.f32 %v3893_v60, %v1543_v38  ;;  %v3886_v19 = vsel %vm1504_vm10, 1.0, %v8581_v14  ;;  %v6543_v25 = vadd.f32 %v3896_v3, %v1546_v45  ;;  %vm1616_vm15 = vcmp.eq.s32.totalorder %v4697_v43, %v8732_v50  ;;  %v8736_v21 = vld [vmem:[#allocation113_spill] sm:$0xff] }
 0x2e2   :  { %8727 = vst [vmem:[#allocation40_spill] sm:$0xff] %v6520_v18  ;;  %2801 = vperm.xlu1 %4312, %v6491_v33   ;;  %3140 = vperm.xlu0 %4318, %v6152_v34   ;;  %v3888_v30 = vsel %vm1506_vm11, 1.0, %v8581_v14  ;;  %vm1510_vm0 = vcmp.eq.s32.totalorder %v4697_v43, %v8733_v40  ;;  %v1548_v28 = vadd.f32 %v3882_v32, %v6327_v12  ;;  %v3890_v45 = vsel %vm1508_vm12, 1.0, %v8581_v14  ;;  %v6562_v3 = vld [vmem:[%s8260_s1 + $0x28] sm:$0xff]  ;;  %v8738_v32 = vld [vmem:[#allocation115_spill] sm:$0xff] }
 0x2e3   :  { %v1550_v18 = vadd.f32 %v3884_v8, %v6334_v35  ;;  %vm1618_vm1 = vcmp.eq.s32.totalorder %v4697_v43, %v8736_v21  ;;  %8737 = vst [vmem:[#allocation43_spill] sm:$0xff] %v6562_v3  ;;  %v3898_v12 = vsel %vm1612_vm13, 1.0, %v8581_v14  ;;  %v3900_v35 = vsel %vm1614_vm14, 1.0, %v8581_v14 }
 0x2e4   :  { %v6552_v38 = vpop.permute.xlu0 %2604  ;;  %v1552_v21 = vadd.f32 %v3886_v19, %v6369_v47  ;;  %vm1620_vm3 = vcmp.eq.s32.totalorder %v4697_v43, %v8738_v32  ;;  %v3902_v8 = vsel %vm1616_vm15, 1.0, %v8581_v14  ;;  %v3892_v6 = vsel %vm1510_vm0, 1.0, %v8581_v14  ;;  %v8740_v19 = vld [vmem:[#allocation117_spill] sm:$0xff]  ;;  %v8741_v32 = vld [vmem:[#allocation124_spill] sm:$0xff] }
 0x2e5   :  { %v6550_v60 = vpop.permute.xlu1 %2383  ;;  %8735 = vst [vmem:[#allocation42_spill] sm:$0xff] %v6552_v38  ;;  %v8739_v38 = vld [vmem:[#allocation122_spill] sm:$0xff]  ;;  %v3904_v47 = vsel %vm1618_vm1, 1.0, %v8581_v14  ;;  %v1556_v31 = vadd.f32 %v3890_v45, %v6414_v57  ;;  %vm1622_vm5 = vcmp.eq.s32.totalorder %v4697_v43, %v8740_v19  ;;  %vm1613_vm6 = vcmp.eq.s32.totalorder %v4697_v43, %v8741_v32  ;;  %v6606_v57 = vld [vmem:[%s8260_s1 + $0x38] sm:$0xff] }
 0x2e6   :  { %8734 = vst [vmem:[#allocation41_spill] sm:$0xff] %v6550_v60  ;;  %2807 = vperm.xlu1 %4312, %v6562_v3   ;;  %3143 = vperm.xlu0 %4318, %v6562_v3   ;;  %v1554_v60 = vadd.f32 %v3888_v30, %v6377_v41  ;;  %vm1611_vm4 = vcmp.eq.s32.totalorder %v4697_v43, %v8739_v38  ;;  %v3906_v40 = vsel %vm1620_vm3, 1.0, %v8581_v14  ;;  %v8743_v3 = vld [vmem:[#allocation120_spill] sm:$0xff]  ;;  %8744 = vst [vmem:[#allocation45_spill] sm:$0xff] %v6606_v57  ;;  %v8745_v45 = vld [vmem:[#allocation126_spill] sm:$0xff] }
 0x2e7   :  { %v6596_v41 = vadd.f32 %v3898_v12, %v1548_v28  ;;  %v6598_v30 = vadd.f32 %v3900_v35, %v1550_v18  ;;  %vm1609_vm7 = vcmp.eq.s32.totalorder %v4697_v43, %v8743_v3  ;;  %v6610_v38 = vadd.f32 %v3902_v8, %v1552_v21  ;;  %v6630_v21 = vpop.f32.mrf.mxu1  ;;  %v8752_v32 = vld [vmem:[#allocation132_spill] sm:$0xff] }
 0x2e8   :  { %v1558_v28 = vadd.f32 %v3892_v6, %v6434_v26  ;;  %v3897_v18 = vsel %vm1611_vm4, 1.0, %v8581_v14  ;;  %vm1615_vm8 = vcmp.eq.s32.totalorder %v4697_v43, %v8745_v45  ;;  %v6616_v12 = vpop.permute.xlu0 %2610  ;;  %v6618_v3 = vadd.f32 %v3904_v47, %v1554_v60  ;;  %8748 = vst [vmem:[#allocation47_spill] sm:$0xff] %v6630_v21  ;;  %v8749_v6 = vld [vmem:[#allocation123_spill] sm:$0xff]  ;;  %v8750_v47 = vld [vmem:[#allocation128_spill] sm:$0xff]  ;;  %v8751_v45 = vld [vmem:[#allocation130_spill] sm:$0xff] }
 0x2e9   :  { %v6594_v50 = vpop.permute.xlu1 %2389  ;;  %8746 = vst [vmem:[#allocation46_spill] sm:$0xff] %v6616_v12  ;;  %v3908_v35 = vsel %vm1622_vm5, 1.0, %v8581_v14  ;;  %v3899_v26 = vsel %vm1613_vm6, 1.0, %v8581_v14  ;;  %v6632_v8 = vadd.f32 %v3906_v40, %v1556_v31  ;;  %v3895_v60 = vsel %vm1609_vm7, 1.0, %v8581_v14 }
 0x2ea   :  { %8742 = vst [vmem:[#allocation44_spill] sm:$0xff] %v6594_v50  ;;  %2813 = vperm.xlu1 %4312, %v6606_v57   ;;  %3146 = vperm.xlu0 %4318, %v6209_v13   ;;  %v8747_v50 = vld [vmem:[#allocation121_spill] sm:$0xff]  ;;  %vm1725_vm10 = vcmp.eq.s32.totalorder %v4697_v43, %v8749_v6  ;;  %vm1617_vm11 = vcmp.eq.s32.totalorder %v4697_v43, %v8750_v47 }
 0x2eb   :  { %vm1723_vm9 = vcmp.eq.s32.totalorder %v4697_v43, %v8747_v50  ;;  %v1659_v19 = vadd.f32 %v3897_v18, %v6443_v59  ;;  %v3901_v50 = vsel %vm1615_vm8, 1.0, %v8581_v14  ;;  %vm1619_vm12 = vcmp.eq.s32.totalorder %v4697_v43, %v8751_v45  ;;  %v8754_v18 = vld [vmem:[#allocation125_spill] sm:$0xff] }
 0x2ec   :  { %vm1621_vm13 = vcmp.eq.s32.totalorder %v4697_v43, %v8752_v32  ;;  %v6649_v40 = vadd.f32 %v3908_v35, %v1558_v28  ;;  %v3913_v6 = vsel %vm1723_vm9, 1.0, %v8581_v14  ;;  %v1661_v59 = vadd.f32 %v3899_v26, %v6465_v44  ;;  %v8757_v35 = vld [vmem:[#allocation127_spill] sm:$0xff] }
 0x2ed   :  { %vm1727_vm14 = vcmp.eq.s32.totalorder %v4697_v43, %v8754_v18  ;;  %v1657_v47 = vadd.f32 %v3895_v60, %v6530_v39  ;;  %v3915_v12 = vsel %vm1725_vm10, 1.0, %v8581_v14  ;;  %v3903_v9 = vsel %vm1617_vm11, 1.0, %v8581_v14  ;;  %v6673_v26 = vpop.permute.xlu0 %2680 }
 0x2ee   :  { %2819 = vperm.xlu1 %4312, %v6139_v27   ;;  %v6646_v31 = vpop.permute.xlu1 %2459  ;;  %3149 = vperm.xlu0 %4318, %v6606_v57   ;;  %vm1719_vm15 = vcmp.eq.s32.totalorder %v4697_v43, %v8755_v17  ;;  %v1663_v28 = vadd.f32 %v3901_v50, %v6475_v62  ;;  %vm1729_vm0 = vcmp.eq.s32.totalorder %v4697_v43, %v8757_v35  ;;  %v3905_v44 = vsel %vm1619_vm12, 1.0, %v8581_v14  ;;  %v8759_v62 = vld [vmem:[#allocation129_spill] sm:$0xff]  ;;  %v8760_v50 = vld [vmem:[#allocation131_spill] sm:$0xff] }
 0x2ef   :  { %8753 = vst [vmem:[#allocation48_spill] sm:$0xff] %v6646_v31  ;;  %v6660_v31 = vpop.f32.mrf.mxu1  ;;  %v3907_v39 = vsel %vm1621_vm13, 1.0, %v8581_v14  ;;  %8758 = vst [vmem:[#allocation50_spill] sm:$0xff] %v6673_v26  ;;  %v6675_v60 = vadd.f32 %v3913_v6, %v1659_v19  ;;  %v3917_v18 = vsel %vm1727_vm14, 1.0, %v8581_v14  ;;  %vm1731_vm1 = vcmp.eq.s32.totalorder %v4697_v43, %v8759_v62  ;;  %v8762_v6 = vld [vmem:[#allocation138_spill] sm:$0xff] }
 0x2f0   :  { %8756 = vst [vmem:[#allocation49_spill] sm:$0xff] %v6660_v31  ;;  %vm1733_vm3 = vcmp.eq.s32.totalorder %v4697_v43, %v8760_v50  ;;  %v6686_v32 = vadd.f32 %v3915_v12, %v1661_v59  ;;  %v1665_v35 = vadd.f32 %v3903_v9, %v6494_v1  ;;  %v3909_v19 = vsel %vm1719_vm15, 1.0, %v8581_v14  ;;  %v8765_v59 = vld [vmem:[#allocation136_spill] sm:$0xff] }
 0x2f1   :  { %vm1722_vm4 = vcmp.eq.s32.totalorder %v4697_v43, %v8762_v6  ;;  %v3919_v62 = vsel %vm1729_vm0, 1.0, %v8581_v14  ;;  %v1667_v50 = vadd.f32 %v3905_v44, %v6514_v0  ;;  %v1669_v26 = vadd.f32 %v3907_v39, %v6523_v2  ;;  %v6700_v12 = vpop.f32.mrf.mxu1  ;;  %v6708_v6 = vpop.permute.xlu0 %2689  ;;  %v8767_v44 = vld [vmem:[#allocation140_spill] sm:$0xff] }
 0x2f2   :  { %2825 = vperm.xlu1 %4312, %v6197_v23   ;;  %v6683_v45 = vpop.permute.xlu1 %2462  ;;  %3152 = vperm.xlu0 %4318, %v6254_v29   ;;  %8764 = vst [vmem:[#allocation52_spill] sm:$0xff] %v6700_v12  ;;  %v6702_v9 = vadd.f32 %v3917_v18, %v1663_v28  ;;  %v3921_v1 = vsel %vm1731_vm1, 1.0, %v8581_v14  ;;  %v3923_v17 = vsel %vm1733_vm3, 1.0, %v8581_v14  ;;  %vm1721_vm6 = vcmp.eq.s32.totalorder %v4697_v43, %v8765_v59  ;;  %v8769_v59 = vld [vmem:[#allocation135_spill] sm:$0xff] }
 0x2f3   :  { %8761 = vst [vmem:[#allocation51_spill] sm:$0xff] %v6683_v45  ;;  %v8763_v45 = vld [vmem:[#allocation133_spill] sm:$0xff]  ;;  %8766 = vst [vmem:[#allocation53_spill] sm:$0xff] %v6708_v6  ;;  %v1767_v0 = vadd.f32 %v3909_v19, %v6536_v16  ;;  %v3912_v2 = vsel %vm1722_vm4, 1.0, %v8581_v14  ;;  %vm1724_vm7 = vcmp.eq.s32.totalorder %v4697_v43, %v8767_v44  ;;  %v3256_v39 = vand.u32 2147483647, %v6630_v21  ;;  %v6732_v57 = vpop.f32.mrf.mxu1 }
 0x2f4   :  { %vm1831_vm5 = vcmp.eq.s32.totalorder %v4697_v43, %v8763_v45  ;;  %v6719_v18 = vadd.f32 %v3919_v62, %v1665_v35  ;;  %vm1834_vm8 = vcmp.eq.s32.totalorder %v4697_v43, %v8769_v59  ;;  %v3255_v16 = vand.u32 2147483647, %v6660_v31  ;;  %v8770_v6 = vld [vmem:[#allocation137_spill] sm:$0xff]  ;;  %8771 = vst [vmem:[#allocation55_spill] sm:$0xff] %v6732_v57  ;;  %v8772_v62 = vld [vmem:[#allocation142_spill] sm:$0xff] }
 0x2f5   :  { %v3925_v45 = vsel %vm1831_vm5, 1.0, %v8581_v14  ;;  %v6725_v19 = vadd.f32 %v3921_v1, %v1667_v50  ;;  %v6727_v44 = vadd.f32 %v3923_v17, %v1669_v26  ;;  %v3911_v21 = vsel %vm1721_vm6, 1.0, %v8581_v14  ;;  %v8773_v17 = vld [vmem:[#allocation139_spill] sm:$0xff] }
 0x2f6   :  { %2831 = vperm.xlu1 %4312, %v6240_v36   ;;  %v6716_v28 = vpop.permute.xlu1 %2468  ;;  %3155 = vperm.xlu0 %4318, %v6139_v27   ;;  %vm1836_vm9 = vcmp.eq.s32.totalorder %v4697_v43, %v8770_v6  ;;  %v1770_v27 = vadd.f32 %v3912_v2, %v6543_v25  ;;  %v3914_v35 = vsel %vm1724_vm7, 1.0, %v8581_v14  ;;  %vm1726_vm10 = vcmp.eq.s32.totalorder %v4697_v43, %v8772_v62  ;;  %v8781_v62 = vld [vmem:[#allocation148_spill] sm:$0xff] }
 0x2f7   :  { %8768 = vst [vmem:[#allocation54_spill] sm:$0xff] %v6716_v28  ;;  %v3258_v59 = vand.u32 2147483647, %v6700_v12  ;;  %v6739_v50 = vadd.f32 %v3925_v45, %v1767_v0  ;;  %v3928_v26 = vsel %vm1834_vm8, 1.0, %v8581_v14  ;;  %v3272_v1 = vsub.f32 0.0, %v3256_v39  ;;  %v8775_v28 = vld [vmem:[#allocation144_spill] sm:$0xff]  ;;  %v6753_v45 = vpop.permute.xlu0 %2695 }
 0x2f8   :  { %vm1838_vm11 = vcmp.eq.s32.totalorder %v4697_v43, %v8773_v17  ;;  %v6748_v25 = vadd.f32 %v3911_v21, %v1657_v47  ;;  %v3271_v2 = vsub.f32 0.0, %v3255_v16  ;;  %vm1728_vm12 = vcmp.eq.s32.totalorder %v4697_v43, %v8775_v28  ;;  %8776 = vst [vmem:[#allocation57_spill] sm:$0xff] %v6753_v45  ;;  %v8777_v47 = vld [vmem:[#allocation146_spill] sm:$0xff]  ;;  %v8778_v12 = vld [vmem:[#allocation141_spill] sm:$0xff]  ;;  %v8780_v45 = vld [vmem:[#allocation143_spill] sm:$0xff] }
 0x2f9   :  { %v3257_v0 = vand.u32 2147483647, %v6732_v57  ;;  %v1772_v39 = vadd.f32 %v3914_v35, %v6596_v41  ;;  %v3930_v17 = vsel %vm1836_vm9, 1.0, %v8581_v14  ;;  %v3916_v21 = vsel %vm1726_vm10, 1.0, %v8581_v14  ;;  %v6771_v41 = vpop.f32.mrf.mxu1 }
 0x2fa   :  { %2837 = vperm.xlu1 %4312, %v6298_v7   ;;  %v6745_v31 = vpop.permute.xlu1 %2474  ;;  %3158 = vperm.xlu0 %4318, %v6308_v42   ;;  %vm1730_vm13 = vcmp.eq.s32.totalorder %v4697_v43, %v8777_v47  ;;  %v6766_v28 = vadd.f32 %v3928_v26, %v1770_v27  ;;  %v3932_v16 = vsel %vm1838_vm11, 1.0, %v8581_v14  ;;  %v3274_v57 = vsub.f32 0.0, %v3258_v59  ;;  %8779 = vst [vmem:[#allocation58_spill] sm:$0xff] %v6771_v41  ;;  %v8786_v47 = vld [vmem:[#allocation145_spill] sm:$0xff] }
 0x2fb   :  { %8774 = vst [vmem:[#allocation56_spill] sm:$0xff] %v6745_v31  ;;  %vm1840_vm14 = vcmp.eq.s32.totalorder %v4697_v43, %v8778_v12  ;;  %v3289_v6 = vmul.f32 1.442695, %v3272_v1  ;;  %v3918_v35 = vsel %vm1728_vm12, 1.0, %v8581_v14  ;;  %vm1842_vm15 = vcmp.eq.s32.totalorder %v4697_v43, %v8780_v45 }
 0x2fc   :  { %vm1732_vm0 = vcmp.eq.s32.totalorder %v4697_v43, %v8781_v62  ;;  %v8782_v31 = vmov 21   ;;  %v1774_v59 = vadd.f32 %v3916_v21, %v6598_v30  ;;  %v3287_v12 = vmul.f32 1.442695, %v3271_v2 }
 0x2fd   :  { %v3273_v26 = vsub.f32 0.0, %v3257_v0  ;;  %v3920_v1 = vsel %vm1730_vm13, 1.0, %v8581_v14  ;;  %v6788_v48 = vadd.f32 %v3930_v17, %v1772_v39  ;;  %v3934_v10 = vsel %vm1840_vm14, 1.0, %v8581_v14  ;;  %v6799_v0 = vpop.f32.mrf.mxu1  ;;  %v6805_v17 = vpop.permute.xlu0 %2701 }
 0x2fe   :  { %4315 = vset.pattern.permute.xlu1 %v8782_v31  ;;  %v6779_v27 = vpop.permute.xlu1 %2480  ;;  %3161 = vperm.xlu0 %4318, %v6197_v23   ;;  %v3260_v31 = vand.u32 2147483647, %v6771_v41  ;;  %v1776_v23 = vadd.f32 %v3918_v35, %v6610_v38  ;;  %v3293_v30 = vmul.f32 1.442695, %v3274_v57  ;;  %v3936_v2 = vsel %vm1842_vm15, 1.0, %v8581_v14  ;;  %8785 = vst [vmem:[#allocation60_spill] sm:$0xff] %v6799_v0 }
 0x2ff   :  { %8783 = vst [vmem:[#allocation59_spill] sm:$0xff] %v6779_v27  ;;  %2907 = vperm.xlu1 %4315, %v6351_v52   ;;  %v8784_v27 = vld [vmem:[#allocation150_spill] sm:$0xff]  ;;  %v3922_v39 = vsel %vm1732_vm0, 1.0, %v8581_v14  ;;  %4322 = vpow2.f32 %v3289_v6  ;;  %v1778_v21 = vadd.f32 %v3920_v1, %v6618_v3  ;;  %vm1844_vm3 = vcmp.eq.s32.totalorder %v4697_v43, %v8786_v47  ;;  %v8787_v57 = vld [vmem:[#allocation147_spill] sm:$0xff] }
 0x300   :  { %vm1734_vm1 = vcmp.eq.s32.totalorder %v4697_v43, %v8784_v27  ;;  %vm1846_vm4 = vcmp.eq.s32.totalorder %v4697_v43, %v8787_v57  ;;  %v6815_v45 = vadd.f32 %v3932_v16, %v1774_v59  ;;  %4324 = vpow2.f32 %v3287_v12  ;;  %v8788_v47 = vld [vmem:[#allocation154_spill] sm:$0xff]  ;;  %v8789_v57 = vld [vmem:[#allocation156_spill] sm:$0xff] }
 0x301   :  { %v3291_v35 = vmul.f32 1.442695, %v3273_v26  ;;  %v3924_v6 = vsel %vm1734_vm1, 1.0, %v8581_v14  ;;  %v3276_v3 = vsub.f32 0.0, %v3260_v31  ;;  %v3259_v62 = vand.u32 2147483647, %v6799_v0 }
 0x302   :  { %v6812_v38 = vpop.permute.xlu1 %2486  ;;  %3164 = vperm.xlu0 %4318, %v6343_v15   ;;  %v1780_v1 = vadd.f32 %v3922_v39, %v6632_v8  ;;  %vm1833_vm5 = vcmp.eq.s32.totalorder %v4697_v43, %v8788_v47  ;;  %4326 = vpow2.f32 %v3293_v30  ;;  %v6826_v16 = vadd.f32 %v3934_v10, %v1776_v23  ;;  %v8790_v31 = vld [vmem:[#allocation158_spill] sm:$0xff]  ;;  %v8791_v23 = vld [vmem:[#allocation151_spill] sm:$0xff] }
 0x303   :  { %2910 = vperm.xlu1 %4315, %v6453_v46   ;;  %v3938_v59 = vsel %vm1844_vm3, 1.0, %v8581_v14  ;;  %v3940_v12 = vsel %vm1846_vm4, 1.0, %v8581_v14  ;;  %v6830_v26 = vadd.f32 %v3936_v2, %v1778_v21  ;;  %v1782_v27 = vadd.f32 %v3924_v6, %v6649_v40  ;;  %v6846_v40 = vpop.permute.xlu0 %2707  ;;  %v8793_v6 = vld [vmem:[#allocation163_spill] sm:$0xff] }
 0x304   :  { %vm1835_vm6 = vcmp.eq.s32.totalorder %v4697_v43, %v8789_v57  ;;  %vm1837_vm7 = vcmp.eq.s32.totalorder %v4697_v43, %v8790_v31  ;;  %4328 = vpow2.f32 %v3291_v35  ;;  %v3927_v10 = vsel %vm1833_vm5, 1.0, %v8581_v14  ;;  %v8796_v57 = vld [vmem:[#allocation155_spill] sm:$0xff] }
 0x305   :  { %vm1947_vm8 = vcmp.eq.s32.totalorder %v4697_v43, %v8791_v23  ;;  %vm1839_vm9 = vcmp.eq.s32.totalorder %v4697_v43, %v5451_v53  ;;  %v6848_v30 = vmul.f32 1.442695, %v3276_v3  ;;  %v6850_v2 = vsub.f32 0.0, %v3259_v62  ;;  %v8794_v53 = vld [vmem:[#allocation165_spill] sm:$0xff] }
 0x306   :  { %v6837_v8 = vpop.permute.xlu1 %2492  ;;  %3167 = vperm.xlu0 %4318, %v6240_v36   ;;  %v6852_v39 = vadd.f32 %v3938_v59, %v1780_v1  ;;  %v8792_v36 = vld [vmem:[#allocation161_spill] sm:$0xff]  ;;  %v3929_v21 = vsel %vm1835_vm6, 1.0, %v8581_v14  ;;  %v3931_v35 = vsel %vm1837_vm7, 1.0, %v8581_v14  ;;  %vm1843_vm11 = vcmp.eq.s32.totalorder %v4697_v43, %v8793_v6  ;;  %v8799_v6 = vld [vmem:[#allocation159_spill] sm:$0xff] }
 0x307   :  { %2916 = vperm.xlu1 %4315, %v6152_v34   ;;  %vm1841_vm10 = vcmp.eq.s32.totalorder %v4697_v43, %v8792_v36  ;;  %vm1845_vm12 = vcmp.eq.s32.totalorder %v4697_v43, %v8794_v53  ;;  %v6862_v34 = vadd.f32 %v3940_v12, %v1782_v27  ;;  %v1881_v3 = vadd.f32 %v3927_v10, %v6748_v25  ;;  %v8795_v59 = vld [vmem:[#allocation153_spill] sm:$0xff]  ;;  %v8797_v12 = vld [vmem:[#allocation167_spill] sm:$0xff]  ;;  %v8800_v53 = vld [vmem:[#allocation160_spill] sm:$0xff] }
 0x308   :  { %v3945_v62 = vsel %vm1947_vm8, 1.0, %v8581_v14  ;;  %v3933_v1 = vsel %vm1839_vm9, 1.0, %v8581_v14  ;;  %vm1949_vm13 = vcmp.eq.s32.totalorder %v4697_v43, %v8795_v59  ;;  %vm1951_vm14 = vcmp.eq.s32.totalorder %v4697_v43, %v8796_v57  ;;  %v8798_v36 = vld [vmem:[#allocation157_spill] sm:$0xff]  ;;  %v8802_v57 = vld [vmem:[#allocation162_spill] sm:$0xff] }
 0x309   :  { %v3935_v31 = vsel %vm1841_vm10, 1.0, %v8581_v14  ;;  %vm1943_vm15 = vcmp.eq.s32.totalorder %v4697_v43, %v8797_v12  ;;  %v1883_v25 = vadd.f32 %v3929_v21, %v6675_v60  ;;  %v1885_v27 = vadd.f32 %v3931_v35, %v6686_v32  ;;  %v8803_v12 = vld [vmem:[#allocation169_spill] sm:$0xff] }
 0x30a   :  { %v6867_v47 = vpop.permute.xlu1 %2498  ;;  %3173 = vperm.xlu0 %4318, %v6298_v7   ;;  %v3937_v10 = vsel %vm1843_vm11, 1.0, %v8581_v14  ;;  %v3939_v7 = vsel %vm1845_vm12, 1.0, %v8581_v14  ;;  %v1887_v23 = vadd.f32 %v3933_v1, %v6702_v9  ;;  %vm1953_vm0 = vcmp.eq.s32.totalorder %v4697_v43, %v8798_v36 }
 0x30b   :  { %2922 = vperm.xlu1 %4315, %v6209_v13   ;;  %vm1955_vm1 = vcmp.eq.s32.totalorder %v4697_v43, %v8799_v6  ;;  %vm1957_vm3 = vcmp.eq.s32.totalorder %v4697_v43, %v8800_v53  ;;  %v6889_v13 = vpop.permute.xlu0 %2713  ;;  %v3947_v60 = vsel %vm1949_vm13, 1.0, %v8581_v14  ;;  %v3949_v32 = vsel %vm1951_vm14, 1.0, %v8581_v14  ;;  %v8808_v53 = vld [vmem:[#allocation173_spill] sm:$0xff] }
 0x30c   :  { %v1889_v21 = vadd.f32 %v3935_v31, %v6719_v18  ;;  %v3941_v35 = vsel %vm1943_vm15, 1.0, %v8581_v14  ;;  %v6895_v9 = vpop.eup %4322  ;;  %v1891_v1 = vadd.f32 %v3937_v10, %v6725_v19  ;;  %v1893_v59 = vadd.f32 %v3939_v7, %v6727_v44 }
 0x30d   :  { %8801 = vst [vmem:[#allocation61_spill] sm:$0xff] %v6895_v9  ;;  %vm2055_vm4 = vcmp.eq.s32.totalorder %v4697_v43, %v8802_v57  ;;  %vm1945_vm5 = vcmp.eq.s32.totalorder %v4697_v43, %v8803_v12  ;;  %v6906_v41 = vpop.eup %4324  ;;  %v6908_v18 = vadd.f32 %v3945_v62, %v1883_v25  ;;  %v3951_v19 = vsel %vm1953_vm0, 1.0, %v8581_v14  ;;  %v8805_v25 = vld [vmem:[#allocation171_spill] sm:$0xff]  ;;  %v8807_v57 = vld [vmem:[#allocation164_spill] sm:$0xff] }
 0x30e   :  { %8804 = vst [vmem:[#allocation62_spill] sm:$0xff] %v6906_v41  ;;  %v3953_v44 = vsel %vm1955_vm1, 1.0, %v8581_v14  ;;  %v6922_v31 = vadd.f32 %v3947_v60, %v1885_v27  ;;  %v6924_v10 = vadd.f32 %v3949_v32, %v1887_v23  ;;  %v1991_v62 = vadd.f32 %v3941_v35, %v6739_v50  ;;  %v8809_v60 = vld [vmem:[#allocation175_spill] sm:$0xff] }
 0x30f   :  { %2928 = vperm.xlu1 %4315, %v6254_v29   ;;  %v6904_v0 = vpop.permute.xlu1 %2568  ;;  %v3955_v29 = vsel %vm1957_vm3, 1.0, %v8581_v14  ;;  %vm1946_vm6 = vcmp.eq.s32.totalorder %v4697_v43, %v8805_v25  ;;  %v6929_v7 = vpop.eup %4326  ;;  %v3957_v36 = vsel %vm2055_vm4, 1.0, %v8581_v14  ;;  %v3943_v6 = vsel %vm1945_vm5, 1.0, %v8581_v14 }
 0x310   :  { %8806 = vst [vmem:[#allocation63_spill] sm:$0xff] %v6929_v7  ;;  %vm2058_vm7 = vcmp.eq.s32.totalorder %v4697_v43, %v8807_v57  ;;  %vm1948_vm8 = vcmp.eq.s32.totalorder %v4697_v43, %v8808_v53  ;;  %v6937_v27 = vadd.f32 %v3951_v19, %v1889_v21  ;;  %v6939_v23 = vadd.f32 %v3953_v44, %v1891_v1  ;;  %v6948_v35 = vpop.permute.xlu0 %2719  ;;  %v8811_v7 = vld [vmem:[#allocation177_spill] sm:$0xff]  ;;  %v8812_v21 = vld [vmem:[#allocation179_spill] sm:$0xff] }
 0x311   :  { %v6941_v50 = vadd.f32 %v3955_v29, %v1893_v59  ;;  %vm1950_vm9 = vcmp.eq.s32.totalorder %v4697_v43, %v8809_v60  ;;  %v6950_v12 = vpop.eup %4328  ;;  %v3944_v25 = vsel %vm1946_vm6, 1.0, %v8581_v14  ;;  %vm1952_vm10 = vcmp.eq.s32.totalorder %v4697_v43, %v8811_v7  ;;  %v8813_v1 = vld [vmem:[#allocation181_spill] sm:$0xff]  ;;  %v8814_v29 = vld [vmem:[#allocation166_spill] sm:$0xff]  ;;  %v8815_v60 = vld [vmem:[#allocation168_spill] sm:$0xff] }
 0x312   :  { %8810 = vst [vmem:[#allocation64_spill] sm:$0xff] %v6950_v12  ;;  %vm1954_vm11 = vcmp.eq.s32.totalorder %v4697_v43, %v8812_v21  ;;  %vm1956_vm12 = vcmp.eq.s32.totalorder %v4697_v43, %v8813_v1  ;;  %v6959_v59 = vadd.f32 %v3957_v36, %v1991_v62  ;;  %v3960_v19 = vsel %vm2058_vm7, 1.0, %v8581_v14  ;;  %v8817_v1 = vld [vmem:[#allocation170_spill] sm:$0xff] }
 0x313   :  { %2934 = vperm.xlu1 %4315, %v6308_v42   ;;  %v6946_v32 = vpop.permute.xlu1 %2574  ;;  %v6961_v42 = vadd.f32 %v3943_v6, %v1881_v3  ;;  %v3946_v44 = vsel %vm1948_vm8, 1.0, %v8581_v14  ;;  %vm2060_vm13 = vcmp.eq.s32.totalorder %v4697_v43, %v8814_v29  ;;  %v3948_v7 = vsel %vm1950_vm9, 1.0, %v8581_v14  ;;  %v8816_v3 = vld [vmem:[#allocation183_spill] sm:$0xff]  ;;  %v8818_v29 = vld [vmem:[#allocation172_spill] sm:$0xff] }
 0x314   :  { %vm2062_vm14 = vcmp.eq.s32.totalorder %v4697_v43, %v8815_v60  ;;  %vm1958_vm15 = vcmp.eq.s32.totalorder %v4697_v43, %v8816_v3  ;;  %v1994_v62 = vadd.f32 %v3944_v25, %v6766_v28  ;;  %v3950_v36 = vsel %vm1952_vm10, 1.0, %v8581_v14  ;;  %v8819_v60 = vld [vmem:[#allocation174_spill] sm:$0xff]  ;;  %v6996_v12 = vpop.permute.xlu0 %2725 }
 0x315   :  { %v3952_v6 = vsel %vm1954_vm11, 1.0, %v8581_v14  ;;  %v3954_v57 = vsel %vm1956_vm12, 1.0, %v8581_v14  ;;  %v1996_v21 = vadd.f32 %v3946_v44, %v6788_v48  ;;  %vm2064_vm0 = vcmp.eq.s32.totalorder %v4697_v43, %v8817_v1 }
 0x316   :  { %vm2066_vm1 = vcmp.eq.s32.totalorder %v4697_v43, %v8818_v29  ;;  %vm2068_vm3 = vcmp.eq.s32.totalorder %v4697_v43, %v8819_v60  ;;  %v3962_v28 = vsel %vm2060_vm13, 1.0, %v8581_v14  ;;  %v1998_v25 = vadd.f32 %v3948_v7, %v6815_v45  ;;  %v8820_v29 = vld [vmem:[#allocation176_spill] sm:$0xff] }
 0x317   :  { %2940 = vperm.xlu1 %4315, %v6343_v15   ;;  %v6983_v53 = vpop.permute.xlu1 %2577  ;;  %v3964_v3 = vsel %vm2062_vm14, 1.0, %v8581_v14  ;;  %v3956_v15 = vsel %vm1958_vm15, 1.0, %v8581_v14  ;;  %v2000_v48 = vadd.f32 %v3950_v36, %v6826_v16  ;;  %v2002_v44 = vadd.f32 %v3952_v6, %v6830_v26  ;;  %v8822_v36 = vld [vmem:[#allocation191_spill] sm:$0xff]  ;;  %v8823_v6 = vld [vmem:[#allocation180_spill] sm:$0xff] }
 0x318   :  { %v2004_v1 = vadd.f32 %v3954_v57, %v6852_v39  ;;  %vm2070_vm4 = vcmp.eq.s32.totalorder %v4697_v43, %v8820_v29  ;;  %v7003_v60 = vadd.f32 %v3960_v19, %v1994_v62  ;;  %v3966_v41 = vsel %vm2064_vm0, 1.0, %v8581_v14  ;;  %v8821_v39 = vld [vmem:[#allocation189_spill] sm:$0xff]  ;;  %v8828_v29 = vld [vmem:[#allocation184_spill] sm:$0xff] }
 0x319   :  { %v3968_v45 = vsel %vm2066_vm1, 1.0, %v8581_v14  ;;  %v3970_v7 = vsel %vm2068_vm3, 1.0, %v8581_v14  ;;  %v7011_v16 = vadd.f32 %v3962_v28, %v1996_v21  ;;  %v2006_v26 = vadd.f32 %v3956_v15, %v6862_v34  ;;  %v8824_v21 = vld [vmem:[#allocation187_spill] sm:$0xff]  ;;  %v7042_v15 = vpop.permute.xlu0 %2795 }
 0x31a   :  { %vm2059_vm5 = vcmp.eq.s32.totalorder %v4697_v43, %v8821_v39  ;;  %vm2061_vm6 = vcmp.eq.s32.totalorder %v4697_v43, %v8822_v36  ;;  %v7018_v19 = vadd.f32 %v3964_v3, %v1998_v25  ;;  %v3972_v62 = vsel %vm2070_vm4, 1.0, %v8581_v14  ;;  %v8825_v3 = vld [vmem:[#allocation182_spill] sm:$0xff]  ;;  %8827 = vst [vmem:[#allocation65_spill] sm:$0xff] %v7042_v15  ;;  %v8831_v39 = vld [vmem:[#allocation188_spill] sm:$0xff] }
 0x31b   :  { %2946 = vperm.xlu1 %4315, %v6386_v37   ;;  %v7009_v9 = vpop.permute.xlu1 %2583  ;;  %vm2171_vm7 = vcmp.eq.s32.totalorder %v4697_v43, %v8823_v6  ;;  %vm2063_vm8 = vcmp.eq.s32.totalorder %v4697_v43, %v5556_v24  ;;  %v7025_v37 = vadd.f32 %v3966_v41, %v2000_v48  ;;  %v7027_v57 = vadd.f32 %v3968_v45, %v2002_v44  ;;  %v8832_v6 = vld [vmem:[#allocation197_spill] sm:$0xff]  ;;  %v8837_v15 = vld [vmem:[#allocation194_spill] sm:$0xff] }
 0x31c   :  { %v7029_v34 = vadd.f32 %v3970_v7, %v2004_v1  ;;  %vm2057_vm9 = vcmp.eq.s32.totalorder %v4697_v43, %v8824_v21  ;;  %v3961_v28 = vsel %vm2059_vm5, 1.0, %v8581_v14  ;;  %v3963_v25 = vsel %vm2061_vm6, 1.0, %v8581_v14  ;;  %v8830_v7 = vld [vmem:[#allocation195_spill] sm:$0xff] }
 0x31d   :  { %vm2173_vm10 = vcmp.eq.s32.totalorder %v4697_v43, %v8825_v3  ;;  %vm2065_vm11 = vcmp.eq.s32.totalorder %v4697_v43, %v5562_v54  ;;  %v8826_v24 = vmov 22   ;;  %v7044_v48 = vadd.f32 %v3972_v62, %v2006_v26  ;;  %v8829_v54 = vld [vmem:[#allocation186_spill] sm:$0xff] }
 0x31e   :  { %v3977_v44 = vsel %vm2171_vm7, 1.0, %v8581_v14  ;;  %v3965_v1 = vsel %vm2063_vm8, 1.0, %v8581_v14  ;;  %vm2175_vm12 = vcmp.eq.s32.totalorder %v4697_v43, %v8828_v29  ;;  %v3959_v45 = vsel %vm2057_vm9, 1.0, %v8581_v14 }
 0x31f   :  { %4316 = vset.pattern.permute.xlu1 %v8826_v24  ;;  %v7040_v41 = vpop.permute.xlu1 %2589  ;;  %vm2177_vm13 = vcmp.eq.s32.totalorder %v4697_v43, %v8829_v54  ;;  %vm2067_vm14 = vcmp.eq.s32.totalorder %v4697_v43, %v8830_v7  ;;  %vm2179_vm15 = vcmp.eq.s32.totalorder %v4697_v43, %v8831_v39  ;;  %v2107_v26 = vadd.f32 %v3961_v28, %v6908_v18  ;;  %v8833_v54 = vld [vmem:[#allocation190_spill] sm:$0xff]  ;;  %v8834_v7 = vld [vmem:[#allocation192_spill] sm:$0xff] }
 0x320   :  { %3016 = vperm.xlu1 %4316, %v6411_v11   ;;  %v2109_v36 = vadd.f32 %v3963_v25, %v6922_v31  ;;  %v3967_v62 = vsel %vm2065_vm11, 1.0, %v8581_v14  ;;  %vm2069_vm0 = vcmp.eq.s32.totalorder %v4697_v43, %v8832_v6  ;;  %v3979_v11 = vsel %vm2173_vm10, 1.0, %v8581_v14  ;;  %v8835_v6 = vld [vmem:[#allocation199_spill] sm:$0xff] }
 0x321   :  { %v2111_v21 = vadd.f32 %v3965_v1, %v6924_v10  ;;  %v3981_v29 = vsel %vm2175_vm12, 1.0, %v8581_v14  ;;  %vm2181_vm1 = vcmp.eq.s32.totalorder %v4697_v43, %v8833_v54  ;;  %v2105_v31 = vadd.f32 %v3959_v45, %v6961_v42  ;;  %v7087_v42 = vpop.permute.xlu0 %2804 }
 0x322   :  { %v3983_v28 = vsel %vm2177_vm13, 1.0, %v8581_v14  ;;  %v3969_v25 = vsel %vm2067_vm14, 1.0, %v8581_v14  ;;  %vm2279_vm3 = vcmp.eq.s32.totalorder %v4697_v43, %v8834_v7  ;;  %v2113_v10 = vadd.f32 %v3967_v62, %v6937_v27  ;;  %v8836_v7 = vld [vmem:[#allocation193_spill] sm:$0xff] }
 0x323   :  { %v7071_v18 = vpop.permute.xlu1 %2595  ;;  %v3985_v3 = vsel %vm2179_vm15, 1.0, %v8581_v14  ;;  %v3971_v1 = vsel %vm2069_vm0, 1.0, %v8581_v14  ;;  %vm2167_vm4 = vcmp.eq.s32.totalorder %v4697_v43, %v8835_v6  ;;  %v7089_v45 = vadd.f32 %v3977_v44, %v2107_v26 }
 0x324   :  { %3022 = vperm.xlu1 %4316, %v6453_v46   ;;  %v7091_v54 = vadd.f32 %v3979_v11, %v2109_v36  ;;  %v3987_v46 = vsel %vm2181_vm1, 1.0, %v8581_v14  ;;  %vm2282_vm5 = vcmp.eq.s32.totalorder %v4697_v43, %v8836_v7  ;;  %v7096_v27 = vadd.f32 %v3981_v29, %v2111_v21 }
 0x325   :  { %v2115_v39 = vadd.f32 %v3969_v25, %v6939_v23  ;;  %v3989_v62 = vsel %vm2279_vm3, 1.0, %v8581_v14  ;;  %vm2284_vm6 = vcmp.eq.s32.totalorder %v4697_v43, %v8837_v15  ;;  %v2117_v44 = vadd.f32 %v3971_v1, %v6941_v50  ;;  %v8838_v15 = vld [vmem:[#allocation196_spill] sm:$0xff]  ;;  %v7132_v29 = vpop.permute.xlu0 %2810 }
 0x326   :  { %v3973_v26 = vsel %vm2167_vm4, 1.0, %v8581_v14  ;;  %vm2170_vm7 = vcmp.eq.s32.totalorder %v4697_v43, %v5692_v63  ;;  %vm2172_vm8 = vcmp.eq.s32.totalorder %v4697_v43, %v5714_v20  ;;  %v7111_v23 = vadd.f32 %v3983_v28, %v2113_v10  ;;  %v8839_v20 = vld [vmem:[#allocation198_spill] sm:$0xff]  ;;  %v8840_v25 = vld [vmem:[#allocation200_spill] sm:$0xff] }
 0x327   :  { %v7102_v6 = vpop.permute.xlu1 %2601  ;;  %v3992_v36 = vsel %vm2282_vm5, 1.0, %v8581_v14  ;;  %vm2174_vm9 = vcmp.eq.s32.totalorder %v4697_v43, %v5746_v56  ;;  %vm2286_vm10 = vcmp.eq.s32.totalorder %v4697_v43, %v8838_v15  ;;  %vm2169_vm11 = vcmp.eq.s32.totalorder %v4697_v43, %v5659_v55  ;;  %v4418_v15 = vld [vmem:[%s8260_s1 + $0x20] sm:$0xff] }
 0x328   :  { %3025 = vperm.xlu1 %4316, %v6491_v33   ;;  %v3994_v63 = vsel %vm2284_vm6, 1.0, %v8581_v14  ;;  %vm2176_vm12 = vcmp.eq.s32.totalorder %v4697_v43, %v5792_v22  ;;  %vm2288_vm13 = vcmp.eq.s32.totalorder %v4697_v43, %v8839_v20  ;;  %v7125_v33 = vadd.f32 %v3985_v3, %v2115_v39 }
 0x329   :  { %v2215_v50 = vadd.f32 %v3973_v26, %v6959_v59  ;;  %v3976_v56 = vsel %vm2170_vm7, 1.0, %v8581_v14  ;;  %v3978_v11 = vsel %vm2172_vm8, 1.0, %v8581_v14  ;;  %v7134_v55 = vadd.f32 %v3987_v46, %v2117_v44 }
 0x32a   :  { %v3980_v28 = vsel %vm2174_vm9, 1.0, %v8581_v14  ;;  %v3996_v22 = vsel %vm2286_vm10, 1.0, %v8581_v14  ;;  %vm2290_vm14 = vcmp.eq.s32.totalorder %v4697_v43, %v8840_v25  ;;  %v8841_v10 = vmov 23   ;;  %v8845_v25 = vld [vmem:[#allocation6_spill] sm:$0xff] }
 0x32b   :  { %v7130_v21 = vpop.permute.xlu1 %2607  ;;  %v3975_v59 = vsel %vm2169_vm11, 1.0, %v8581_v14  ;;  %v3982_v3 = vsel %vm2176_vm12, 1.0, %v8581_v14  ;;  %v3998_v1 = vsel %vm2288_vm13, 1.0, %v8581_v14  ;;  %vm2283_vm15 = vcmp.eq.s32.totalorder %v4697_v43, %v5977_v49 }
 0x32c   :  { %4319 = vset.pattern.permute.xlu1 %v8841_v10  ;;  %v2218_v46 = vadd.f32 %v3976_v56, %v7003_v60  ;;  %v2220_v7 = vadd.f32 %v3978_v11, %v7011_v16  ;;  %vm2178_vm0 = vcmp.eq.s32.totalorder %v4697_v43, %v5819_v5  ;;  %vm2292_vm1 = vcmp.eq.s32.totalorder %v4697_v43, %v5674_v61 }
 0x32d   :  { %3131 = vperm.xlu1 %4319, %v6351_v52   ;;  %v7153_v39 = vadd.f32 %v3989_v62, %v2215_v50  ;;  %v2222_v44 = vadd.f32 %v3980_v28, %v7018_v19  ;;  %v4000_v26 = vsel %vm2290_vm14, 1.0, %v8581_v14  ;;  %vm2294_vm3 = vcmp.eq.s32.totalorder %v4697_v43, %v5702_v4  ;;  %v8842_v19 = vld [vmem:[#allocation5_spill] sm:$0xff]  ;;  %v7174_v4 = vpop.permute.xlu0 %2816  ;;  %v8844_v50 = vld [vmem:[#allocation54_spill] sm:$0xff] }
 0x32e   :  { %v2217_v52 = vadd.f32 %v3975_v59, %v2105_v31  ;;  %v2224_v60 = vadd.f32 %v3982_v3, %v7025_v37  ;;  %v3993_v16 = vsel %vm2283_vm15, 1.0, %v8581_v14  ;;  %vm2395_vm4 = vcmp.eq.s32.totalorder %v4697_v43, %v5785_v58  ;;  %v8843_v62 = vld [vmem:[#allocation17_spill] sm:$0xff]  ;;  %v8846_v59 = vld [vmem:[#allocation8_spill] sm:$0xff]  ;;  %v8849_v3 = vld [vmem:[#allocation19_spill] sm:$0xff] }
 0x32f   :  { %v7159_v49 = vpop.permute.xlu1 %2613  ;;  %v3984_v61 = vsel %vm2178_vm0, 1.0, %v8581_v14  ;;  %v7167_v5 = vsel %vm2292_vm1, 1.0, %v8581_v14  ;;  %vm2285_vm5 = vcmp.eq.s32.totalorder %v4697_v43, %v6021_v51  ;;  %vm2397_vm6 = vcmp.eq.s32.totalorder %v4697_v43, %v8842_v19  ;;  %v8848_v51 = vld [vmem:[#allocation13_spill] sm:$0xff] }
 0x330   :  { %v7176_v37 = vadd.f32 %v3992_v36, %v2218_v46  ;;  %v7178_v31 = vadd.f32 %v3994_v63, %v2220_v7  ;;  %v7181_v58 = vsel %vm2294_vm3, 1.0, %v8581_v14  ;;  %vm2287_vm7 = vcmp.eq.s32.totalorder %v4697_v43, %v8843_v62  ;;  %v8851_v7 = vld [vmem:[#allocation43_spill] sm:$0xff] }
 0x331   :  { %4320 = vset.pattern.permute.xlu1 %v8826_v24  ;;  %v7188_v20 = vadd.f32 %v3996_v22, %v2222_v44  ;;  %v2331_v24 = vadd.f32 %v3993_v16, %v7089_v45  ;;  %v4009_v36 = vsel %vm2395_vm4, 1.0, %v8581_v14  ;;  %vm2507_vm8 = vcmp.eq.s32.totalorder %v4697_v43, %v8844_v50  ;;  %v8852_v16 = vld [vmem:[#allocation32_spill] sm:$0xff]  ;;  %v7227_v19 = vpop.permute.xlu0 %2822 }
 0x332   :  { %3028 = vperm.xlu1 %4320, %v4418_v15   ;;  %v7194_v63 = vadd.f32 %v3998_v1, %v2224_v60  ;;  %v2226_v56 = vadd.f32 %v3984_v61, %v7027_v57  ;;  %v3995_v11 = vsel %vm2285_vm5, 1.0, %v8581_v14  ;;  %v4011_v28 = vsel %vm2397_vm6, 1.0, %v8581_v14  ;;  %v8847_v57 = vld [vmem:[#allocation10_spill] sm:$0xff]  ;;  %v8850_v1 = vld [vmem:[#allocation12_spill] sm:$0xff] }
 0x333   :  { %v3997_v22 = vsel %vm2287_vm7, 1.0, %v8581_v14  ;;  %vm2399_vm9 = vcmp.eq.s32.totalorder %v4697_v43, %v8845_v25  ;;  %vm2401_vm10 = vcmp.eq.s32.totalorder %v4697_v43, %v8846_v59  ;;  %vm2403_vm11 = vcmp.eq.s32.totalorder %v4697_v43, %v8847_v57  ;;  %v8853_v61 = vld [vmem:[#allocation56_spill] sm:$0xff]  ;;  %v8856_v57 = vld [vmem:[#allocation59_spill] sm:$0xff] }
 0x334   :  { %v7205_v45 = vpop.permute.xlu1 %2683  ;;  %vm2281_vm12 = vcmp.eq.s32.totalorder %v4697_v43, %v8848_v51  ;;  %vm2289_vm13 = vcmp.eq.s32.totalorder %v4697_v43, %v8849_v3  ;;  %vm2405_vm14 = vcmp.eq.s32.totalorder %v4697_v43, %v8850_v1  ;;  %v4025_v46 = vsel %vm2507_vm8, 1.0, %v8581_v14  ;;  %v4419_v51 = vld [vmem:[%s8260_s1 + $0x30] sm:$0xff] }
 0x335   :  { %v2443_v44 = vadd.f32 %v4009_v36, %v2331_v24  ;;  %v2333_v60 = vadd.f32 %v3995_v11, %v7091_v54  ;;  %vm2619_vm15 = vcmp.eq.s32.totalorder %v4697_v43, %v8852_v16  ;;  %vm2509_vm0 = vcmp.eq.s32.totalorder %v4697_v43, %v8853_v61  ;;  %v8854_v36 = vld [vmem:[#allocation22_spill] sm:$0xff] }
 0x336   :  { %3031 = vperm.xlu1 %4320, %v8851_v7   ;;  %v7229_v62 = vadd.f32 %v4000_v26, %v2226_v56  ;;  %v2335_v15 = vadd.f32 %v3997_v22, %v7096_v27  ;;  %v4013_v50 = vsel %vm2399_vm9, 1.0, %v8581_v14  ;;  %v4015_v25 = vsel %vm2401_vm10, 1.0, %v8581_v14 }
 0x337   :  { %v3991_v54 = vsel %vm2281_vm12, 1.0, %v8581_v14  ;;  %v3999_v24 = vsel %vm2289_vm13, 1.0, %v8581_v14  ;;  %vm2291_vm1 = vcmp.eq.s32.totalorder %v4697_v43, %v8854_v36  ;;  %v2555_v11 = vadd.f32 %v4025_v46, %v2443_v44  ;;  %v8855_v46 = vld [vmem:[#allocation35_spill] sm:$0xff]  ;;  %v8857_v36 = vld [vmem:[#allocation25_spill] sm:$0xff] }
 0x338   :  { %v7234_v59 = vpop.permute.xlu1 %2686  ;;  %v4017_v26 = vsel %vm2403_vm11, 1.0, %v8581_v14  ;;  %v7248_v27 = vsel %vm2405_vm14, 1.0, %v8581_v14  ;;  %v4041_v56 = vsel %vm2619_vm15, 1.0, %v8581_v14  ;;  %v4027_v22 = vsel %vm2509_vm0, 1.0, %v8581_v14 }
 0x339   :  { %v2445_v3 = vadd.f32 %v4011_v28, %v2333_v60  ;;  %vm2621_vm3 = vcmp.eq.s32.totalorder %v4697_v43, %v8855_v46  ;;  %vm2511_vm4 = vcmp.eq.s32.totalorder %v4697_v43, %v8856_v57  ;;  %vm2843_vm5 = vcmp.eq.s32.totalorder %v4697_v43, %v7087_v42 }
 0x33a   :  { %3034 = vperm.xlu1 %4320, %v4419_v51   ;;  %v7261_v1 = vadd.f32 %v3991_v54, %v2217_v52  ;;  %v2447_v7 = vadd.f32 %v4013_v50, %v2335_v15  ;;  %v2337_v44 = vadd.f32 %v3999_v24, %v7111_v23  ;;  %v4001_v16 = vsel %vm2291_vm1, 1.0, %v8581_v14  ;;  %v7268_v51 = vpop.permute.xlu0 %2828  ;;  %v8858_v15 = vld [vmem:[#allocation45_spill] sm:$0xff] }
 0x33b   :  { %vm2293_vm6 = vcmp.eq.s32.totalorder %v4697_v43, %v8857_v36  ;;  %v2667_v28 = vadd.f32 %v4041_v56, %v2555_v11  ;;  %v2557_v60 = vadd.f32 %v4027_v22, %v2445_v3  ;;  %v4043_v46 = vsel %vm2621_vm3, 1.0, %v8581_v14  ;;  %v8859_v50 = vld [vmem:[#allocation37_spill] sm:$0xff]  ;;  %v8860_v22 = vld [vmem:[#allocation14_spill] sm:$0xff]  ;;  %v8861_v36 = vld [vmem:[#allocation39_spill] sm:$0xff] }
 0x33c   :  { %v2693_v61 = vpop.permute.xlu1 %2692  ;;  %v4029_v42 = vsel %vm2511_vm4, 1.0, %v8581_v14  ;;  %v4073_v52 = vsel %vm2843_vm5, 1.0, %v8581_v14  ;;  %vm2623_vm8 = vcmp.eq.s32.totalorder %v4697_v43, %v8859_v50  ;;  %vm2513_vm9 = vcmp.eq.s32.totalorder %v4697_v43, %v6812_v38 }
 0x33d   :  { %vm2731_vm7 = vcmp.eq.s32.totalorder %v4697_v43, %v2693_v61  ;;  %vm2845_vm10 = vcmp.eq.s32.totalorder %v4697_v43, %v7132_v29  ;;  %v2449_v24 = vadd.f32 %v4015_v25, %v2337_v44  ;;  %v2339_v11 = vadd.f32 %v4001_v16, %v7125_v33  ;;  %v4420_v16 = vld [vmem:[%s8260_s1 + $0x40] sm:$0xff] }
 0x33e   :  { %v4057_v23 = vsel %vm2731_vm7, 1.0, %v8581_v14  ;;  %3037 = vperm.xlu1 %4320, %v8858_v15   ;;  %v4003_v56 = vsel %vm2293_vm6, 1.0, %v8581_v14  ;;  %vm2503_vm11 = vcmp.eq.s32.totalorder %v4697_v43, %v8860_v22  ;;  %v2669_v57 = vadd.f32 %v4043_v46, %v2557_v60 }
 0x33f   :  { %v2779_v54 = vadd.f32 %v4057_v23, %v2667_v28  ;;  %v2559_v61 = vadd.f32 %v4029_v42, %v2447_v7  ;;  %v4045_v29 = vsel %vm2623_vm8, 1.0, %v8581_v14  ;;  %v4031_v25 = vsel %vm2513_vm9, 1.0, %v8581_v14  ;;  %v7304_v28 = vpop.permute.xlu0 %2834  ;;  %v8862_v42 = vld [vmem:[#allocation27_spill] sm:$0xff] }
 0x340   :  { %v2699_v3 = vpop.permute.xlu1 %2698  ;;  %v4075_v33 = vsel %vm2845_vm10, 1.0, %v8581_v14  ;;  %vm2625_vm13 = vcmp.eq.s32.totalorder %v4697_v43, %v8861_v36  ;;  %vm2515_vm14 = vcmp.eq.s32.totalorder %v4697_v43, %v6837_v8  ;;  %vm2847_vm15 = vcmp.eq.s32.totalorder %v4697_v43, %v7174_v4 }
 0x341   :  { %vm2733_vm12 = vcmp.eq.s32.totalorder %v4697_v43, %v2699_v3  ;;  %v7289_v38 = vadd.f32 %v4073_v52, %v2779_v54  ;;  %v2451_v60 = vadd.f32 %v4017_v26, %v2339_v11  ;;  %v2341_v46 = vadd.f32 %v4003_v56, %v7134_v55  ;;  %v4421_v11 = vld [vmem:[%s8260_s1 + $0x48] sm:$0xff] }
 0x342   :  { %v4059_v44 = vsel %vm2733_vm12, 1.0, %v8581_v14  ;;  %3040 = vperm.xlu1 %4320, %v4420_v16   ;;  %vm2391_vm0 = vcmp.eq.s32.totalorder %v4697_v43, %v8862_v42  ;;  %v4021_v52 = vsel %vm2503_vm11, 1.0, %v8581_v14  ;;  %v2671_v15 = vadd.f32 %v4045_v29, %v2559_v61  ;;  %v8864_v56 = vld [vmem:[#allocation42_spill] sm:$0xff]  ;;  %v8866_v61 = vld [vmem:[#allocation15_spill] sm:$0xff] }
 0x343   :  { %v2781_v7 = vadd.f32 %v4059_v44, %v2669_v57  ;;  %v2561_v8 = vadd.f32 %v4031_v25, %v2449_v24  ;;  %v4047_v4 = vsel %vm2625_vm13, 1.0, %v8581_v14  ;;  %v4033_v26 = vsel %vm2515_vm14, 1.0, %v8581_v14  ;;  %v8865_v57 = vld [vmem:[#allocation31_spill] sm:$0xff] }
 0x344   :  { %v2705_v23 = vpop.permute.xlu1 %2704  ;;  %v4077_v55 = vsel %vm2847_vm15, 1.0, %v8581_v14  ;;  %vm2627_vm3 = vcmp.eq.s32.totalorder %v4697_v43, %v8864_v56  ;;  %vm2517_vm4 = vcmp.eq.s32.totalorder %v4697_v43, %v6867_v47  ;;  %vm2849_vm5 = vcmp.eq.s32.totalorder %v4697_v43, %v7227_v19 }
 0x345   :  { %vm2735_vm1 = vcmp.eq.s32.totalorder %v4697_v43, %v2705_v23  ;;  %v7314_v50 = vadd.f32 %v4075_v33, %v2781_v7  ;;  %v2453_v22 = vadd.f32 %v7248_v27, %v2341_v46  ;;  %v4005_v3 = vsel %vm2391_vm0, 1.0, %v8581_v14  ;;  %v7339_v33 = vpop.permute.xlu0 %2904  ;;  %v4422_v7 = vld [vmem:[%s8260_s1 + $0x50] sm:$0xff]  ;;  %v8869_v23 = vld [vmem:[#allocation29_spill] sm:$0xff] }
 0x346   :  { %v4061_v54 = vsel %vm2735_vm1, 1.0, %v8581_v14  ;;  %3043 = vperm.xlu1 %4320, %v4421_v11   ;;  %vm2394_vm6 = vcmp.eq.s32.totalorder %v4697_v43, %v8865_v57  ;;  %vm2506_vm7 = vcmp.eq.s32.totalorder %v4697_v43, %v8866_v61  ;;  %v2673_v25 = vadd.f32 %v4047_v4, %v2561_v8  ;;  %v8868_v46 = vld [vmem:[#allocation46_spill] sm:$0xff]  ;;  %v8873_v11 = vld [vmem:[#allocation16_spill] sm:$0xff] }
 0x347   :  { %8863 = vst [vmem:[#allocation66_spill] sm:$0xff] %v7314_v50  ;;  %v2783_v24 = vadd.f32 %v4061_v54, %v2671_v15  ;;  %v2563_v47 = vadd.f32 %v4033_v26, %v2451_v60  ;;  %v4049_v27 = vsel %vm2627_vm3, 1.0, %v8581_v14  ;;  %v4035_v44 = vsel %vm2517_vm4, 1.0, %v8581_v14  ;;  %v8872_v54 = vld [vmem:[#allocation33_spill] sm:$0xff] }
 0x348   :  { %v2711_v29 = vpop.permute.xlu1 %2710  ;;  %v4079_v16 = vsel %vm2849_vm5, 1.0, %v8581_v14  ;;  %v2439_v60 = vadd.f32 %v4005_v3, %v7153_v39  ;;  %vm2629_vm9 = vcmp.eq.s32.totalorder %v4697_v43, %v8868_v46  ;;  %vm2851_vm10 = vcmp.eq.s32.totalorder %v4697_v43, %v7268_v51  ;;  %v4424_v46 = vld [vmem:[%s8260_s1 + $0x60] sm:$0xff] }
 0x349   :  { %vm2737_vm8 = vcmp.eq.s32.totalorder %v4697_v43, %v2711_v29  ;;  %v7341_v19 = vadd.f32 %v4077_v55, %v2783_v24  ;;  %vm2393_vm11 = vcmp.eq.s32.totalorder %v4697_v43, %v8869_v23  ;;  %v4008_v15 = vsel %vm2394_vm6, 1.0, %v8581_v14  ;;  %v8871_v55 = vld [vmem:[#allocation7_spill] sm:$0xff]  ;;  %v7385_v29 = vpop.permute.xlu0 %2913 }
 0x34a   :  { %v4063_v36 = vsel %vm2737_vm8, 1.0, %v8581_v14  ;;  %3046 = vperm.xlu1 %4320, %v4422_v7   ;;  %v4024_v39 = vsel %vm2506_vm7, 1.0, %v8581_v14  ;;  %vm2615_vm12 = vcmp.eq.s32.totalorder %v4697_v43, %v6904_v0  ;;  %v2675_v4 = vadd.f32 %v4049_v27, %v2563_v47  ;;  %v8874_v27 = vld [vmem:[#allocation51_spill] sm:$0xff] }
 0x34b   :  { %8867 = vst [vmem:[#allocation67_spill] sm:$0xff] %v7341_v19  ;;  %v2785_v42 = vadd.f32 %v4063_v36, %v2673_v25  ;;  %v2565_v26 = vadd.f32 %v4035_v44, %v2453_v22  ;;  %vm2180_vm14 = vcmp.eq.s32.totalorder %v4697_v43, %v8871_v55  ;;  %vm2396_vm15 = vcmp.eq.s32.totalorder %v4697_v43, %v8872_v54  ;;  %v4423_v22 = vld [vmem:[%s8260_s1 + $0x58] sm:$0xff]  ;;  %v8875_v44 = vld [vmem:[#allocation50_spill] sm:$0xff] }
 0x34c   :  { %v2717_v8 = vpop.permute.xlu1 %2716  ;;  %vm2508_vm0 = vcmp.eq.s32.totalorder %v4697_v43, %v8873_v11  ;;  %v4051_v56 = vsel %vm2629_vm9, 1.0, %v8581_v14  ;;  %v4081_v0 = vsel %vm2851_vm10, 1.0, %v8581_v14  ;;  %v2551_v3 = vadd.f32 %v4021_v52, %v2439_v60  ;;  %v4426_v55 = vld [vmem:[%s8260_s1 + $0x70] sm:$0xff] }
 0x34d   :  { %vm2739_vm13 = vcmp.eq.s32.totalorder %v4697_v43, %v2717_v8  ;;  %v7368_v51 = vadd.f32 %v4079_v16, %v2785_v42  ;;  %v4037_v57 = vsel %vm2615_vm12, 1.0, %v8581_v14  ;;  %vm2853_vm1 = vcmp.eq.s32.totalorder %v4697_v43, %v7304_v28  ;;  %v8877_v42 = vld [vmem:[#allocation36_spill] sm:$0xff] }
 0x34e   :  { %v4065_v24 = vsel %vm2739_vm13, 1.0, %v8581_v14  ;;  %3049 = vperm.xlu1 %4320, %v4423_v22   ;;  %v4007_v25 = vsel %vm2393_vm11, 1.0, %v8581_v14  ;;  %v2442_v47 = vadd.f32 %v4008_v15, %v7176_v37  ;;  %vm2505_vm3 = vcmp.eq.s32.totalorder %v4697_v43, %v8874_v27 }
 0x34f   :  { %8870 = vst [vmem:[#allocation68_spill] sm:$0xff] %v7368_v51  ;;  %v2787_v61 = vadd.f32 %v4065_v24, %v2675_v4  ;;  %vm2727_vm4 = vcmp.eq.s32.totalorder %v4697_v43, %v8875_v44  ;;  %v4010_v28 = vsel %vm2396_vm15, 1.0, %v8581_v14  ;;  %v2677_v16 = vadd.f32 %v4051_v56, %v2565_v26  ;;  %v7423_v24 = vpop.permute.xlu0 %2919 }
 0x350   :  { %v2723_v52 = vpop.permute.xlu1 %2722  ;;  %v2663_v7 = vadd.f32 %v4037_v57, %v2551_v3  ;;  %vm2617_vm6 = vcmp.eq.s32.totalorder %v4697_v43, %v6946_v32  ;;  %v4083_v37 = vsel %vm2853_vm1, 1.0, %v8581_v14  ;;  %vm2398_vm7 = vcmp.eq.s32.totalorder %v4697_v43, %v8877_v42  ;;  %v8878_v32 = vld [vmem:[#allocation18_spill] sm:$0xff] }
 0x351   :  { %vm2741_vm5 = vcmp.eq.s32.totalorder %v4697_v43, %v2723_v52  ;;  %v7401_v36 = vadd.f32 %v4081_v0, %v2787_v61  ;;  %v4023_v23 = vsel %vm2505_vm3, 1.0, %v8581_v14  ;;  %v4053_v15 = vsel %vm2727_vm4, 1.0, %v8581_v14 }
 0x352   :  { %v4067_v60 = vsel %vm2741_vm5, 1.0, %v8581_v14  ;;  %3052 = vperm.xlu1 %4320, %v4424_v46   ;;  %v2441_v4 = vadd.f32 %v4007_v25, %v7261_v1  ;;  %vm2510_vm8 = vcmp.eq.s32.totalorder %v4697_v43, %v8878_v32  ;;  %vm2618_vm9 = vcmp.eq.s32.totalorder %v4697_v43, %v6983_v53  ;;  %v4425_v53 = vld [vmem:[%s8260_s1 + $0x68] sm:$0xff] }
 0x353   :  { %8876 = vst [vmem:[#allocation69_spill] sm:$0xff] %v7401_v36  ;;  %v2789_v8 = vadd.f32 %v4067_v60, %v2677_v16  ;;  %vm2729_vm10 = vcmp.eq.s32.totalorder %v4697_v43, %v7234_v59  ;;  %v2554_v26 = vadd.f32 %v4024_v39, %v2442_v47  ;;  %v2444_v54 = vadd.f32 %v4010_v28, %v7178_v31  ;;  %v8879_v59 = vld [vmem:[#allocation38_spill] sm:$0xff]  ;;  %v8880_v47 = vld [vmem:[#allocation53_spill] sm:$0xff] }
 0x354   :  { %v4039_v56 = vsel %vm2617_vm6, 1.0, %v8581_v14  ;;  %v4012_v1 = vsel %vm2398_vm7, 1.0, %v8581_v14  ;;  %v2553_v3 = vadd.f32 %v4023_v23, %v2441_v4  ;;  %v2775_v57 = vadd.f32 %v4053_v15, %v2663_v7  ;;  %v8881_v16 = vld [vmem:[#allocation21_spill] sm:$0xff]  ;;  %v7469_v23 = vpop.permute.xlu0 %2925 }
 0x355   :  { %v2793_v0 = vpop.permute.xlu1 %2792  ;;  %v7425_v22 = vadd.f32 %v4083_v37, %v2789_v8  ;;  %vm2400_vm12 = vcmp.eq.s32.totalorder %v4697_v43, %v8879_v59  ;;  %v4040_v31 = vsel %vm2618_vm9, 1.0, %v8581_v14  ;;  %v4055_v39 = vsel %vm2729_vm10, 1.0, %v8581_v14  ;;  %8882 = vst [vmem:[#allocation70_spill] sm:$0xff] %v7469_v23  ;;  %v8883_v8 = vld [vmem:[#allocation57_spill] sm:$0xff]  ;;  %v8929_v23 = vld [vmem:[#allocation178_spill] sm:$0xff] }
 0x356   :  { %vm2839_vm11 = vcmp.eq.s32.totalorder %v4697_v43, %v2793_v0  ;;  %3055 = vperm.xlu1 %4320, %v4425_v53   ;;  %v2665_v25 = vadd.f32 %v4039_v56, %v2553_v3  ;;  %vm2730_vm13 = vcmp.eq.s32.totalorder %v4697_v43, %v8880_v47  ;;  %vm2620_vm15 = vcmp.eq.s32.totalorder %v4697_v43, %v7009_v9  ;;  %v8885_v0 = vld [vmem:[#allocation40_spill] sm:$0xff]  ;;  %v8887_v47 = vld [vmem:[#allocation41_spill] sm:$0xff] }
 0x357   :  { %v4069_v61 = vsel %vm2839_vm11, 1.0, %v8581_v14  ;;  %v3986_v44 = vsel %vm2180_vm14, 1.0, %v8581_v14  ;;  %v4026_v52 = vsel %vm2508_vm0, 1.0, %v8581_v14  ;;  %v4028_v28 = vsel %vm2510_vm8, 1.0, %v8581_v14 }
 0x358   :  { %v7441_v27 = vadd.f32 %v4069_v61, %v2775_v57  ;;  %vm2512_vm1 = vcmp.eq.s32.totalorder %v4697_v43, %v8881_v16  ;;  %v2446_v7 = vadd.f32 %v4012_v1, %v7188_v20  ;;  %v2666_v37 = vadd.f32 %v4040_v31, %v2554_v26  ;;  %v8884_v26 = vld [vmem:[#allocation9_spill] sm:$0xff]  ;;  %v7513_v16 = vpop.f32.mrf.mxu1 }
 0x359   :  { %v2799_v9 = vpop.permute.xlu1 %2798  ;;  %v2777_v60 = vadd.f32 %v4055_v39, %v2665_v25  ;;  %v4014_v11 = vsel %vm2400_vm12, 1.0, %v8581_v14  ;;  %v4056_v46 = vsel %vm2730_vm13, 1.0, %v8581_v14  ;;  %v4042_v42 = vsel %vm2620_vm15, 1.0, %v8581_v14  ;;  %v8886_v25 = vld [vmem:[#allocation24_spill] sm:$0xff] }
 0x35a   :  { %vm2841_vm14 = vcmp.eq.s32.totalorder %v4697_v43, %v2799_v9  ;;  %3058 = vperm.xlu1 %4320, %v4426_v55   ;;  %v2556_v15 = vadd.f32 %v4026_v52, %v2444_v54  ;;  %vm2732_vm0 = vcmp.eq.s32.totalorder %v4697_v43, %v8883_v8  ;;  %vm2622_vm3 = vcmp.eq.s32.totalorder %v4697_v43, %v7040_v41 }
 0x35b   :  { %v4071_v20 = vsel %vm2841_vm14, 1.0, %v8581_v14  ;;  %v2228_v32 = vadd.f32 %v3986_v44, %v7029_v34  ;;  %vm2182_vm4 = vcmp.eq.s32.totalorder %v4697_v43, %v8884_v26  ;;  %v4030_v56 = vsel %vm2512_vm1, 1.0, %v8581_v14  ;;  %v4427_v34 = vld [vmem:[%s8260_s1 + $0x78] sm:$0xff]  ;;  %v8888_v44 = vld [vmem:[#allocation26_spill] sm:$0xff]  ;;  %s4475_s1 = smov [#allocation2]  }
 0x35c   :  { %v7475_v4 = vadd.f32 %v4071_v20, %v2777_v60  ;;  %vm2402_vm5 = vcmp.eq.s32.totalorder %v4697_v43, %v8885_v0  ;;  %v2448_v1 = vadd.f32 %v4014_v11, %v7194_v63  ;;  %v2778_v3 = vadd.f32 %v4056_v46, %v2666_v37  ;;  %s3692_s16 = sshll.u32 %s4475_s1, 4  ;;  %s3693_s16 = int_to_ptr.vmem [resolvable:$true] %s3692_s16 }
 0x35d   :  { %v2802_v54 = vpop.permute.xlu1 %2801  ;;  %v2668_v41 = vadd.f32 %v4042_v42, %v2556_v15  ;;  %v2558_v57 = vadd.f32 %v4028_v28, %v2446_v7  ;;  %v4058_v53 = vsel %vm2732_vm0, 1.0, %v8581_v14  ;;  %v4044_v59 = vsel %vm2622_vm3, 1.0, %v8581_v14  ;;  %v7511_v28 = vpop.permute.xlu0 %2931  ;;  %s4428_s17 = scalar_lea.vmem %s3693_s16, 16  ;;  %s4432_s18 = scalar_lea.vmem %s3693_s16, 32 }
 0x35e   :  { %vm2842_vm6 = vcmp.eq.s32.totalorder %v4697_v43, %v2802_v54  ;;  %3061 = vperm.xlu1 %4320, %v4427_v34   ;;  %v4016_v39 = vsel %vm2402_vm5, 1.0, %v8581_v14  ;;  %vm2734_vm7 = vcmp.eq.s32.totalorder %v4697_v43, %v6805_v17  ;;  %vm2624_vm8 = vcmp.eq.s32.totalorder %v4697_v43, %v7071_v18  ;;  %8889 = vst [vmem:[#allocation71_spill] sm:$0xff] %v7511_v28  ;;  %v7544_v15 = vpop.f32.mrf.mxu1  ;;  %p4429_p0 = scmp.ne.s32.totalorder %s3693_s16, %s4428_s17  ;;  %p4433_p1 = scmp.lt.s32.totalorder %s3693_s16, %s3693_s16 }
 0x35f   :  { %v4072_v31 = vsel %vm2842_vm6, 1.0, %v8581_v14  ;;  %v3988_v61 = vsel %vm2182_vm4, 1.0, %v8581_v14  ;;  %vm2514_vm9 = vcmp.eq.s32.totalorder %v4697_v43, %v8886_v25  ;;  %vm2404_vm10 = vcmp.eq.s32.totalorder %v4697_v43, %v8887_v47  ;;  %p4434_p2 = scmp.lt.s32.totalorder %s4432_s18, %s4428_s17 }
 0x360   :  { %v7499_v63 = vadd.f32 %v4072_v31, %v2778_v3  ;;  %vm2516_vm11 = vcmp.eq.s32.totalorder %v4697_v43, %v8888_v44  ;;  %v2560_v9 = vadd.f32 %v4030_v56, %v2448_v1  ;;  %v2780_v7 = vadd.f32 %v4058_v53, %v2668_v41  ;;  %v7573_v25 = vpop.f32.mrf.mxu1 }
 0x361   :  { %v2808_v52 = vpop.permute.xlu1 %2807  ;;  %v2670_v37 = vadd.f32 %v4044_v59, %v2558_v57  ;;  %v2450_v60 = vadd.f32 %v4016_v39, %v7229_v62  ;;  %v4060_v11 = vsel %vm2734_vm7, 1.0, %v8581_v14  ;;  %v4046_v46 = vsel %vm2624_vm8, 1.0, %v8581_v14  ;;  %v7552_v0 = vpop.permute.xlu0 %2937  ;;  %v8894_v59 = vld [vmem:[#allocation28_spill] sm:$0xff]  ;;  %8895 = vst [vmem:[#allocation75_spill] sm:$0xff] %v7573_v25  ;;  %p4435_p3 = por %p4434_p2, %p4433_p1 }
 0x362   :  { %vm2844_vm12 = vcmp.eq.s32.totalorder %v4697_v43, %v2808_v52  ;;  %4321 = vset.pattern.permute.xlu1 %v8841_v10  ;;  %v4018_v20 = vsel %vm2404_vm10, 1.0, %v8581_v14  ;;  %vm2736_vm13 = vcmp.eq.s32.totalorder %v4697_v43, %v6846_v40  ;;  %vm2626_vm15 = vcmp.eq.s32.totalorder %v4697_v43, %v7102_v6  ;;  %v8891_v6 = vld [vmem:[#allocation44_spill] sm:$0xff]  ;;  %8892 = vst [vmem:[#allocation73_spill] sm:$0xff] %v7552_v0  ;;  %v8897_v52 = vld [vmem:[#allocation89_spill] sm:$0xff] }
 0x363   :  { %v4074_v42 = vsel %vm2844_vm12, 1.0, %v8581_v14  ;;  %3170 = vperm.xlu1 %4321, %v4426_v55   ;;  %v2340_v17 = vadd.f32 %v7167_v5, %v2228_v32  ;;  %v2230_v62 = vadd.f32 %v3988_v61, %v7044_v48  ;;  %v4032_v18 = vsel %vm2514_vm9, 1.0, %v8581_v14  ;;  %p4436_p4 = pnand %p4435_p3, %p4429_p0 }
 0x364   :  { %v7532_v10 = vadd.f32 %v4074_v42, %v2780_v7  ;;  %v4034_v55 = vsel %vm2516_vm11, 1.0, %v8581_v14  ;;  %vm2406_vm1 = vcmp.eq.s32.totalorder %v4697_v43, %v8891_v6  ;;  %v2782_v8 = vadd.f32 %v4060_v11, %v2670_v37 }
 0x365   :  { %v2814_v40 = vpop.permute.xlu1 %2813  ;;  %v2672_v5 = vadd.f32 %v4046_v46, %v2560_v9  ;;  %v2452_v48 = vadd.f32 %v4018_v20, %v2340_v17  ;;  %v4062_v32 = vsel %vm2736_vm13, 1.0, %v8581_v14  ;;  %v4048_v26 = vsel %vm2626_vm15, 1.0, %v8581_v14  ;;  %v7589_v37 = vpop.permute.xlu0 %2943 }
 0x366   :  { %8890 = vst [vmem:[#allocation72_spill] sm:$0xff] %v7532_v10  ;;  %vm2846_vm14 = vcmp.eq.s32.totalorder %v4697_v43, %v2814_v40  ;;  %v2562_v54 = vadd.f32 %v4032_v18, %v2450_v60  ;;  %vm2738_vm0 = vcmp.eq.s32.totalorder %v4697_v43, %v6889_v13  ;;  %vm2628_vm3 = vcmp.eq.s32.totalorder %v4697_v43, %v7130_v21  ;;  %v8900_v18 = vld [vmem:[#allocation20_spill] sm:$0xff] }
 0x367   :  { %v4076_v56 = vsel %vm2846_vm14, 1.0, %v8581_v14  ;;  %v3262_v3 = vand.u32 2147483647, %v7513_v16  ;;  %v3261_v41 = vand.u32 2147483647, %v7544_v15  ;;  %v2342_v34 = vadd.f32 %v7181_v58, %v2230_v62  ;;  %8898 = vst [vmem:[#allocation77_spill] sm:$0xff] %v7589_v37 }
 0x368   :  { %v7558_v1 = vadd.f32 %v4076_v56, %v2782_v8  ;;  %v4020_v57 = vsel %vm2406_vm1, 1.0, %v8581_v14  ;;  %vm2518_vm4 = vcmp.eq.s32.totalorder %v4697_v43, %v8894_v59  ;;  %v2784_v13 = vadd.f32 %v4062_v32, %v2672_v5  ;;  %v8902_v8 = vld [vmem:[#allocation118_spill] sm:$0xff] }
 0x369   :  { %v2820_v53 = vpop.permute.xlu1 %2819  ;;  %v2674_v31 = vadd.f32 %v4048_v26, %v2562_v54  ;;  %v2564_v21 = vadd.f32 %v4034_v55, %v2452_v48  ;;  %v4064_v39 = vsel %vm2738_vm0, 1.0, %v8581_v14  ;;  %v4050_v61 = vsel %vm2628_vm3, 1.0, %v8581_v14  ;;  %v8901_v55 = vld [vmem:[#allocation23_spill] sm:$0xff] }
 0x36a   :  { %8893 = vst [vmem:[#allocation74_spill] sm:$0xff] %v7558_v1  ;;  %vm2848_vm5 = vcmp.eq.s32.totalorder %v4697_v43, %v2820_v53  ;;  %v2454_v47 = vadd.f32 %v4020_v57, %v2342_v34  ;;  %vm2740_vm6 = vcmp.eq.s32.totalorder %v4697_v43, %v6948_v35  ;;  %vm2630_vm7 = vcmp.eq.s32.totalorder %v4697_v43, %v7159_v49 }
 0x36b   :  { %v4078_v58 = vsel %vm2848_vm5, 1.0, %v8581_v14  ;;  %vm1496_vm8 = vcmp.eq.s32.totalorder %v4697_v43, %v8897_v52  ;;  %4330 = vpow2.f32 %v6848_v30  ;;  %v3295_v9 = vmul.f32 1.442695, %v6850_v2 }
 0x36c   :  { %v7579_v44 = vadd.f32 %v4078_v58, %v2784_v13  ;;  %v4036_v7 = vsel %vm2518_vm4, 1.0, %v8581_v14  ;;  %v3278_v60 = vsub.f32 0.0, %v3262_v3  ;;  %v2786_v11 = vadd.f32 %v4064_v39, %v2674_v31  ;;  %v8905_v31 = vld [vmem:[#allocation119_spill] sm:$0xff]  ;;  %v8906_v39 = vld [vmem:[#allocation61_spill] sm:$0xff] }
 0x36d   :  { %v2826_v35 = vpop.permute.xlu1 %2825  ;;  %v2676_v49 = vadd.f32 %v4050_v61, %v2564_v21  ;;  %v3264_v46 = vand.u32 2147483647, %v7573_v25  ;;  %v4066_v42 = vsel %vm2740_vm6, 1.0, %v8581_v14  ;;  %v4052_v30 = vsel %vm2630_vm7, 1.0, %v8581_v14 }
 0x36e   :  { %8896 = vst [vmem:[#allocation76_spill] sm:$0xff] %v7579_v44  ;;  %vm2850_vm9 = vcmp.eq.s32.totalorder %v4697_v43, %v2826_v35  ;;  %v3277_v20 = vsub.f32 0.0, %v3261_v41  ;;  %v2566_v17 = vadd.f32 %v4036_v7, %v2454_v47  ;;  %vm2742_vm10 = vcmp.eq.s32.totalorder %v4697_v43, %v6996_v12  ;;  %v8903_v12 = vld [vmem:[#allocation34_spill] sm:$0xff]  ;;  %v2950_v41 = vpop.permute.xlu0 %2949 }
 0x36f   :  { %v4080_v2 = vsel %vm2850_vm9, 1.0, %v8581_v14  ;;  %v1320_v40 = vadd.f32 %v8901_v55, %v8900_v18  ;;  %v3878_v6 = vsel %vm1496_vm8, 1.0, %v8581_v14  ;;  %vm1608_vm11 = vcmp.eq.s32.totalorder %v4697_v43, %v8902_v8  ;;  %v8910_v55 = vld [vmem:[#allocation47_spill] sm:$0xff] }
 0x370   :  { %v7598_v62 = vadd.f32 %v4080_v2, %v2786_v11  ;;  %4332 = vpow2.f32 %v3295_v9  ;;  %v3301_v48 = vmul.f32 1.442695, %v3278_v60  ;;  %v2788_v32 = vadd.f32 %v4066_v42, %v2676_v49  ;;  %v8907_v60 = vld [vmem:[#allocation62_spill] sm:$0xff]  ;;  %v7624_v49 = vpop.f32.mrf.mxu1 }
 0x371   :  { %v2832_v5 = vpop.permute.xlu1 %2831  ;;  %v2678_v26 = vadd.f32 %v4052_v30, %v2566_v17  ;;  %v1432_v56 = vadd.f32 %v8903_v12, %v1320_v40  ;;  %v3280_v54 = vsub.f32 0.0, %v3264_v46  ;;  %v4068_v3 = vsel %vm2742_vm10, 1.0, %v8581_v14  ;;  %8908 = vst [vmem:[#allocation80_spill] sm:$0xff] %v7624_v49  ;;  %v8914_v12 = vld [vmem:[#allocation55_spill] sm:$0xff] }
 0x372   :  { %8899 = vst [vmem:[#allocation78_spill] sm:$0xff] %v7598_v62  ;;  %vm2852_vm12 = vcmp.eq.s32.totalorder %v4697_v43, %v2832_v5  ;;  %v3894_v57 = vsel %vm1608_vm11, 1.0, %v8581_v14  ;;  %v3299_v53 = vmul.f32 1.442695, %v3277_v20  ;;  %vm2966_vm13 = vcmp.eq.s32.totalorder %v4697_v43, %v2950_v41  ;;  %v8912_v5 = vld [vmem:[#allocation63_spill] sm:$0xff]  ;;  %v8916_v41 = vld [vmem:[#allocation58_spill] sm:$0xff] }
 0x373   :  { %v4082_v34 = vsel %vm2852_vm12, 1.0, %v8581_v14  ;;  %v1544_v13 = vadd.f32 %v3878_v6, %v1432_v56  ;;  %vm1720_vm15 = vcmp.eq.s32.totalorder %v4697_v43, %v8905_v31  ;;  %v3328_v61 = vadd.f32 1.0, %v8906_v39  ;;  %v8911_v6 = vld [vmem:[#allocation49_spill] sm:$0xff]  ;;  %v7655_v31 = vpop.f32.mrf.mxu1 }
 0x374   :  { %v7614_v59 = vadd.f32 %v4082_v34, %v2788_v32  ;;  %4334 = vpow2.f32 %v3301_v48  ;;  %v2790_v58 = vadd.f32 %v4068_v3, %v2678_v26  ;;  %v3305_v52 = vmul.f32 1.442695, %v3280_v54  ;;  %v8913_v32 = vld [vmem:[#allocation52_spill] sm:$0xff]  ;;  %8919 = vst [vmem:[#allocation82_spill] sm:$0xff] %v7655_v31 }
 0x375   :  { %v2838_v21 = vpop.permute.xlu1 %2837  ;;  %v1656_v47 = vadd.f32 %v3894_v57, %v1544_v13  ;;  %v4100_v9 = vsel %vm2966_vm13, 1.0, %v8581_v14  ;;  %v3910_v35 = vsel %vm1720_vm15, 1.0, %v8581_v14  ;;  %v3319_v11 = vadd.f32 1.0, %v8907_v60  ;;  %v8915_v54 = vld [vmem:[#allocation64_spill] sm:$0xff] }
 0x376   :  { %8904 = vst [vmem:[#allocation79_spill] sm:$0xff] %v7614_v59  ;;  %vm2854_vm1 = vcmp.eq.s32.totalorder %v4697_v43, %v2838_v21  ;;  %4336 = vpow2.f32 %v3299_v53  ;;  %v3331_v17 = vmul.f32 -0.5, %v8906_v39  ;;  %v3263_v18 = vand.u32 2147483647, %v7624_v49  ;;  %v8917_v53 = vld [vmem:[#allocation60_spill] sm:$0xff] }
 0x377   :  { %v4084_v7 = vsel %vm2854_vm1, 1.0, %v8581_v14  ;;  %4338 = vlog2.f32 %v3328_v61  ;;  %v1768_v20 = vadd.f32 %v3910_v35, %v1656_v47  ;;  %v3346_v48 = vadd.f32 1.0, %v8912_v5  ;;  %v8918_v61 = vld [vmem:[#allocation149_spill] sm:$0xff] }
 0x378   :  { %v2902_v46 = vadd.f32 %v4084_v7, %v2790_v58  ;;  %v7626_v42 = vpop.eup %4330  ;;  %4340 = vpow2.f32 %v3305_v52  ;;  %v3337_v3 = vadd.f32 1.0, %v8915_v54  ;;  %vm1944_vm14 = vcmp.eq.s32.totalorder %v4697_v43, %v8918_v61 }
 0x379   :  { %4342 = vlog2.f32 %v3319_v11  ;;  %v3332_v47 = vadd.f32 1.0, %v3331_v17  ;;  %v3322_v52 = vmul.f32 -0.5, %v8907_v60  ;;  %v3279_v7 = vsub.f32 0.0, %v3263_v18  ;;  %v8920_v17 = vld [vmem:[#allocation152_spill] sm:$0xff] }
 0x37a   :  { %v7628_v30 = vpop.permute.xlu1 %2907  ;;  %v7630_v2 = vadd.f32 %v4100_v9, %v2902_v46  ;;  %v3334_v35 = vand.u32 2147483647, %v8906_v39  ;;  %4344 = vlog2.f32 %v3346_v48  ;;  %v3349_v11 = vmul.f32 -0.5, %v8912_v5 }
 0x37b   :  { %v3340_v46 = vmul.f32 -0.5, %v8915_v54  ;;  %v3325_v21 = vand.u32 2147483647, %v8907_v60  ;;  %4346 = vlog2.f32 %v3337_v3  ;;  %v3364_v13 = vadd.f32 1.0, %v7626_v42 }
 0x37c   :  { %8909 = vst [vmem:[#allocation81_spill] sm:$0xff] %v7630_v2  ;;  %vm1832_vm0 = vcmp.eq.s32.totalorder %v4697_v43, %v8920_v17  ;;  %v3367_v9 = vmul.f32 -0.5, %v7626_v42  ;;  %v3942_v34 = vsel %vm1944_vm14, 1.0, %v8581_v14  ;;  %v7673_v3 = vmul.f32 %v8906_v39, %v3332_v47  ;;  %v7678_v2 = vpop.permute.xlu0 %3019 }
 0x37d   :  { %v7641_v57 = vpop.eup %4332  ;;  %v3323_v8 = vadd.f32 1.0, %v3322_v52  ;;  %v7675_v17 = vmul.f32 1.442695, %v3279_v7  ;;  %vm7680_vm3 = vcmp.lt.f32.partialorder %v3334_v35, 0.0004427343  ;;  %v3350_v61 = vadd.f32 1.0, %v3349_v11 }
 0x37e   :  { %v7648_v58 = vpop.permute.xlu1 %2910  ;;  %v3355_v18 = vadd.f32 1.0, %v7641_v57  ;;  %v3341_v59 = vadd.f32 1.0, %v3340_v46  ;;  %v3926_v36 = vsel %vm1832_vm0, 1.0, %v8581_v14  ;;  %v3266_v62 = vand.u32 2147483647, %v7655_v31  ;;  %v7696_v46 = vpop.f32.mrf.mxu1 }
 0x37f   :  { %vm7688_vm4 = vcmp.lt.f32.partialorder %v3325_v21, 0.0004427343  ;;  %v3352_v47 = vand.u32 2147483647, %v8912_v5  ;;  %4348 = vlog2.f32 %v3364_v13  ;;  %v3358_v52 = vmul.f32 -0.5, %v7641_v57  ;;  %8925 = vst [vmem:[#allocation83_spill] sm:$0xff] %v7696_v46 }
 0x380   :  { %v3343_v7 = vand.u32 2147483647, %v8915_v54  ;;  %v3368_v35 = vadd.f32 1.0, %v3367_v9  ;;  %4350 = vlog2.f32 %v3355_v18  ;;  %v7701_v21 = vmul.f32 %v8907_v60, %v3323_v8  ;;  %v8927_v13 = vld [vmem:[#allocation185_spill] sm:$0xff] }
 0x381   :  { %v7670_v26 = vpop.eup %4334  ;;  %v1880_v44 = vadd.f32 %v3926_v36, %v1768_v20  ;;  %vm2056_vm5 = vcmp.eq.s32.totalorder %v4697_v43, %v8927_v13  ;;  %v7709_v9 = vmul.f32 %v8912_v5, %v3350_v61  ;;  %v7712_v18 = vmul.f32 %v8915_v54, %v3341_v59  ;;  %v7718_v13 = vpop.permute.xlu0 %3128 }
 0x382   :  { %v7668_v56 = vpop.permute.xlu1 %2916  ;;  %v3382_v11 = vadd.f32 1.0, %v7670_v26  ;;  %v3385_v51 = vmul.f32 -0.5, %v7670_v26  ;;  %v3370_v49 = vand.u32 2147483647, %v7626_v42  ;;  %v3359_v8 = vadd.f32 1.0, %v3358_v52 }
 0x383   :  { %v7686_v37 = vpop.eup %4336  ;;  %v3361_v1 = vand.u32 2147483647, %v7641_v57  ;;  %v3282_v36 = vsub.f32 0.0, %v3266_v62  ;;  %v7721_v28 = vmul.f32 %v7626_v42, %v3368_v35  ;;  %v3958_v5 = vsel %vm2056_vm5, 1.0, %v8581_v14 }
 0x384   :  { %v4339_v31 = vpop.eup %4338  ;;  %v3373_v19 = vadd.f32 1.0, %v7686_v37  ;;  %4352 = vlog2.f32 %v3382_v11  ;;  %v3376_v59 = vmul.f32 -0.5, %v7686_v37  ;;  %v3386_v50 = vadd.f32 1.0, %v3385_v51 }
 0x385   :  { %v7706_v0 = vpop.eup %4340  ;;  %v3330_v61 = vmul.f32 0.6931472, %v4339_v31  ;;  %v1992_v52 = vadd.f32 %v3942_v34, %v1880_v44  ;;  %vm2168_vm6 = vcmp.eq.s32.totalorder %v4697_v43, %v8929_v23  ;;  %vm7729_vm7 = vcmp.lt.f32.partialorder %v3352_v47, 0.0004427343  ;;  %v7739_v31 = vpop.f32.mrf.mxu1 }
 0x386   :  { %v7698_v40 = vpop.permute.xlu1 %2922  ;;  %v4343_v60 = vpop.eup %4342  ;;  %vm7733_vm8 = vcmp.lt.f32.partialorder %v3343_v7, 0.0004427343  ;;  %4354 = vlog2.f32 %v3373_v19  ;;  %v3403_v35 = vmul.f32 -0.5, %v7706_v0  ;;  %v3265_v11 = vand.u32 2147483647, %v7696_v46 }
 0x387   :  { %8926 = vst [vmem:[#allocation85_spill] sm:$0xff] %v7698_v40  ;;  %v3321_v62 = vmul.f32 0.6931472, %v4343_v60  ;;  %v4345_v51 = vpop.eup %4344  ;;  %v7742_v44 = vmul.f32 %v7641_v57, %v3359_v8  ;;  %v3388_v34 = vand.u32 2147483647, %v7670_v26  ;;  %v2104_v47 = vadd.f32 %v3958_v5, %v1992_v52  ;;  %v8934_v60 = vld [vmem:[#allocation11_spill] sm:$0xff]  ;;  %v7762_v52 = vpop.permute.xlu0 %3134 }
 0x388   :  { %vm2280_vm9 = vcmp.eq.s32.totalorder %v4697_v43, %v8934_v60  ;;  %v4347_v7 = vpop.eup %4346  ;;  %v3379_v19 = vand.u32 2147483647, %v7686_v37  ;;  %v3309_v10 = vmul.f32 1.442695, %v3282_v36  ;;  %v3974_v46 = vsel %vm2168_vm6, 1.0, %v8581_v14  ;;  %v8942_v60 = vld [vmem:[#allocation48_spill] sm:$0xff] }
 0x389   :  { %v3336_v57 = vsel %vm7680_vm3, %v7673_v3, %v3330_v61  ;;  %v7758_v8 = vmul.f32 %v7670_v26, %v3386_v50  ;;  %v3400_v5 = vadd.f32 1.0, %v7706_v0  ;;  %v3327_v23 = vsel %vm7688_vm4, %v7701_v21, %v3321_v62 }
 0x38a   :  { %v7725_v54 = vpop.permute.xlu1 %2928  ;;  %v3404_v36 = vadd.f32 1.0, %v3403_v35  ;;  %v3281_v25 = vsub.f32 0.0, %v3265_v11  ;;  %v3990_v50 = vsel %vm2280_vm9, 1.0, %v8581_v14  ;;  %v3348_v26 = vmul.f32 0.6931472, %v4345_v51 }
 0x38b   :  { %8928 = vst [vmem:[#allocation86_spill] sm:$0xff] %v7725_v54  ;;  %v3377_v54 = vadd.f32 1.0, %v3376_v59  ;;  %v3339_v48 = vmul.f32 0.6931472, %v4347_v7  ;;  %vm7773_vm10 = vcmp.lt.f32.partialorder %v3370_v49, 0.0004427343  ;;  %v2216_v61 = vadd.f32 %v3974_v46, %v2104_v47 }
 0x38c   :  { %v8938_v59 = vld [vmem:[#allocation201_spill] sm:$0xff]  ;;  %v4349_v39 = vpop.eup %4348  ;;  %v8939_v21 = vmin.f32 %v8910_v55, 0.0  ;;  %vm7783_vm12 = vcmp.lt.f32.partialorder %v3361_v1, 0.0004427343  ;;  %4356 = vpow2.f32 %v7675_v17  ;;  %v3268_v49 = vand.u32 2147483647, %v7739_v31 }
 0x38d   :  { %vm2392_vm11 = vcmp.eq.s32.totalorder %v4697_v43, %v8938_v59  ;;  %v7788_v11 = vmul.f32 %v7686_v37, %v3377_v54  ;;  %v4351_v51 = vpop.eup %4350  ;;  %4358 = vlog2.f32 %v3400_v5  ;;  %v2328_v55 = vadd.f32 %v3990_v50, %v2216_v61  ;;  %v8944_v61 = vld [vmem:[#allocation30_spill] sm:$0xff] }
 0x38e   :  { %v7752_v40 = vpop.permute.xlu1 %2934  ;;  %v7781_v62 = vsub.f32 %v8939_v21, %v3336_v57  ;;  %vm2504_vm13 = vcmp.eq.s32.totalorder %v4697_v43, %v8942_v60  ;;  %v8943_v1 = vmin.f32 %v8911_v6, 0.0  ;;  %4360 = vpow2.f32 %v3309_v10 }
 0x38f   :  { %8935 = vst [vmem:[#allocation88_spill] sm:$0xff] %v7752_v40  ;;  %v7767_v40 = vpop.f32.mrf.mxu1  ;;  %v3307_v37 = vmul.f32 1.442695, %v3281_v25  ;;  %v4006_v17 = vsel %vm2392_vm11, 1.0, %v8581_v14  ;;  %v3354_v54 = vsel %vm7729_vm7, %v7709_v9, %v3348_v26  ;;  %v3345_v57 = vsel %vm7733_vm8, %v7712_v18, %v3339_v48 }
 0x390   :  { %v3267_v47 = vand.u32 2147483647, %v7767_v40  ;;  %v7799_v7 = vsub.f32 %v8943_v1, %v3327_v23  ;;  %v3366_v5 = vmul.f32 0.6931472, %v4349_v39  ;;  %v7812_v6 = vmul.f32 %v7706_v0, %v3404_v36  ;;  %v7814_v23 = vpop.permute.xlu0 %3137 }
 0x391   :  { %v3357_v10 = vmul.f32 0.6931472, %v4351_v51  ;;  %v3284_v25 = vsub.f32 0.0, %v3268_v49  ;;  %v4022_v50 = vsel %vm2504_vm13, 1.0, %v8581_v14  ;;  %vm2951_vm15 = vcmp.eq.s32.totalorder %v4697_v43, %v7339_v33  ;;  %v4353_v20 = vpop.eup %4352  ;;  %v7838_v49 = vpop.f32.mrf.mxu1 }
 0x392   :  { %v7792_v46 = vpop.permute.xlu1 %2940  ;;  %v3283_v9 = vsub.f32 0.0, %v3267_v47  ;;  %v2440_v26 = vadd.f32 %v4006_v17, %v2328_v55  ;;  %vm2616_vm1 = vcmp.eq.s32.totalorder %v4697_v43, %v8944_v61  ;;  %v8945_v18 = vmin.f32 %v8913_v32, 0.0 }
 0x393   :  { %v8946_v36 = vmin.f32 %v8914_v12, 0.0  ;;  %vm7830_vm0 = vcmp.lt.f32.partialorder %v3388_v34, 0.0004427343  ;;  %vm7834_vm3 = vcmp.lt.f32.partialorder %v3379_v19, 0.0004427343  ;;  %4362 = vpow2.f32 %v3307_v37  ;;  %v4355_v32 = vpop.eup %4354  ;;  %v7919_v21 = vpop.f32.mrf.mxu1 }
 0x394   :  { %v7824_v42 = vsub.f32 %v8945_v18, %v3354_v54  ;;  %v2552_v47 = vadd.f32 %v4022_v50, %v2440_v26  ;;  %vm2728_vm4 = vcmp.eq.s32.totalorder %v4697_v43, %v7205_v45  ;;  %v4085_v12 = vsel %vm2951_vm15, 1.0, %v8581_v14  ;;  %v7863_v37 = vpop.permute.xlu0 %3140 }
 0x395   :  { %v7828_v48 = vsub.f32 %v8946_v36, %v3345_v57  ;;  %v3372_v19 = vsel %vm7773_vm10, %v7721_v28, %v3366_v5  ;;  %v3313_v55 = vmul.f32 1.442695, %v3284_v25  ;;  %v4038_v60 = vsel %vm2616_vm1, 1.0, %v8581_v14 }
 0x396   :  { %v2947_v59 = vpop.permute.xlu1 %2946  ;;  %vm3175_vm5 = vcmp.eq.s32.totalorder %v4697_v43, %v7718_v13  ;;  %v3363_v45 = vsel %vm7783_vm12, %v7742_v44, %v3357_v10  ;;  %v3384_v33 = vmul.f32 0.6931472, %v4353_v20  ;;  %v3270_v1 = vand.u32 2147483647, %v7838_v49  ;;  %v8951_v13 = vld [vmem:[#allocation65_spill] sm:$0xff] }
 0x397   :  { %vm2965_vm14 = vcmp.eq.s32.totalorder %v4697_v43, %v2947_v59  ;;  %v3375_v3 = vmul.f32 0.6931472, %v4355_v32  ;;  %v4054_v17 = vsel %vm2728_vm4, 1.0, %v8581_v14  ;;  %v2999_v54 = vadd.f32 %v4085_v12, %v7441_v27 }
 0x398   :  { %v4099_v51 = vsel %vm2965_vm14, 1.0, %v8581_v14  ;;  %v2664_v57 = vadd.f32 %v4038_v60, %v2552_v47  ;;  %vm2840_vm7 = vcmp.eq.s32.totalorder %v4697_v43, %v8951_v13  ;;  %v4117_v44 = vsel %vm3175_vm5, 1.0, %v8581_v14 }
 0x399   :  { %v7848_v34 = vadd.f32 %v4099_v51, %v7425_v22  ;;  %v3311_v22 = vmul.f32 1.442695, %v3283_v9  ;;  %v8952_v5 = vmin.f32 %v8916_v41, 0.0  ;;  %v8953_v25 = vmin.f32 %v8917_v53, 0.0  ;;  %v7882_v59 = vpop.eup %4356  ;;  %v7904_v51 = vpop.permute.xlu0 %3143 }
 0x39a   :  { %vm2954_vm8 = vcmp.eq.s32.totalorder %v4697_v43, %v7385_v29  ;;  %4364 = vpow2.f32 %v3313_v55  ;;  %v2776_v20 = vadd.f32 %v4054_v17, %v2664_v57  ;;  %vm2952_vm9 = vcmp.eq.s32.totalorder %v4697_v43, %v7628_v30  ;;  %v4359_v9 = vpop.eup %4358 }
 0x39b   :  { %v3017_v28 = vpop.permute.xlu1 %3016  ;;  %v7874_v10 = vsub.f32 %v8952_v5, %v3372_v19  ;;  %v7878_v50 = vsub.f32 %v8953_v25, %v3363_v45  ;;  %vm2953_vm10 = vcmp.eq.s32.totalorder %v4697_v43, %v7648_v58  ;;  %4366 = vpow2.f32 %v3311_v22  ;;  %v7892_v18 = vpop.eup %4360 }
 0x39c   :  { %vm3063_vm6 = vcmp.eq.s32.totalorder %v4697_v43, %v3017_v28  ;;  %v3286_v53 = vsub.f32 0.0, %v3270_v1  ;;  %v4070_v26 = vsel %vm2840_vm7, 1.0, %v8581_v14  ;;  %v3390_v36 = vsel %vm7830_vm0, %v7758_v8, %v3384_v33 }
 0x39d   :  { %v4101_v35 = vsel %vm3063_vm6, 1.0, %v8581_v14  ;;  %v3381_v30 = vsel %vm7834_vm3, %v7788_v11, %v3375_v3  ;;  %v4088_v58 = vsel %vm2954_vm8, 1.0, %v8581_v14  ;;  %v4086_v32 = vsel %vm2952_vm9, 1.0, %v8581_v14  ;;  %v7948_v13 = vpop.permute.xlu0 %3146 }
 0x39e   :  { %v3111_v27 = vadd.f32 %v4101_v35, %v2999_v54  ;;  %v4087_v47 = vsel %vm2953_vm10, 1.0, %v8581_v14  ;;  %vm3178_vm12 = vcmp.eq.s32.totalorder %v4697_v43, %v7814_v23  ;;  %v8954_v11 = vand.u32 2147483647, %v7706_v0 }
 0x39f   :  { %v3023_v41 = vpop.permute.xlu1 %3022  ;;  %v3391_v29 = vadd.f32 1.0, %v7882_v59  ;;  %v2888_v12 = vadd.f32 %v4070_v26, %v2776_v20  ;;  %vm3064_vm15 = vcmp.eq.s32.totalorder %v4697_v43, %v7678_v2  ;;  %vm3177_vm1 = vcmp.eq.s32.totalorder %v4697_v43, %v7762_v52 }
 0x3a0   :  { %v3223_v61 = vadd.f32 %v4117_v44, %v3111_v27  ;;  %vm3065_vm11 = vcmp.eq.s32.totalorder %v4697_v43, %v3023_v41  ;;  %vm7914_vm13 = vcmp.lt.f32.partialorder %v8954_v11, 0.0004427343  ;;  %v3002_v0 = vadd.f32 %v4088_v58, %v7499_v63  ;;  %v7929_v60 = vpop.eup %4362 }
 0x3a1   :  { %v3000_v45 = vadd.f32 %v4086_v32, %v2888_v12  ;;  %v3001_v33 = vadd.f32 %v4087_v47, %v7475_v4  ;;  %v4120_v2 = vsel %vm3178_vm12, 1.0, %v8581_v14  ;;  %v3394_v1 = vmul.f32 -0.5, %v7882_v59  ;;  %v7975_v11 = vpop.permute.xlu0 %3149 }
 0x3a2   :  { %v3479_v8 = vmul.f32 %v7799_v7, %v3223_v61  ;;  %v4103_v7 = vsel %vm3065_vm11, 1.0, %v8581_v14  ;;  %v3269_v63 = vand.u32 2147483647, %v7919_v21  ;;  %v4102_v28 = vsel %vm3064_vm15, 1.0, %v8581_v14 }
 0x3a3   :  { %v3026_v19 = vpop.permute.xlu1 %3025  ;;  %v8957_v17 = vmin.f32 %v7513_v16, 0.0  ;;  %v8958_v4 = vmin.f32 %v7544_v15, 0.0  ;;  %v3402_v23 = vmul.f32 0.6931472, %v4359_v9  ;;  %v3113_v44 = vadd.f32 %v4103_v7, %v3001_v33 }
 0x3a4   :  { %vm3066_vm14 = vcmp.eq.s32.totalorder %v4697_v43, %v3026_v19  ;;  %v3495_v55 = vsel %vm159_vm2, %v3479_v8, 0.0  ;;  %v3397_v35 = vand.u32 2147483647, %v7882_v59  ;;  %v4119_v5 = vsel %vm3177_vm1, 1.0, %v8581_v14 }
 0x3a5   :  { %v4104_v22 = vsel %vm3066_vm14, 1.0, %v8581_v14  ;;  %3496 = vadd.xlane.f32.xlu1 %v3495_v55  ;;  %v7942_v54 = vsub.f32 %v8957_v17, %v3390_v36  ;;  %v7946_v57 = vsub.f32 %v8958_v4, %v3381_v30  ;;  %vm2955_vm0 = vcmp.eq.s32.totalorder %v4697_v43, %v7668_v56  ;;  %v8959_v55 = vld [vmem:[#allocation75_spill] sm:$0xff]  ;;  %v7999_v17 = vpop.permute.xlu0 %3152 }
 0x3a6   :  { %v3114_v3 = vadd.f32 %v4104_v22, %v3002_v0  ;;  %4368 = vlog2.f32 %v3391_v29  ;;  %v3317_v15 = vmul.f32 1.442695, %v3286_v53  ;;  %v3112_v27 = vadd.f32 %v4102_v28, %v3000_v45 }
 0x3a7   :  { %v3395_v20 = vadd.f32 1.0, %v3394_v1  ;;  %v3285_v41 = vsub.f32 0.0, %v3269_v63  ;;  %v3418_v61 = vadd.f32 1.0, %v7892_v18  ;;  %v4089_v52 = vsel %vm2955_vm0, 1.0, %v8581_v14  ;;  %v7962_v56 = vpop.eup %4364  ;;  %v8962_v63 = vld [vmem:[#allocation72_spill] sm:$0xff] }
 0x3a8   :  { %v3226_v16 = vadd.f32 %v4120_v2, %v3114_v3  ;;  %v3132_v25 = vpop.permute.xlu1 %3131  ;;  %v3225_v36 = vadd.f32 %v4119_v5, %v3113_v44  ;;  %v3408_v53 = vsel %vm7914_vm13, %v7812_v6, %v3402_v23  ;;  %v3421_v58 = vmul.f32 -0.5, %v7892_v18 }
 0x3a9   :  { %vm3176_vm3 = vcmp.eq.s32.totalorder %v4697_v43, %v3132_v25  ;;  %vm2956_vm4 = vcmp.eq.s32.totalorder %v4697_v43, %v7423_v24  ;;  %v3424_v47 = vand.u32 2147483647, %v7892_v18  ;;  %v3409_v8 = vadd.f32 1.0, %v7929_v60 }
 0x3aa   :  { %v4118_v9 = vsel %vm3176_vm3, 1.0, %v8581_v14  ;;  %v3482_v26 = vmul.f32 %v7824_v42, %v3226_v16  ;;  %v7971_v42 = vpop.eup %4366  ;;  %4370 = vpow2.f32 %v3317_v15  ;;  %v3315_v39 = vmul.f32 1.442695, %v3285_v41  ;;  %v8965_v16 = vld [vmem:[#allocation70_spill] sm:$0xff] }
 0x3ab   :  { %v3224_v30 = vadd.f32 %v4118_v9, %v3112_v27  ;;  %v3003_v12 = vadd.f32 %v4089_v52, %v7289_v38  ;;  %vm3179_vm5 = vcmp.eq.s32.totalorder %v4697_v43, %v7863_v37  ;;  %v4090_v24 = vsel %vm2956_vm4, 1.0, %v8581_v14 }
 0x3ac   :  { %v3504_v32 = vsel %vm159_vm2, %v3482_v26, 0.0  ;;  %v3481_v0 = vmul.f32 %v7828_v48, %v3225_v36  ;;  %v8960_v45 = vmin.f32 %v8959_v55, 0.0  ;;  %4372 = vlog2.f32 %v3418_v61  ;;  %v8966_v61 = vld [vmem:[#allocation66_spill] sm:$0xff] }
 0x3ad   :  { %v3029_v29 = vpop.permute.xlu1 %3028  ;;  %3505 = vadd.xlane.f32.xlu1 %v3504_v32  ;;  %v3480_v6 = vmul.f32 %v7781_v62, %v3224_v30  ;;  %v8961_v62 = vld [vmem:[#allocation85_spill] sm:$0xff]  ;;  %v3422_v37 = vadd.f32 1.0, %v3421_v58  ;;  %4374 = vlog2.f32 %v3409_v8  ;;  %v3412_v2 = vmul.f32 -0.5, %v7929_v60 }
 0x3ae   :  { %vm3067_vm6 = vcmp.eq.s32.totalorder %v4697_v43, %v3029_v29  ;;  %v7988_v33 = vsub.f32 %v8960_v45, %v3408_v53  ;;  %vm2957_vm7 = vcmp.eq.s32.totalorder %v4697_v43, %v8961_v62  ;;  %v4121_v22 = vsel %vm3179_vm5, 1.0, %v8581_v14  ;;  %v8967_v53 = vld [vmem:[#allocation86_spill] sm:$0xff]  ;;  %v8968_v29 = vld [vmem:[#allocation71_spill] sm:$0xff] }
 0x3af   :  { %v4105_v19 = vsel %vm3067_vm6, 1.0, %v8581_v14  ;;  %v3498_v7 = vsel %vm159_vm2, %v3480_v6, 0.0  ;;  %vm3180_vm8 = vcmp.eq.s32.totalorder %v4697_v43, %v7904_v51  ;;  %v3004_v28 = vadd.f32 %v4090_v24, %v8962_v63 }
 0x3b0   :  { %v3115_v38 = vadd.f32 %v4105_v19, %v3003_v12  ;;  %3499 = vadd.xlane.f32.xlu0 %v3498_v7  ;;  %4376 = vpow2.f32 %v3315_v39  ;;  %v4091_v3 = vsel %vm2957_vm7, 1.0, %v8581_v14  ;;  %v3501_v23 = vsel %vm159_vm2, %v3481_v0, 0.0  ;;  %v3156_v39 = vpop.permute.xlu0 %3155  ;;  %v8969_v7 = vld [vmem:[#allocation74_spill] sm:$0xff] }
 0x3b1   :  { %v3032_v1 = vpop.permute.xlu1 %3031  ;;  %vm8003_vm10 = vcmp.lt.f32.partialorder %v3397_v35, 0.0004427343  ;;  %v3427_v5 = vadd.f32 1.0, %v7971_v42  ;;  %vm2958_vm11 = vcmp.eq.s32.totalorder %v4697_v43, %v8965_v16  ;;  %v3396_v27 = vmul.f32 %v7882_v59, %v3395_v20 }
 0x3b2   :  { %v3227_v48 = vadd.f32 %v4121_v22, %v3115_v38  ;;  %vm3068_vm9 = vcmp.eq.s32.totalorder %v4697_v43, %v3032_v1  ;;  %v8013_v41 = vmul.f32 %v7892_v18, %v3422_v37  ;;  %v4122_v35 = vsel %vm3180_vm8, 1.0, %v8581_v14 }
 0x3b3   :  { %v4106_v4 = vsel %vm3068_vm9, 1.0, %v8581_v14  ;;  %vm3181_vm12 = vcmp.eq.s32.totalorder %v4697_v43, %v7948_v13  ;;  %v4369_v26 = vpop.eup %4368  ;;  %v3005_v52 = vadd.f32 %v4091_v3, %v8966_v61  ;;  %v3413_v59 = vadd.f32 1.0, %v3412_v2 }
 0x3b4   :  { %v3116_v25 = vadd.f32 %v4106_v4, %v3004_v28  ;;  %3502 = vadd.xlane.f32.xlu0 %v3501_v23  ;;  %v3483_v15 = vmul.f32 %v7878_v50, %v3227_v48  ;;  %v3415_v20 = vand.u32 2147483647, %v7929_v60  ;;  %v4092_v51 = vsel %vm2958_vm11, 1.0, %v8581_v14  ;;  %v8974_v23 = vld [vmem:[#allocation67_spill] sm:$0xff] }
 0x3b5   :  { %v3035_v9 = vpop.permute.xlu1 %3034  ;;  %4378 = vlog2.f32 %v3427_v5  ;;  %vm2959_vm15 = vcmp.eq.s32.totalorder %v4697_v43, %v8967_v53  ;;  %v3393_v8 = vmul.f32 0.6931472, %v4369_v26  ;;  %vm2960_vm1 = vcmp.eq.s32.totalorder %v4697_v43, %v8968_v29  ;;  %v8977_v26 = vld [vmem:[#allocation88_spill] sm:$0xff] }
 0x3b6   :  { %v3228_v36 = vadd.f32 %v4122_v35, %v3116_v25  ;;  %vm3069_vm13 = vcmp.eq.s32.totalorder %v4697_v43, %v3035_v9  ;;  %v3507_v50 = vsel %vm159_vm2, %v3483_v15, 0.0  ;;  %v4123_v6 = vsel %vm3181_vm12, 1.0, %v8581_v14  ;;  %v3159_v15 = vpop.permute.xlu0 %3158 }
 0x3b7   :  { %v4107_v30 = vsel %vm3069_vm13, 1.0, %v8581_v14  ;;  %vm3182_vm14 = vcmp.eq.s32.totalorder %v4697_v43, %v7975_v11  ;;  %v8041_v24 = vpop.eup %4370  ;;  %v3006_v0 = vadd.f32 %v4092_v51, %v8969_v7  ;;  %v3436_v55 = vadd.f32 1.0, %v7962_v56  ;;  %v8979_v51 = vld [vmem:[#allocation76_spill] sm:$0xff] }
 0x3b8   :  { %v3117_v58 = vadd.f32 %v4107_v30, %v3005_v52  ;;  %3508 = vadd.xlane.f32.xlu0 %v3507_v50  ;;  %v3484_v32 = vmul.f32 %v7874_v10, %v3228_v36  ;;  %v8048_v45 = vmul.f32 -0.5, %v7962_v56  ;;  %v4093_v13 = vsel %vm2959_vm15, 1.0, %v8581_v14  ;;  %v8978_v50 = vld [vmem:[#allocation73_spill] sm:$0xff] }
 0x3b9   :  { %v3038_v12 = vpop.permute.xlu1 %3037  ;;  %v8056_v38 = vmul.f32 %v7929_v60, %v3413_v59  ;;  %vm8058_vm3 = vcmp.lt.f32.partialorder %v3415_v20, 0.0004427343  ;;  %v3442_v2 = vand.u32 2147483647, %v7962_v56  ;;  %v4373_v48 = vpop.eup %4372  ;;  %v3399_v63 = vsel %vm8003_vm10, %v3396_v27, %v3393_v8 }
 0x3ba   :  { %v3229_v19 = vadd.f32 %v4123_v6, %v3117_v58  ;;  %vm3070_vm0 = vcmp.eq.s32.totalorder %v4697_v43, %v3038_v12  ;;  %v3510_v10 = vsel %vm159_vm2, %v3484_v32, 0.0  ;;  %v4094_v28 = vsel %vm2960_vm1, 1.0, %v8581_v14  ;;  %v4375_v4 = vpop.eup %4374 }
 0x3bb   :  { %v4108_v62 = vsel %vm3070_vm0, 1.0, %v8581_v14  ;;  %3511 = vadd.xlane.f32.xlu1 %v3510_v10  ;;  %v4124_v60 = vsel %vm3182_vm14, 1.0, %v8581_v14  ;;  %vm3183_vm4 = vcmp.eq.s32.totalorder %v4697_v43, %v7999_v17  ;;  %vm8078_vm5 = vcmp.lt.f32.partialorder %v3424_v47, 0.0004427343  ;;  %v8975_v47 = vld [vmem:[#allocation80_spill] sm:$0xff] }
 0x3bc   :  { %v3118_v22 = vadd.f32 %v4108_v62, %v3006_v0  ;;  %v3485_v1 = vmul.f32 %v7946_v57, %v3229_v19  ;;  %v3007_v44 = vadd.f32 %v4093_v13, %v8974_v23  ;;  %4380 = vlog2.f32 %v3436_v55  ;;  %v3162_v55 = vpop.permute.xlu0 %3161  ;;  %v8980_v62 = vld [vmem:[#allocation68_spill] sm:$0xff] }
 0x3bd   :  { %v3041_v3 = vpop.permute.xlu1 %3040  ;;  %v3430_v11 = vmul.f32 -0.5, %v7971_v42  ;;  %v3454_v25 = vadd.f32 1.0, %v8041_v24  ;;  %v8088_v18 = vpop.eup %4376  ;;  %v8976_v35 = vmin.f32 %v8975_v47, 0.0  ;;  %vm2961_vm7 = vcmp.eq.s32.totalorder %v4697_v43, %v8977_v26 }
 0x3be   :  { %v3230_v5 = vadd.f32 %v4124_v60, %v3118_v22  ;;  %vm3071_vm6 = vcmp.eq.s32.totalorder %v4697_v43, %v3041_v3  ;;  %v3513_v16 = vsel %vm159_vm2, %v3485_v1, 0.0  ;;  %v3411_v36 = vmul.f32 0.6931472, %v4375_v4 }
 0x3bf   :  { %v4109_v27 = vsel %vm3071_vm6, 1.0, %v8581_v14  ;;  %3514 = vadd.xlane.f32.xlu0 %v3513_v16  ;;  %v3471_v9 = vsub.f32 %v8976_v35, %v3399_v63  ;;  %vm2962_vm8 = vcmp.eq.s32.totalorder %v4697_v43, %v8978_v50  ;;  %v4125_v59 = vsel %vm3183_vm4, 1.0, %v8581_v14  ;;  %v8981_v63 = vld [vmem:[#allocation83_spill] sm:$0xff] }
 0x3c0   :  { %v3119_v61 = vadd.f32 %v4109_v27, %v3007_v44  ;;  %v3486_v52 = vmul.f32 %v7942_v54, %v3230_v5  ;;  %v3008_v30 = vadd.f32 %v4094_v28, %v8979_v51  ;;  %vm3184_vm9 = vcmp.eq.s32.totalorder %v4697_v43, %v3156_v39  ;;  %v8983_v44 = vld [vmem:[#allocation77_spill] sm:$0xff]  ;;  %v8984_v5 = vld [vmem:[#allocation78_spill] sm:$0xff]  ;;  %v3165_v47 = vpop.permute.xlu0 %3164 }
 0x3c1   :  { %v3044_v20 = vpop.permute.xlu1 %3043  ;;  %v3420_v54 = vmul.f32 0.6931472, %v4373_v48  ;;  %v3445_v32 = vadd.f32 1.0, %v8088_v18  ;;  %v4095_v8 = vsel %vm2961_vm7, 1.0, %v8581_v14  ;;  %v3433_v17 = vand.u32 2147483647, %v7971_v42 }
 0x3c2   :  { %v3231_v53 = vadd.f32 %v4125_v59, %v3119_v61  ;;  %vm3072_vm10 = vcmp.eq.s32.totalorder %v4697_v43, %v3044_v20  ;;  %v3516_v58 = vsel %vm159_vm2, %v3486_v52, 0.0  ;;  %4382 = vlog2.f32 %v3454_v25  ;;  %v4379_v19 = vpop.eup %4378  ;;  %v8989_v51 = vld [vmem:[#allocation69_spill] sm:$0xff] }
 0x3c3   :  { %v4110_v29 = vsel %vm3072_vm10, 1.0, %v8581_v14  ;;  %3517 = vadd.xlane.f32.xlu1 %v3516_v58  ;;  %v3417_v7 = vsel %vm8058_vm3, %v8056_v38, %v3411_v36  ;;  %v4096_v0 = vsel %vm2962_vm8, 1.0, %v8581_v14  ;;  %v4126_v10 = vsel %vm3184_vm9, 1.0, %v8581_v14 }
 0x3c4   :  { %v3120_v6 = vadd.f32 %v4110_v29, %v3008_v30  ;;  %v3487_v12 = vmul.f32 %v3471_v9, %v3231_v53  ;;  %vm3185_vm11 = vcmp.eq.s32.totalorder %v4697_v43, %v3159_v15  ;;  %v3009_v22 = vadd.f32 %v4095_v8, %v8980_v62  ;;  %v8985_v9 = vld [vmem:[#allocation82_spill] sm:$0xff] }
 0x3c5   :  { %v3047_v13 = vpop.permute.xlu1 %3046  ;;  %v3426_v37 = vsel %vm8078_vm5, %v8013_v41, %v3420_v54  ;;  %v3431_v48 = vadd.f32 1.0, %v3430_v11  ;;  %4384 = vlog2.f32 %v3445_v32  ;;  %v8982_v28 = vmin.f32 %v8981_v63, 0.0 }
 0x3c6   :  { %v3232_v1 = vadd.f32 %v4126_v10, %v3120_v6  ;;  %vm3073_vm12 = vcmp.eq.s32.totalorder %v4697_v43, %v3047_v13  ;;  %v3519_v38 = vsel %vm159_vm2, %v3487_v12, 0.0  ;;  %vm2963_vm13 = vcmp.eq.s32.totalorder %v4697_v43, %v7792_v46  ;;  %v3168_v10 = vpop.permute.xlu0 %3167  ;;  %v8992_v13 = vld [vmem:[#allocation79_spill] sm:$0xff] }
 0x3c7   :  { %v4111_v39 = vsel %vm3073_vm12, 1.0, %v8581_v14  ;;  %3520 = vadd.xlane.f32.xlu0 %v3519_v38  ;;  %v3473_v60 = vsub.f32 %v8982_v28, %v3417_v7  ;;  %v3429_v23 = vmul.f32 0.6931472, %v4379_v19  ;;  %vm2964_vm15 = vcmp.eq.s32.totalorder %v4697_v43, %v8983_v44 }
 0x3c8   :  { %v3121_v3 = vadd.f32 %v4111_v39, %v3009_v22  ;;  %v3488_v4 = vmul.f32 %v7988_v33, %v3232_v1  ;;  %v4127_v41 = vsel %vm3185_vm11, 1.0, %v8581_v14  ;;  %v3010_v16 = vadd.f32 %v4096_v0, %v8984_v5 }
 0x3c9   :  { %v3050_v57 = vpop.permute.xlu1 %3049  ;;  %vm3186_vm1 = vcmp.eq.s32.totalorder %v4697_v43, %v3162_v55  ;;  %v3440_v33 = vadd.f32 1.0, %v8048_v45  ;;  %v3432_v25 = vmul.f32 %v7971_v42, %v3431_v48  ;;  %v4097_v27 = vsel %vm2963_vm13, 1.0, %v8581_v14  ;;  %v4381_v35 = vpop.eup %4380 }
 0x3ca   :  { %v3233_v11 = vadd.f32 %v4127_v41, %v3121_v3  ;;  %vm3074_vm14 = vcmp.eq.s32.totalorder %v4697_v43, %v3050_v57  ;;  %v3522_v46 = vsel %vm159_vm2, %v3488_v4, 0.0  ;;  %v8986_v26 = vmin.f32 %v8985_v9, 0.0  ;;  %v3174_v5 = vpop.permute.xlu0 %3173 }
 0x3cb   :  { %v4112_v15 = vsel %vm3074_vm14, 1.0, %v8581_v14  ;;  %3523 = vadd.xlane.f32.xlu1 %v3522_v46  ;;  %vm8147_vm0 = vcmp.lt.f32.partialorder %v3433_v17, 0.0004427343  ;;  %v4098_v42 = vsel %vm2964_vm15, 1.0, %v8581_v14  ;;  %v4128_v59 = vsel %vm3186_vm1, 1.0, %v8581_v14 }
 0x3cc   :  { %v3474_v61 = vsub.f32 %v8986_v26, %v3426_v37  ;;  %v3122_v36 = vadd.f32 %v4112_v15, %v3010_v16  ;;  %v3489_v50 = vmul.f32 %v3473_v60, %v3233_v11  ;;  %v3435_v45 = vsel %vm8147_vm0, %v3432_v25, %v3429_v23 }
 0x3cd   :  { %vm3187_vm3 = vcmp.eq.s32.totalorder %v4697_v43, %v3165_v47  ;;  %v3053_v20 = vpop.permute.xlu1 %3052  ;;  %v3011_v30 = vadd.f32 %v4097_v27, %v8989_v51  ;;  %v3438_v54 = vmul.f32 0.6931472, %v4381_v35  ;;  %v3251_v32 = vmin.f32 %v7767_v40, 0.0 }
 0x3ce   :  { %v3234_v53 = vadd.f32 %v4128_v59, %v3122_v36  ;;  %vm3075_vm4 = vcmp.eq.s32.totalorder %v4697_v43, %v3053_v20  ;;  %v3525_v58 = vsel %vm159_vm2, %v3489_v50, 0.0  ;;  %v3441_v29 = vmul.f32 %v7962_v56, %v3440_v33 }
 0x3cf   :  { %v4113_v8 = vsel %vm3075_vm4, 1.0, %v8581_v14  ;;  %3526 = vadd.xlane.f32.xlu0 %v3525_v58  ;;  %vm8169_vm5 = vcmp.lt.f32.partialorder %v3442_v2, 0.0004427343  ;;  %v4383_v19 = vpop.eup %4382  ;;  %v3475_v7 = vsub.f32 %v3251_v32, %v3435_v45  ;;  %v3457_v0 = vmul.f32 -0.5, %v8041_v24 }
 0x3d0   :  { %v3123_v6 = vadd.f32 %v4113_v8, %v3011_v30  ;;  %v3490_v12 = vmul.f32 %v3474_v61, %v3234_v53  ;;  %v4129_v40 = vsel %vm3187_vm3, 1.0, %v8581_v14  ;;  %v3012_v62 = vadd.f32 %v4098_v42, %v8992_v13  ;;  %v8995_v61 = vld [vmem:[#allocation81_spill] sm:$0xff] }
 0x3d1   :  { %v3056_v55 = vpop.permute.xlu1 %3055  ;;  %vm3188_vm6 = vcmp.eq.s32.totalorder %v4697_v43, %v3168_v10  ;;  %v3444_v22 = vsel %vm8169_vm5, %v3441_v29, %v3438_v54  ;;  %v3252_v37 = vmin.f32 %v7739_v31, 0.0  ;;  %v3448_v48 = vmul.f32 -0.5, %v8088_v18 }
 0x3d2   :  { %v3235_v56 = vadd.f32 %v4129_v40, %v3123_v6  ;;  %vm3076_vm7 = vcmp.eq.s32.totalorder %v4697_v43, %v3056_v55  ;;  %v3528_v2 = vsel %vm159_vm2, %v3490_v12, 0.0  ;;  %v4385_v38 = vpop.eup %4384  ;;  %v3458_v28 = vadd.f32 1.0, %v3457_v0 }
 0x3d3   :  { %v4114_v1 = vsel %vm3076_vm7, 1.0, %v8581_v14  ;;  %3529 = vadd.xlane.f32.xlu1 %v3528_v2  ;;  %v3460_v60 = vand.u32 2147483647, %v8041_v24  ;;  %v4130_v3 = vsel %vm3188_vm6, 1.0, %v8581_v14  ;;  %v3476_v23 = vsub.f32 %v3252_v37, %v3444_v22 }
 0x3d4   :  { %v3124_v39 = vadd.f32 %v4114_v1, %v3012_v62  ;;  %v3491_v63 = vmul.f32 %v3475_v7, %v3235_v56  ;;  %v3456_v57 = vmul.f32 0.6931472, %v4383_v19  ;;  %v3449_v16 = vadd.f32 1.0, %v3448_v48 }
 0x3d5   :  { %v3059_v4 = vpop.permute.xlu1 %3058  ;;  %v3459_v31 = vmul.f32 %v8041_v24, %v3458_v28  ;;  %vm8190_vm8 = vcmp.lt.f32.partialorder %v3460_v60, 0.0004427343  ;;  %v3451_v33 = vand.u32 2147483647, %v8088_v18  ;;  %v3447_v27 = vmul.f32 0.6931472, %v4385_v38 }
 0x3d6   :  { %v3236_v44 = vadd.f32 %v4130_v3, %v3124_v39  ;;  %v3531_v41 = vsel %vm159_vm2, %v3491_v63, 0.0  ;;  %vm3077_vm9 = vcmp.eq.s32.totalorder %v4697_v43, %v3059_v4  ;;  %vm3190_vm10 = vcmp.eq.s32.totalorder %v4697_v43, %v3174_v5 }
 0x3d7   :  { %3532 = vadd.xlane.f32.xlu0 %v3531_v41  ;;  %v3462_v15 = vsel %vm8190_vm8, %v3459_v31, %v3456_v57  ;;  %v3254_v35 = vmin.f32 %v7838_v49, 0.0  ;;  %v3450_v9 = vmul.f32 %v8088_v18, %v3449_v16  ;;  %v4115_v26 = vsel %vm3077_vm9, 1.0, %v8581_v14 }
 0x3d8   :  { %v3492_v11 = vmul.f32 %v3476_v23, %v3236_v44  ;;  %vm3452_vm12 = vcmp.lt.f32.partialorder %v3451_v33, 0.0004427343  ;;  %v4132_v36 = vsel %vm3190_vm10, 1.0, %v8581_v14  ;;  %v3253_v20 = vmin.f32 %v7919_v21, 0.0 }
 0x3d9   :  { %v3062_v25 = vpop.permute.xlu1 %3061  ;;  %v3478_v50 = vsub.f32 %v3254_v35, %v3462_v15  ;;  %v3453_v45 = vsel %vm3452_vm12, %v3450_v9, %v3447_v27  ;;  %v3125_v51 = vadd.f32 %v4115_v26, %v7848_v34  ;;  %v8996_v12 = vlaneseq }
 0x3da   :  { %vm3078_vm11 = vcmp.eq.s32.totalorder %v4697_v43, %v3062_v25  ;;  %v3534_v47 = vsel %vm159_vm2, %v3492_v11, 0.0  ;;  %v3477_v30 = vsub.f32 %v3253_v20, %v3453_v45  ;;  %v3593_v7 = vadd.s32 4294967272, %v4697_v43 }
 0x3db   :  { %v4116_v24 = vsel %vm3078_vm11, 1.0, %v8581_v14  ;;  %3535 = vadd.xlane.f32.xlu1 %v3534_v47  ;;  %v8214_v19 = vshrl.u32 %v8996_v12, 7  ;;  %v3586_v0 = vadd.s32 4294967280, %v4697_v43  ;;  %v3600_v10 = vadd.s32 4294967264, %v4697_v43 }
 0x3dc   :  { %v3126_v52 = vadd.f32 %v4116_v24, %v8995_v61  ;;  %v3607_v55 = vadd.s32 4294967256, %v4697_v43  ;;  %v3614_v22 = vadd.s32 4294967248, %v4697_v43  ;;  %v3621_v48 = vadd.s32 4294967240, %v4697_v43 }
 0x3dd   :  { %v3577_v62 = vsub.s32 %v4697_v43, %v8214_v19  ;;  %v3596_v1 = vsub.s32 %v3593_v7, %v8214_v19  ;;  %v3589_v38 = vsub.s32 %v3586_v0, %v8214_v19  ;;  %vm3591_vm15 = vcmask 195712  }
 0x3de   :  { %v3238_v42 = vadd.f32 %v4132_v36, %v3126_v52  ;;  %v3171_v59 = vpop.permute.xlu1 %3170  ;;  %vm3598_vm1 = vcmask 261312   ;;  %v3603_v28 = vsub.s32 %v3600_v10, %v8214_v19  ;;  %vm3605_vm14 = vcmask 326912  }
 0x3df   :  { %vm3189_vm13 = vcmp.eq.s32.totalorder %v4697_v43, %v3171_v59  ;;  %v3610_v60 = vsub.s32 %v3607_v55, %v8214_v19  ;;  %vm3612_vm0 = vcmask 392512   ;;  %v3617_v23 = vsub.s32 %v3614_v22, %v8214_v19 }
 0x3e0   :  { %v4131_v49 = vsel %vm3189_vm13, 1.0, %v8581_v14  ;;  %v3494_v18 = vmul.f32 %v3478_v50, %v3238_v42  ;;  %v3579_v14 = vadd.s32 4294967288, %v4697_v43  ;;  %vm3619_vm3 = vcmask 458112  }
 0x3e1   :  { %v3237_v53 = vadd.f32 %v4131_v49, %v3125_v51  ;;  %v3628_v44 = vadd.s32 4294967232, %v4697_v43  ;;  %v3624_v5 = vsub.s32 %v3621_v48, %v8214_v19  ;;  %vm3626_vm4 = vcmask 523712  }
 0x3e2   :  { %v3540_v58 = vsel %vm159_vm2, %v3494_v18, 0.0  ;;  %v3582_v56 = vsub.s32 %v3579_v14, %v8214_v19  ;;  %v3635_v16 = vadd.s32 4294967224, %v4697_v43  ;;  %v3642_v33 = vadd.s32 4294967216, %v4697_v43 }
 0x3e3   :  { %3541 = vadd.xlane.f32.xlu1 %v3540_v58  ;;  %v3493_v54 = vmul.f32 %v3477_v30, %v3237_v53  ;;  %vm3633_vm5 = vcmask 589312   ;;  %v3649_v47 = vadd.s32 4294967208, %v4697_v43  ;;  %v3656_v24 = vadd.s32 4294967200, %v4697_v43 }
 0x3e4   :  { %v3631_v26 = vsub.s32 %v3628_v44, %v8214_v19  ;;  %v3663_v61 = vadd.s32 4294967192, %v4697_v43  ;;  %v3638_v45 = vsub.s32 %v3635_v16, %v8214_v19  ;;  %v3645_v51 = vsub.s32 %v3642_v33, %v8214_v19 }
 0x3e5   :  { %v3537_v32 = vsel %vm159_vm2, %v3493_v54, 0.0  ;;  %vm3584_vm2 = vcmask 130112   ;;  %v3652_v53 = vsub.s32 %v3649_v47, %v8214_v19  ;;  %v3659_v58 = vsub.s32 %v3656_v24, %v8214_v19 }
 0x3e6   :  { %3538 = vadd.xlane.f32.xlu0 %v3537_v32  ;;  %v3670_v12 = vadd.s32 4294967184, %v4697_v43  ;;  %vm3640_vm6 = vcmask 654912   ;;  %vm3647_vm7 = vcmask 720512   ;;  %vm3654_vm8 = vcmask 786112  }
 0x3e7   :  { %vm3661_vm9 = vcmask 851712   ;;  %vm3668_vm10 = vcmask 917312   ;;  %vm3675_vm11 = vcmask 982912   ;;  %vm3682_vm12 = vcmask 1048512  }
 0x42e   :  { %v3497_v29 = vpop.xlane.xlu1 %3496 }
 0x42f   :  { %v3543_v39 = vsub.f32 0.0, %v3497_v29 }
 0x431   :  { %v3578_v11 = vrot.slane %v3543_v39, %v3577_v62 }
 0x436   :  { %v3506_v21 = vpop.xlane.xlu1 %3505 }
 0x437   :  { %v3546_v31 = vsub.f32 0.0, %v3506_v21 }
 0x439   :  { %v3500_v8 = vpop.xlane.xlu0 %3499  ;;  %v3597_v42 = vrot.slane %v3546_v31, %v3596_v1  ;;  %v3673_v1 = vsub.s32 %v3670_v12, %v8214_v19 }
 0x43a   :  { %v3544_v2 = vsub.f32 0.0, %v3500_v8 }
 0x43c   :  { %v3583_v4 = vrot.slane %v3544_v2, %v3582_v56 }
 0x43d   :  { %v3503_v17 = vpop.xlane.xlu0 %3502 }
 0x43e   :  { %v3545_v37 = vsub.f32 0.0, %v3503_v17  ;;  %v3585_v35 = vsel %vm3584_vm2, %v3583_v4, %v3578_v11  ;;  %v3666_v17 = vsub.s32 %v3663_v61, %v8214_v19 }
 0x440   :  { %v3590_v41 = vrot.slane %v3545_v37, %v3589_v38 }
 0x441   :  { %v3509_v6 = vpop.xlane.xlu0 %3508 }
 0x442   :  { %v3547_v57 = vsub.f32 0.0, %v3509_v6  ;;  %v3592_v52 = vsel %vm3591_vm15, %v3590_v41, %v3585_v35 }
 0x443   :  { %v3599_v32 = vsel %vm3598_vm1, %v3597_v42, %v3592_v52 }
 0x444   :  { %v3512_v34 = vpop.xlane.xlu1 %3511  ;;  %v3604_v36 = vrot.slane %v3547_v57, %v3603_v28 }
 0x445   :  { %v3548_v46 = vsub.f32 0.0, %v3512_v34 }
 0x446   :  { %v3606_v21 = vsel %vm3605_vm14, %v3604_v36, %v3599_v32 }
 0x447   :  { %v3611_v59 = vrot.slane %v3548_v46, %v3610_v60 }
 0x448   :  { %v3515_v40 = vpop.xlane.xlu0 %3514 }
 0x449   :  { %v3549_v27 = vsub.f32 0.0, %v3515_v40  ;;  %v3613_v14 = vsel %vm3612_vm0, %v3611_v59, %v3606_v21  ;;  %v3677_v40 = vadd.s32 4294967176, %v4697_v43 }
 0x44b   :  { %v3618_v18 = vrot.slane %v3549_v27, %v3617_v23  ;;  %v3680_v43 = vsub.s32 %v3677_v40, %v8214_v19 }
 0x44c   :  { %v3518_v13 = vpop.xlane.xlu1 %3517 }
 0x44d   :  { %v3550_v9 = vsub.f32 0.0, %v3518_v13  ;;  %v3620_v10 = vsel %vm3619_vm3, %v3618_v18, %v3613_v14 }
 0x44f   :  { %v3625_v8 = vrot.slane %v3550_v9, %v3624_v5 }
 0x450   :  { %v3521_v63 = vpop.xlane.xlu0 %3520 }
 0x451   :  { %v3551_v50 = vsub.f32 0.0, %v3521_v63  ;;  %v3627_v62 = vsel %vm3626_vm4, %v3625_v8, %v3620_v10 }
 0x453   :  { %v3632_v6 = vrot.slane %v3551_v50, %v3631_v26 }
 0x454   :  { %v3524_v3 = vpop.xlane.xlu1 %3523 }
 0x455   :  { %v3552_v20 = vsub.f32 0.0, %v3524_v3  ;;  %v3634_v2 = vsel %vm3633_vm5, %v3632_v6, %v3627_v62 }
 0x457   :  { %v3639_v7 = vrot.slane %v3552_v20, %v3638_v45 }
 0x458   :  { %v3527_v25 = vpop.xlane.xlu0 %3526 }
 0x459   :  { %v3553_v30 = vsub.f32 0.0, %v3527_v25  ;;  %v3641_v38 = vsel %vm3640_vm6, %v3639_v7, %v3634_v2 }
 0x45b   :  { %v3646_v55 = vrot.slane %v3553_v30, %v3645_v51 }
 0x45c   :  { %v3530_v15 = vpop.xlane.xlu1 %3529 }
 0x45d   :  { %v3554_v29 = vsub.f32 0.0, %v3530_v15  ;;  %v3648_v63 = vsel %vm3647_vm7, %v3646_v55, %v3641_v38 }
 0x45f   :  { %v3653_v56 = vrot.slane %v3554_v29, %v3652_v53 }
 0x460   :  { %v3533_v49 = vpop.xlane.xlu0 %3532 }
 0x461   :  { %v3555_v34 = vsub.f32 0.0, %v3533_v49  ;;  %v3655_v60 = vsel %vm3654_vm8, %v3653_v56, %v3648_v63 }
 0x463   :  { %v3660_v22 = vrot.slane %v3555_v34, %v3659_v58 }
 0x464   :  { %v3536_v54 = vpop.xlane.xlu1 %3535 }
 0x465   :  { %v3556_v0 = vsub.f32 0.0, %v3536_v54  ;;  %v3662_v3 = vsel %vm3661_vm9, %v3660_v22, %v3655_v60 }
 0x467   :  { %v3667_v37 = vrot.slane %v3556_v0, %v3666_v17 }
 0x469   :  { %v3669_v44 = vsel %vm3668_vm10, %v3667_v37, %v3662_v3 }
 0x46c   :  { %v3542_v13 = vpop.xlane.xlu1 %3541 }
 0x46d   :  { %v3558_v48 = vsub.f32 0.0, %v3542_v13 }
 0x46f   :  { %v3539_v39 = vpop.xlane.xlu0 %3538  ;;  %v3681_v23 = vrot.slane %v3558_v48, %v3680_v43 }
 0x470   :  { %v3557_v28 = vsub.f32 0.0, %v3539_v39 }
 0x472   :  { %v3674_v4 = vrot.slane %v3557_v28, %v3673_v1 }
 0x474   :  { %v3676_v41 = vsel %vm3675_vm11, %v3674_v4, %v3669_v44 }
 0x475   :  { %v3683_v57 = vsel %vm3682_vm12, %v3681_v23, %v3676_v41 }
 0x476   :  { %3685 = vst [vmem:[#allocation2] sm:$0x1] %v3683_v57 }
 0x477   :  { %4439 = shalt.err (!%p4436_p4)
}
 0x478   :  { %3695 = dma.vmem_to_hbm [thread:$0]  %s3693_s16, 16, %s8263_s4, [#allocation3]  }
 0x479   :  { %4448 = dma.done.wait [#allocation3], 16  }
 0x47a   :  { %4449 = vsyncadd [#allocation3], 4294967280 }
 0x47b   :  { %3699 = vsyncpa [#allocation3], 1 }

</bundles_post_ra>
